<compile_context>
chip_gen: v5e
topology: v5e:2x2
jax: 0.10.0
libtpu: 0.0.40
codegen_flags: <defaults>
</compile_context>

<pallas_src>
import functools

import jax
import jax.numpy as jnp
import numpy as np
from jax import lax
from jax.experimental import pallas as pl
from jax.experimental.pallas import tpu as pltpu


def _round_up(x, m):
    return (x + m - 1) // m * m


def _attention_tri_kernel(vec12_ref, mat_ref, len_ref, w12_ref, wm_ref, wa_ref,
                          rep_ref, attn_ref,
                          m_ref, d_ref, racc_ref, logit_buf, *, n_t_tiles):
    j = pl.program_id(1)                                  # T-tile index (inner, "arbitrary")
    TB, TT, Dab = mat_ref.shape
    A = wm_ref.shape[1]

    @pl.when(j == 0)
    def _init():
        m_ref[...] = jnp.full_like(m_ref, -1e30)
        d_ref[...] = jnp.zeros_like(d_ref)
        racc_ref[...] = jnp.zeros_like(racc_ref)

    mat = mat_ref[...]                                    # (TB, TT, Dab), stream dtype

    # t1 = linear_vec(vector) + linear_vec2(vector2): one fused MXU matmul.
    # Tiny; recomputed per T tile (vec12 / w12 stay VMEM-resident across j).
    t1 = jnp.dot(vec12_ref[...], w12_ref[...],
                 preferred_element_type=jnp.float32)      # (TB, A) f32

    # t2 = linear_mat(matrix): the single big MXU matmul.  TT % 8 == 0 and
    # Dab % 128 == 0, so the (TB*TT, Dab) collapse is a free layout view.
    t2 = jnp.dot(mat.reshape(TB * TT, Dab), wm_ref[...],
                 preferred_element_type=jnp.float32).reshape(TB, TT, A)

    t3 = jnp.maximum(t2 + t1[:, None, :], 0.0)            # relu, f32

    # logits = linear_attn(t3).squeeze(-1): N=1 matmul replaced by a VPU multiply
    # and a lane-direction reduce over A (no MXU drain, no lane-sparse result).
    logits = jnp.sum(t3 * wa_ref[...][None, :, :], axis=-1)    # (TB, TT) f32

    # dynamic_softmax: masked softmax over the valid timesteps of each row.
    # TODO(synk): dynamic_softmax is external to the reference snippet; implemented
    # as the standard masked renormalization (DeepMoji semantics).  A per-row running
    # max replaces the module's global max shift -- identical after renormalization
    # (to fp tolerance, not bitwise).
    lengths = len_ref[...]                                 # (TB, 1) int32
    t_idx = j * TT + lax.broadcasted_iota(jnp.int32, (TB, TT), 1)
    mask = t_idx < lengths
    logits = jnp.where(mask, logits, jnp.float32(-1e30))

    # Stash the masked logits so the attention row can be normalized against the
    # final row max at the last T step (dynamic index on the leading scratch axis).
    logit_buf[j] = logits

    # Online softmax statistics + representations accumulator.
    m_prev = m_ref[...]                                    # (TB, 1)
    m_new = jnp.maximum(m_prev, jnp.max(logits, axis=1, keepdims=True))
    scale = jnp.exp(jnp.maximum(m_prev - m_new, -80.0))    # (TB, 1); first step -> ~0
    p = jnp.where(mask, jnp.exp(jnp.maximum(logits - m_new, -80.0)), 0.0)
    d_ref[...] = scale * d_ref[...] + jnp.sum(p, axis=1, keepdims=True)
    # rep contribution: VPU multiply + sublane reduce over T.  p stays f32; the
    # bf16 matrix is promoted elementwise (accumulation in f32).
    racc_ref[...] = scale * racc_ref[...] + jnp.sum(p[:, :, None] * mat, axis=1)
    m_ref[...] = m_new

    @pl.when(j == n_t_tiles - 1)
    def _finalize():
        d = d_ref[...]
        # Rows with zero valid timesteps (batch padding) return attn = 0, rep = 0
        # (the PyTorch reference would divide by zero for such rows).
        d_safe = jnp.where(d > 0.0, d, 1.0)
        inv = pl.reciprocal(d_safe, approx=True)           # EUP slot
        inv = inv * (2.0 - d_safe * inv)                   # one Newton step (~1 ulp)
        m_fin = m_ref[...]
        for t in range(n_t_tiles):                         # static -> unrolled, static slices
            at = jnp.exp(jnp.maximum(logit_buf[t] - m_fin, -80.0)) * inv
            t_idx_t = t * TT + lax.broadcasted_iota(jnp.int32, (TB, TT), 1)
            attn_ref[:, t * TT:(t + 1) * TT] = jnp.where(t_idx_t < lengths, at, 0.0)
        rep_ref[...] = (racc_ref[...] * inv).astype(rep_ref.dtype)


def attention_tri(vector, vector2, matrix, input_lengths, params, *,
                  batch_tile=32, t_tile=512, stream_dtype=jnp.bfloat16,
                  vmem_budget_bytes=24 * 1024 * 1024):
    """params = (w_vec, w_vec2, w_mat, w_attn) in PyTorch (out, in) convention."""
    wv, wv2, wm, wa = params
    B, T, Dab = matrix.shape
    Dv = vector.shape[-1]
    A = wv.shape[0]
    Dv2 = 2 * Dv
    isz = jnp.dtype(stream_dtype).itemsize

    # Lane-dense streaming layout for the dominant HBM stream.
    Dab_pad = _round_up(Dab, 128)

    # --- Tile selection -------------------------------------------------------
    TB = max(8, (int(batch_tile) // 8) * 8)
    # Keep >= 2 batch grid steps when the batch allows it so the "parallel" axis
    # can actually shard across v7x's two TensorCores.
    while TB > 8 and -(-B // TB) < 2:
        TB = max(8, ((TB // 2) + 7) // 8 * 8)

    TT = max(128, min((int(t_tile) // 128) * 128, _round_up(T, 128)))

    def vmem_estimate(tb, tt):
        tp = _round_up(T, tt)
        return (2 * tb * tt * Dab_pad * isz            # double-buffered matrix tile
                + tb * tt * Dab_pad * 4                # f32 temp of p * matrix
                + 3 * tb * tt * A * 4                  # t2 / t3 / logits temporaries
                + tb * tp * 4                          # logit scratch (resident)
                + 2 * tb * tp * 4                      # attn output row (resident)
                + 3 * tb * Dab_pad * 4                 # rep output + accumulator
                + 2 * (Dv2 + Dab_pad) * A * isz + 2 * A * 4   # weights
                + 2 * tb * Dv2 * isz + 4 * tb * 4)     # vec12, lengths, softmax stats

    # Respect an explicit VMEM budget (conservative enough for v7x's 64 MiB).
    while vmem_estimate(TB, TT) > vmem_budget_bytes and TT > 128:
        TT = max(128, (TT // 2) // 128 * 128)
    while vmem_estimate(TB, TT) > vmem_budget_bytes and TB > 8:
        TB = max(8, (TB // 2) // 8 * 8)

    B_pad = _round_up(B, TB)
    T_pad = _round_up(T, TT)
    nT = T_pad // TT

    # --- Operand preparation (bf16 streaming by default, f32 accumulation) -----
    vec12 = jnp.concatenate([vector.reshape(B, Dv), vector2.reshape(B, Dv)], axis=-1)
    vec12 = jnp.pad(vec12.astype(stream_dtype), ((0, B_pad - B), (0, 0)))
    mat = jnp.pad(matrix.astype(stream_dtype),
                  ((0, B_pad - B), (0, T_pad - T), (0, Dab_pad - Dab)))
    lengths = jnp.pad(input_lengths.astype(jnp.int32).reshape(B, 1),
                      ((0, B_pad - B), (0, 0)))

    # Fused vector projection: [vec | vec2] @ [[Wv^T]; [Wv2^T]].
    w12 = jnp.concatenate([wv, wv2], axis=1).T.astype(stream_dtype)          # (2*Dv, A)
    wm_t = jnp.pad(wm, ((0, 0), (0, Dab_pad - Dab))).T.astype(stream_dtype)  # (Dab_pad, A)
    wa_row = wa.reshape(1, A).astype(jnp.float32)                            # (1, A)

    grid = (B_pad // TB, nT)

    flops = int(2 * B_pad * Dv2 * A * nT               # fused vector projection
                + 2 * B_pad * T_pad * Dab_pad * A      # matrix projection
                + 6 * B_pad * T_pad * A                # add / relu / logits mul+reduce
                + 3 * B_pad * T_pad * Dab_pad)         # weighted sum over T
    transcendentals = int(2 * B_pad * T_pad + 4 * B_pad * nT)
    bytes_accessed = int(mat.size * isz + vec12.size * isz + lengths.size * 4
                         + w12.size * isz + wm_t.size * isz + wa_row.size * 4
                         + B_pad * Dab_pad * 4 + B_pad * T_pad * 4)

    vmem_limit = int(min(64 * 1024 * 1024,
                         max(32 * 1024 * 1024, round(1.5 * vmem_estimate(TB, TT)))))

    kernel = functools.partial(_attention_tri_kernel, n_t_tiles=nT)

    rep, attn = pl.pallas_call(
        kernel,
        out_shape=(jax.ShapeDtypeStruct((B_pad, Dab_pad), jnp.float32),
                   jax.ShapeDtypeStruct((B_pad, T_pad), jnp.float32)),
        grid=grid,
        in_specs=[
            pl.BlockSpec((TB, Dv2), lambda i, j: (i, 0)),             # fused vectors
            pl.BlockSpec((TB, TT, Dab_pad), lambda i, j: (i, j, 0)),  # matrix stream
            pl.BlockSpec((TB, 1), lambda i, j: (i, 0)),               # lengths
            # Resident weights (constant index_map -> fetched once, kept in VMEM).
            # NOTE: pipeline_mode=pl.Buffered(1) would reclaim one VMEM copy of each
            # weight on VMEM-tight v7x; omitted here because the weights are tiny.
            pl.BlockSpec((Dv2, A), lambda i, j: (0, 0)),
            pl.BlockSpec((Dab_pad, A), lambda i, j: (0, 0)),
            pl.BlockSpec((1, A), lambda i, j: (0, 0)),
        ],
        out_specs=(pl.BlockSpec((TB, Dab_pad), lambda i, j: (i, 0)),
                   pl.BlockSpec((TB, T_pad), lambda i, j: (i, 0))),
        scratch_shapes=[
            pltpu.VMEM((TB, 1), jnp.float32),          # running row max
            pltpu.VMEM((TB, 1), jnp.float32),          # running denominator
            pltpu.VMEM((TB, Dab_pad), jnp.float32),    # representations accumulator
            pltpu.VMEM((nT, TB, TT), jnp.float32),     # masked logits for finalize
        ],
        compiler_params=pltpu.CompilerParams(
            dimension_semantics=("parallel", "arbitrary"),
            vmem_limit_bytes=vmem_limit),
        cost_estimate=pl.CostEstimate(flops=flops,
                                      transcendentals=transcendentals,
                                      bytes_accessed=bytes_accessed),
    )(vec12, mat, lengths, w12, wm_t, wa_row)

    return rep[:B, :Dab], attn[:B, :T]


def init_linear(key, out_features, in_features):
    # PyTorch nn.Linear default init: U(-1/sqrt(fan_in), 1/sqrt(fan_in))
    bound = 1.0 / float(np.sqrt(in_features))
    return jax.random.uniform(key, (out_features, in_features),
                              jnp.float32, -bound, bound)


if __name__ == "__main__":
    B, T = 2, 8
    dim_vect, dim_attn, flag_bid = 32, 16, True
    dim_attn_bid = dim_attn * (2 if flag_bid else 1)

    key = jax.random.PRNGKey(0)
    ks = jax.random.split(key, 8)

    w_vec = init_linear(ks[0], dim_attn, dim_vect)
    w_vec2 = init_linear(ks[1], dim_attn, dim_vect)
    w_mat = init_linear(ks[2], dim_attn, dim_attn_bid)
    w_attn = init_linear(ks[3], 1, dim_attn)

    vector = jax.random.normal(ks[4], (B, 1, dim_vect), jnp.float32)
    vector2 = jax.random.normal(ks[5], (B, 1, dim_vect), jnp.float32)
    matrix = jax.random.normal(ks[6], (B, T, dim_attn_bid), jnp.float32)
    input_lengths = jnp.array([8, 5], dtype=jnp.int32)

    rep, attn = attention_tri(vector, vector2, matrix, input_lengths,
                              (w_vec, w_vec2, w_mat, w_attn))
    jax.block_until_ready((rep, attn))

    # Plain-JAX reference mirroring the PyTorch forward (global-max shift).  The
    # streamed operands are quantized to the kernel's bf16 dtype so the comparison
    # isolates kernel correctness; accumulation is f32 in both paths.
    q = lambda x: x.astype(jnp.bfloat16).astype(jnp.float32)
    vq, v2q, mq = q(vector), q(vector2), q(matrix)
    wvq, wv2q, wmq = q(w_vec), q(w_vec2), q(w_mat)

    t1 = vq @ wvq.T + v2q @ wv2q.T                     # (B, 1, A)  (bf16-exact inputs)
    t2 = mq @ wmq.T                                    # (B, T, A)
    t3 = jnp.maximum(t1 + t2, 0.0)
    # == (t3 @ w_attn.T).squeeze(-1), computed elementwise in f32 so TPU's default
    # bf16 matmul truncation does not perturb the f32 reference logits.
    logits = jnp.sum(t3 * w_attn.reshape(1, 1, dim_attn), axis=-1)   # (B, T)
    unnorm = jnp.exp(logits - logits.max())            # global max, as in the module
    mask = (jnp.arange(T)[None, :] < input_lengths[:, None]).astype(jnp.float32)
    masked = unnorm * mask
    attn_ref = masked / masked.sum(axis=1, keepdims=True)
    rep_ref = (mq * attn_ref[..., None]).sum(axis=1)

    # Tolerance covers f32 accumulation-order differences, the approx reciprocal +
    # Newton step, and exp-implementation differences between Mosaic and XLA.
    assert np.allclose(np.asarray(attn), np.asarray(attn_ref),
                       atol=1e-4, rtol=1e-4), "attn mismatch"
    assert np.allclose(np.asarray(rep), np.asarray(rep_ref),
                       atol=1e-4, rtol=1e-4), "rep mismatch"
    print("KERNEL_OK")
</pallas_src>

<mosaic_0001>
module attributes {stable_mosaic.version = 11 : i64} {
  func.func @_attention_tri_kernel(%arg0: i32, %arg1: i32, %arg2: memref<8x64xbf16, #tpu.memory_space<vmem>>, %arg3: memref<8x128x128xbf16, #tpu.memory_space<vmem>>, %arg4: memref<8x1xi32, #tpu.memory_space<vmem>>, %arg5: memref<64x16xbf16, #tpu.memory_space<vmem>>, %arg6: memref<128x16xbf16, #tpu.memory_space<vmem>>, %arg7: memref<1x16xf32, #tpu.memory_space<vmem>>, %arg8: memref<8x128xf32, #tpu.memory_space<vmem>>, %arg9: memref<8x128xf32, #tpu.memory_space<vmem>>, %arg10: memref<8x1xf32, #tpu.memory_space<vmem>>, %arg11: memref<8x1xf32, #tpu.memory_space<vmem>>, %arg12: memref<8x128xf32, #tpu.memory_space<vmem>>, %arg13: memref<1x8x128xf32, #tpu.memory_space<vmem>>) attributes {dimension_semantics = [#tpu.dimension_semantics<parallel>, #tpu.dimension_semantics<arbitrary>], iteration_bounds = array<i64: 1, 1>, scalar_prefetch = 0 : i64, scratch_operands = 4 : i64, tpu.core_type = #tpu.core_type<tc>, window_params = [{transform_indices = @transform_0, window_bounds = array<i64: 8, 64>}, {transform_indices = @transform_1, window_bounds = array<i64: 8, 128, 128>}, {transform_indices = @transform_2, window_bounds = array<i64: 8, 1>}, {pipeline_mode = #tpu.pipeline_mode<synchronous>, transform_indices = @transform_3, window_bounds = array<i64: 64, 16>}, {pipeline_mode = #tpu.pipeline_mode<synchronous>, transform_indices = @transform_4, window_bounds = array<i64: 128, 16>}, {pipeline_mode = #tpu.pipeline_mode<synchronous>, transform_indices = @transform_5, window_bounds = array<i64: 1, 16>}, {transform_indices = @transform_6, window_bounds = array<i64: 8, 128>}, {transform_indices = @transform_7, window_bounds = array<i64: 8, 128>}]} {
    %c0_i32 = arith.constant 0 : i32
    %0 = arith.cmpi eq, %arg1, %c0_i32 : i32
    %1 = arith.extui %0 : i1 to i32
    %c0_i32_0 = arith.constant 0 : i32
    %2 = arith.cmpi ne, %1, %c0_i32_0 : i32
    scf.if %2 {
      %cst_39 = arith.constant -1.000000e+30 : f32
      %69 = vector.broadcast %cst_39 : f32 to vector<8x1xf32>
      %c0_40 = arith.constant 0 : index
      %c0_41 = arith.constant 0 : index
      %70 = vector.load %arg10[%c0_40, %c0_41] : memref<8x1xf32, #tpu.memory_space<vmem>>, vector<8x1xf32>
      tpu.vector_store %arg10[%c0_40, %c0_41], %69 {strides = array<i32>} : memref<8x1xf32, #tpu.memory_space<vmem>>, vector<8x1xf32>,
      %cst_42 = arith.constant 0.000000e+00 : f32
      %71 = vector.broadcast %cst_42 : f32 to vector<8x1xf32>
      %c0_43 = arith.constant 0 : index
      %c0_44 = arith.constant 0 : index
      %72 = vector.load %arg11[%c0_43, %c0_44] : memref<8x1xf32, #tpu.memory_space<vmem>>, vector<8x1xf32>
      tpu.vector_store %arg11[%c0_43, %c0_44], %71 {strides = array<i32>} : memref<8x1xf32, #tpu.memory_space<vmem>>, vector<8x1xf32>,
      %cst_45 = arith.constant 0.000000e+00 : f32
      %73 = vector.broadcast %cst_45 : f32 to vector<8x128xf32>
      %c0_46 = arith.constant 0 : index
      %c0_47 = arith.constant 0 : index
      %74 = vector.load %arg12[%c0_46, %c0_47] : memref<8x128xf32, #tpu.memory_space<vmem>>, vector<8x128xf32>
      tpu.vector_store %arg12[%c0_46, %c0_47], %73 {strides = array<i32>} : memref<8x128xf32, #tpu.memory_space<vmem>>, vector<8x128xf32>,
    } else {
    }
    %c0 = arith.constant 0 : index
    %c0_1 = arith.constant 0 : index
    %c0_2 = arith.constant 0 : index
    %3 = vector.load %arg3[%c0, %c0_1, %c0_2] : memref<8x128x128xbf16, #tpu.memory_space<vmem>>, vector<8x128x128xbf16>
    %c0_3 = arith.constant 0 : index
    %c0_4 = arith.constant 0 : index
    %4 = vector.load %arg2[%c0_3, %c0_4] : memref<8x64xbf16, #tpu.memory_space<vmem>>, vector<8x64xbf16>
    %c0_5 = arith.constant 0 : index
    %c0_6 = arith.constant 0 : index
    %5 = vector.load %arg5[%c0_5, %c0_6] : memref<64x16xbf16, #tpu.memory_space<vmem>>, vector<64x16xbf16>
    %cst = arith.constant dense<0.000000e+00> : vector<8x16xf32>
    %6 = tpu.matmul %4, %5, %cst {dimension_numbers = #tpu.dot_dimension_numbers<[1], [0], [0], [1], [0, 0, 1, 1], [], []>} : vector<8x64xbf16>, vector<64x16xbf16>, vector<8x16xf32> -> vector<8x16xf32>
    %7 = vector.shape_cast %3 : vector<8x128x128xbf16> to vector<1024x128xbf16>
    %c0_7 = arith.constant 0 : index
    %c0_8 = arith.constant 0 : index
    %8 = vector.load %arg6[%c0_7, %c0_8] : memref<128x16xbf16, #tpu.memory_space<vmem>>, vector<128x16xbf16>
    %cst_9 = arith.constant dense<0.000000e+00> : vector<1024x16xf32>
    %9 = tpu.matmul %7, %8, %cst_9 {dimension_numbers = #tpu.dot_dimension_numbers<[1], [0], [0], [1], [0, 0, 1, 1], [], []>} : vector<1024x128xbf16>, vector<128x16xbf16>, vector<1024x16xf32> -> vector<1024x16xf32>
    %10 = vector.shape_cast %9 : vector<1024x16xf32> to vector<8x128x16xf32>
    %11 = vector.shape_cast %6 : vector<8x16xf32> to vector<8x1x16xf32>
    %12 = vector.broadcast %11 : vector<8x1x16xf32> to vector<8x128x16xf32>
    %13 = arith.addf %10, %12 : vector<8x128x16xf32>
    %cst_10 = arith.constant 0.000000e+00 : f32
    %14 = vector.broadcast %cst_10 : f32 to vector<8x128x16xf32>
    %15 = arith.maximumf %13, %14 : vector<8x128x16xf32>
    %c0_11 = arith.constant 0 : index
    %c0_12 = arith.constant 0 : index
    %16 = vector.load %arg7[%c0_11, %c0_12] : memref<1x16xf32, #tpu.memory_space<vmem>>, vector<1x16xf32>
    %17 = vector.shape_cast %16 : vector<1x16xf32> to vector<1x1x16xf32>
    %18 = vector.broadcast %17 : vector<1x1x16xf32> to vector<8x128x16xf32>
    %19 = arith.mulf %15, %18 : vector<8x128x16xf32>
    %cst_13 = arith.constant dense<0.000000e+00> : vector<8x128xf32>
    %20 = vector.multi_reduction <add>, %19, %cst_13 [2] : vector<8x128x16xf32> to vector<8x128xf32>
    %c0_14 = arith.constant 0 : index
    %c0_15 = arith.constant 0 : index
    %21 = vector.load %arg4[%c0_14, %c0_15] : memref<8x1xi32, #tpu.memory_space<vmem>>, vector<8x1xi32>
    %c128_i32 = arith.constant 128 : i32
    %22 = arith.muli %arg1, %c128_i32 : i32
    %23 = tpu.iota {dimensions = array<i32: 1>} : vector<8x128xi32>
    %24 = vector.broadcast %22 : i32 to vector<8x128xi32>
    %25 = arith.addi %24, %23 : vector<8x128xi32>
    %26 = vector.broadcast %21 : vector<8x1xi32> to vector<8x128xi32>
    %27 = arith.cmpi slt, %25, %26 : vector<8x128xi32>
    %cst_16 = arith.constant -1.000000e+30 : f32
    %28 = vector.broadcast %cst_16 : f32 to vector<8x128xf32>
    %29 = arith.select %27, %20, %28 : vector<8x128xi1>, vector<8x128xf32>
    %30 = arith.index_cast %arg1 : i32 to index
    %c0_17 = arith.constant 0 : index
    %c0_18 = arith.constant 0 : index
    %31 = vector.load %arg13[%30, %c0_17, %c0_18] : memref<1x8x128xf32, #tpu.memory_space<vmem>>, vector<1x8x128xf32>
    %32 = vector.shape_cast %31 : vector<1x8x128xf32> to vector<8x128xf32>
    %33 = vector.shape_cast %29 : vector<8x128xf32> to vector<1x8x128xf32>
    tpu.vector_store %arg13[%30, %c0_17, %c0_18], %33 {strides = array<i32>} : memref<1x8x128xf32, #tpu.memory_space<vmem>>, vector<1x8x128xf32>,
    %c0_19 = arith.constant 0 : index
    %c0_20 = arith.constant 0 : index
    %34 = vector.load %arg10[%c0_19, %c0_20] : memref<8x1xf32, #tpu.memory_space<vmem>>, vector<8x1xf32>
    %cst_21 = arith.constant dense<0xFF800000> : vector<8xf32>
    %35 = vector.multi_reduction <maximumf>, %29, %cst_21 [1] : vector<8x128xf32> to vector<8xf32>
    %36 = vector.shape_cast %35 : vector<8xf32> to vector<8x1xf32>
    %37 = arith.maximumf %34, %36 : vector<8x1xf32>
    %38 = arith.subf %34, %37 : vector<8x1xf32>
    %cst_22 = arith.constant -8.000000e+01 : f32
    %39 = vector.broadcast %cst_22 : f32 to vector<8x1xf32>
    %40 = arith.maximumf %38, %39 : vector<8x1xf32>
    %41 = math.exp %40 : vector<8x1xf32>
    %42 = vector.broadcast %37 : vector<8x1xf32> to vector<8x128xf32>
    %43 = arith.subf %29, %42 : vector<8x128xf32>
    %cst_23 = arith.constant -8.000000e+01 : f32
    %44 = vector.broadcast %cst_23 : f32 to vector<8x128xf32>
    %45 = arith.maximumf %43, %44 : vector<8x128xf32>
    %46 = math.exp %45 : vector<8x128xf32>
    %cst_24 = arith.constant 0.000000e+00 : f32
    %47 = vector.broadcast %cst_24 : f32 to vector<8x128xf32>
    %48 = arith.select %27, %46, %47 : vector<8x128xi1>, vector<8x128xf32>
    %c0_25 = arith.constant 0 : index
    %c0_26 = arith.constant 0 : index
    %49 = vector.load %arg11[%c0_25, %c0_26] : memref<8x1xf32, #tpu.memory_space<vmem>>, vector<8x1xf32>
    %50 = arith.mulf %41, %49 : vector<8x1xf32>
    %cst_27 = arith.constant dense<0.000000e+00> : vector<8xf32>
    %51 = vector.multi_reduction <add>, %48, %cst_27 [1] : vector<8x128xf32> to vector<8xf32>
    %52 = vector.shape_cast %51 : vector<8xf32> to vector<8x1xf32>
    %53 = arith.addf %50, %52 : vector<8x1xf32>
    %c0_28 = arith.constant 0 : index
    %c0_29 = arith.constant 0 : index
    %54 = vector.load %arg11[%c0_28, %c0_29] : memref<8x1xf32, #tpu.memory_space<vmem>>, vector<8x1xf32>
    tpu.vector_store %arg11[%c0_28, %c0_29], %53 {strides = array<i32>} : memref<8x1xf32, #tpu.memory_space<vmem>>, vector<8x1xf32>,
    %c0_30 = arith.constant 0 : index
    %c0_31 = arith.constant 0 : index
    %55 = vector.load %arg12[%c0_30, %c0_31] : memref<8x128xf32, #tpu.memory_space<vmem>>, vector<8x128xf32>
    %56 = vector.broadcast %41 : vector<8x1xf32> to vector<8x128xf32>
    %57 = arith.mulf %56, %55 : vector<8x128xf32>
    %58 = vector.shape_cast %48 : vector<8x128xf32> to vector<8x128x1xf32>
    %59 = arith.extf %3 : vector<8x128x128xbf16> to vector<8x128x128xf32>
    %60 = vector.broadcast %58 : vector<8x128x1xf32> to vector<8x128x128xf32>
    %61 = arith.mulf %60, %59 : vector<8x128x128xf32>
    %cst_32 = arith.constant dense<0.000000e+00> : vector<8x128xf32>
    %62 = vector.multi_reduction <add>, %61, %cst_32 [1] : vector<8x128x128xf32> to vector<8x128xf32>
    %63 = arith.addf %57, %62 : vector<8x128xf32>
    %c0_33 = arith.constant 0 : index
    %c0_34 = arith.constant 0 : index
    %64 = vector.load %arg12[%c0_33, %c0_34] : memref<8x128xf32, #tpu.memory_space<vmem>>, vector<8x128xf32>
    tpu.vector_store %arg12[%c0_33, %c0_34], %63 {strides = array<i32>} : memref<8x128xf32, #tpu.memory_space<vmem>>, vector<8x128xf32>,
    %c0_35 = arith.constant 0 : index
    %c0_36 = arith.constant 0 : index
    %65 = vector.load %arg10[%c0_35, %c0_36] : memref<8x1xf32, #tpu.memory_space<vmem>>, vector<8x1xf32>
    tpu.vector_store %arg10[%c0_35, %c0_36], %37 {strides = array<i32>} : memref<8x1xf32, #tpu.memory_space<vmem>>, vector<8x1xf32>,
    %c0_i32_37 = arith.constant 0 : i32
    %66 = arith.cmpi eq, %arg1, %c0_i32_37 : i32
    %67 = arith.extui %66 : i1 to i32
    %c0_i32_38 = arith.constant 0 : i32
    %68 = arith.cmpi ne, %67, %c0_i32_38 : i32
    scf.if %68 {
      %c0_39 = arith.constant 0 : index
      %c0_40 = arith.constant 0 : index
      %69 = vector.load %arg11[%c0_39, %c0_40] : memref<8x1xf32, #tpu.memory_space<vmem>>, vector<8x1xf32>
      %cst_41 = arith.constant 0.000000e+00 : f32
      %70 = vector.broadcast %cst_41 : f32 to vector<8x1xf32>
      %71 = arith.cmpf ogt, %69, %70 : vector<8x1xf32>
      %cst_42 = arith.constant 1.000000e+00 : f32
      %72 = vector.broadcast %cst_42 : f32 to vector<8x1xf32>
      %73 = arith.select %71, %69, %72 : vector<8x1xi1>, vector<8x1xf32>
      %74 = tpu.reciprocal %73 {approx = true} : vector<8x1xf32> -> vector<8x1xf32>
      %75 = arith.mulf %73, %74 : vector<8x1xf32>
      %cst_43 = arith.constant 2.000000e+00 : f32
      %76 = vector.broadcast %cst_43 : f32 to vector<8x1xf32>
      %77 = arith.subf %76, %75 : vector<8x1xf32>
      %78 = arith.mulf %74, %77 : vector<8x1xf32>
      %c0_44 = arith.constant 0 : index
      %c0_45 = arith.constant 0 : index
      %79 = vector.load %arg10[%c0_44, %c0_45] : memref<8x1xf32, #tpu.memory_space<vmem>>, vector<8x1xf32>
      %c0_46 = arith.constant 0 : index
      %c0_47 = arith.constant 0 : index
      %c0_48 = arith.constant 0 : index
      %80 = vector.load %arg13[%c0_46, %c0_47, %c0_48] : memref<1x8x128xf32, #tpu.memory_space<vmem>>, vector<1x8x128xf32>
      %81 = vector.shape_cast %80 : vector<1x8x128xf32> to vector<8x128xf32>
      %82 = vector.broadcast %79 : vector<8x1xf32> to vector<8x128xf32>
      %83 = arith.subf %81, %82 : vector<8x128xf32>
      %cst_49 = arith.constant -8.000000e+01 : f32
      %84 = vector.broadcast %cst_49 : f32 to vector<8x128xf32>
      %85 = arith.maximumf %83, %84 : vector<8x128xf32>
      %86 = math.exp %85 : vector<8x128xf32>
      %87 = vector.broadcast %78 : vector<8x1xf32> to vector<8x128xf32>
      %88 = arith.mulf %86, %87 : vector<8x128xf32>
      %89 = tpu.iota {dimensions = array<i32: 1>} : vector<8x128xi32>
      %c0_i32_50 = arith.constant 0 : i32
      %90 = vector.broadcast %c0_i32_50 : i32 to vector<8x128xi32>
      %91 = arith.addi %90, %89 : vector<8x128xi32>
      %92 = vector.broadcast %21 : vector<8x1xi32> to vector<8x128xi32>
      %93 = arith.cmpi slt, %91, %92 : vector<8x128xi32>
      %cst_51 = arith.constant 0.000000e+00 : f32
      %94 = vector.broadcast %cst_51 : f32 to vector<8x128xf32>
      %95 = arith.select %93, %88, %94 : vector<8x128xi1>, vector<8x128xf32>
      %c0_52 = arith.constant 0 : index
      %c0_53 = arith.constant 0 : index
      %96 = vector.load %arg9[%c0_52, %c0_53] : memref<8x128xf32, #tpu.memory_space<vmem>>, vector<8x128xf32>
      tpu.vector_store %arg9[%c0_52, %c0_53], %95 {strides = array<i32>} : memref<8x128xf32, #tpu.memory_space<vmem>>, vector<8x128xf32>,
      %c0_54 = arith.constant 0 : index
      %c0_55 = arith.constant 0 : index
      %97 = vector.load %arg12[%c0_54, %c0_55] : memref<8x128xf32, #tpu.memory_space<vmem>>, vector<8x128xf32>
      %98 = vector.broadcast %78 : vector<8x1xf32> to vector<8x128xf32>
      %99 = arith.mulf %97, %98 : vector<8x128xf32>
      %c0_56 = arith.constant 0 : index
      %c0_57 = arith.constant 0 : index
      %100 = vector.load %arg8[%c0_56, %c0_57] : memref<8x128xf32, #tpu.memory_space<vmem>>, vector<8x128xf32>
      tpu.vector_store %arg8[%c0_56, %c0_57], %99 {strides = array<i32>} : memref<8x128xf32, #tpu.memory_space<vmem>>, vector<8x128xf32>,
    } else {
    }
    return
  }
  func.func @transform_0(%arg0: i32, %arg1: i32) -> (i32, i32) {
    %c0_i32 = arith.constant 0 : i32
    %c0_i32_0 = arith.constant 0 : i32
    return %arg0, %c0_i32 : i32, i32
  }
  func.func @transform_1(%arg0: i32, %arg1: i32) -> (i32, i32, i32) {
    %c0_i32 = arith.constant 0 : i32
    %c0_i32_0 = arith.constant 0 : i32
    return %arg0, %arg1, %c0_i32 : i32, i32, i32
  }
  func.func @transform_2(%arg0: i32, %arg1: i32) -> (i32, i32) {
    %c0_i32 = arith.constant 0 : i32
    %c0_i32_0 = arith.constant 0 : i32
    return %arg0, %c0_i32 : i32, i32
  }
  func.func @transform_3(%arg0: i32, %arg1: i32) -> (i32, i32) {
    %c0_i32 = arith.constant 0 : i32
    %c0_i32_0 = arith.constant 0 : i32
    %c0_i32_1 = arith.constant 0 : i32
    return %c0_i32, %c0_i32_0 : i32, i32
  }
  func.func @transform_4(%arg0: i32, %arg1: i32) -> (i32, i32) {
    %c0_i32 = arith.constant 0 : i32
    %c0_i32_0 = arith.constant 0 : i32
    %c0_i32_1 = arith.constant 0 : i32
    return %c0_i32, %c0_i32_0 : i32, i32
  }
  func.func @transform_5(%arg0: i32, %arg1: i32) -> (i32, i32) {
    %c0_i32 = arith.constant 0 : i32
    %c0_i32_0 = arith.constant 0 : i32
    %c0_i32_1 = arith.constant 0 : i32
    return %c0_i32, %c0_i32_0 : i32, i32
  }
  func.func @transform_6(%arg0: i32, %arg1: i32) -> (i32, i32) {
    %c0_i32 = arith.constant 0 : i32
    %c0_i32_0 = arith.constant 0 : i32
    return %arg0, %c0_i32 : i32, i32
  }
  func.func @transform_7(%arg0: i32, %arg1: i32) -> (i32, i32) {
    %c0_i32 = arith.constant 0 : i32
    %c0_i32_0 = arith.constant 0 : i32
    return %arg0, %c0_i32 : i32, i32
  }
}

</mosaic_0001>

<bundles_post_ra>
// kernel: tpu_custom_call.1
= control target key start
LH: loop header
LB: loop body
LE: loop exit
PB: predicated region body
PF: predicated region fallthrough
CT: control target
= control target key end

     0   :  { %13 = vsyncpa [#allocation7], 0  ;;  %s5761_s0 = inlined_call_operand.vmem [shape: bf16[8,64], index: 0, kind: input, shape index: {}]   ;;  %s5762_s1 = inlined_call_operand.hbm [shape: bf16[8,128,128], index: 1, kind: input, shape index: {}]   ;;  %s5763_s2 = inlined_call_operand.vmem [shape: s32[8,1], index: 2, kind: input, shape index: {}]   ;;  %s5764_s3 = inlined_call_operand.vmem [shape: bf16[64,16], index: 3, kind: input, shape index: {}]   ;;  %s5765_s4 = inlined_call_operand.vmem [shape: bf16[128,16], index: 4, kind: input, shape index: {}]   ;;  %s5766_s5 = inlined_call_operand.vmem [shape: f32[1,16], index: 5, kind: input, shape index: {}]   ;;  %s5767_s6 = inlined_call_operand.hbm [shape: f32[8,128], index: 6, kind: output, shape index: {0}]   ;;  %s5768_s7 = inlined_call_operand.hbm [shape: f32[8,128], index: 7, kind: output, shape index: {1}]  }
   0x1   :  { %14 = vsyncpa [#allocation8], 0 }
   0x2   :  { %15 = vsyncpa [#allocation11], 0  ;;  %s22_s26 = sshll.u32 %s5762_s1, 4  ;;  %s4189_s27 = smov [#allocation6]   ;;  %s23_s26 = int_to_ptr.hbm [resolvable:$true] %s22_s26 }
   0x3   :  { %s24_s28 = sshll.u32 %s4189_s27, 4  ;;  %s4190_s29 = smov 64   ;;  %s25_s28 = int_to_ptr.vmem [resolvable:$true] %s24_s28 }
   0x4   :  { %s4191_s30 = smov 4  }
   0x5   :  { %30 = dma.hbm_to_vmem [thread:$0]  %s23_s26, 8192, %s25_s28, [#allocation7], %s4190_s29, %s4190_s29, %s4191_s30  }
   0x6   :  { %4183 = dma.done.wait [#allocation7], 8192  }
   0x7   :  { %4184 = vsyncadd [#allocation7], 4294959104  ;;  %v3928_v0 = vld [vmem:[%s5764_s3 + $0x18] sm:$0xff]  ;;  %v3927_v2 = vld [vmem:[%s5764_s3 + $0x10] sm:$0xff]  ;;  %vm213_vm0 = vcmask 523264   ;;  %v5769_v33 = vmov 0  }
   0x8   :  { %v3936_v1 = vld [vmem:[%s5765_s4 + $0x38] sm:$0xff]  ;;  %221 = vmatpush.bf16.msra.mxu0 %v3928_v0  ;;  %v3935_v3 = vld [vmem:[%s5765_s4 + $0x30] sm:$0xff]  ;;  %v3926_v4 = vld [vmem:[%s5764_s3 + $0x8] sm:$0xff]  ;;  %3969 = vset.pattern.permute.xlu2 %v5769_v33  ;;  %vm1419_vm1 = vcmask 130048   ;;  %vm1945_vm2 = vcmask 130112   ;;  %vm1949_vm3 = vcmask 195712  }
   0x9   :  { %3937 = vmatpush.bf16.msra.mxu1 %v3936_v1  ;;  %3938 = vmatpush.bf16.msra.mxu2 %v3936_v1  ;;  %v3934_v5 = vld [vmem:[%s5765_s4 + $0x28] sm:$0xff]  ;;  %v3925_v6 = vld [vmem:[%s5764_s3] sm:$0xff]  ;;  %v3932_v8 = vld [vmem:[%s5765_s4 + $0x18] sm:$0xff]  ;;  %vm1953_vm4 = vcmask 261312   ;;  %vm1957_vm5 = vcmask 326912   ;;  %vm1961_vm6 = vcmask 392512  }
   0xa   :  { %3939 = vmatpush.bf16.msra.mxu3 %v3936_v1  ;;  %v3933_v7 = vld [vmem:[%s5765_s4 + $0x20] sm:$0xff]  ;;  %v3931_v10 = vld [vmem:[%s5765_s4 + $0x10] sm:$0xff]  ;;  %v3930_v11 = vld [vmem:[%s5765_s4 + $0x8] sm:$0xff]  ;;  %3970 = vset.pattern.permute.xlu1 %v5769_v33  ;;  %vm1965_vm7 = vcmask 458112   ;;  %vm1969_vm8 = vcmask 523712   ;;  %vm1973_vm9 = vcmask 589312  }
   0xb   :  { %v180_v9 = vld [vmem:[%s5761_s0] sm:$0xf]  ;;  %v3876_v13 = vld [vmem:[#allocation6 + $0x78] sm:$0xff]  ;;  %v3861_v16 = vld [vmem:[#allocation6] sm:$0xff]  ;;  %vm1977_vm10 = vcmask 654912   ;;  %vm1981_vm11 = vcmask 720512  }
   0xc   :  { %222 = vmatpush.bf16.msra.mxu0 %v3927_v2  ;;  %v3929_v12 = vld [vmem:[%s5765_s4] sm:$0xff]  ;;  %v3892_v14 = vld [vmem:[#allocation6 + $0xf8] sm:$0xff]  ;;  %v3877_v17 = vld [vmem:[#allocation6 + $0x80] sm:$0xff]  ;;  %vm1985_vm12 = vcmask 786112   ;;  %vm1989_vm13 = vcmask 851712   ;;  %vm1993_vm14 = vcmask 917312  }
   0xd   :  { %3940 = vmatpush.bf16.msra.mxu1 %v3935_v3  ;;  %3941 = vmatpush.bf16.msra.mxu2 %v3935_v3  ;;  %v3908_v15 = vld [vmem:[#allocation6 + $0x178] sm:$0xff]  ;;  %v3893_v18 = vld [vmem:[#allocation6 + $0x100] sm:$0xff]  ;;  %v3862_v20 = vld [vmem:[#allocation6 + $0x8] sm:$0xff]  ;;  %vm1997_vm15 = vcmask 982912   ;;  %s3541_s14 = sshll.u32 %s5768_s7, 4  ;;  %s4196_s15 = smov [#allocation9]   ;;  %s3542_s14 = int_to_ptr.hbm [resolvable:$true] %s3541_s14 }
   0xe   :  { %3942 = vmatpush.bf16.msra.mxu3 %v3935_v3  ;;  %v3909_v19 = vld [vmem:[#allocation6 + $0x180] sm:$0xff]  ;;  %v3878_v21 = vld [vmem:[#allocation6 + $0x88] sm:$0xff]  ;;  %v3863_v24 = vld [vmem:[#allocation6 + $0x10] sm:$0xff]  ;;  %s3528_s16 = sshll.u32 %s4196_s15, 4  ;;  %s3530_s19 = sshll.u32 %s5767_s6, 4  ;;  %s3529_s16 = int_to_ptr.vmem [resolvable:$true] %s3528_s16  ;;  %s3531_s19 = int_to_ptr.hbm [resolvable:$true] %s3530_s19 }
   0xf   :  { %v3894_v22 = vld [vmem:[#allocation6 + $0x108] sm:$0xff]  ;;  %v3879_v25 = vld [vmem:[#allocation6 + $0x90] sm:$0xff]  ;;  %v3864_v28 = vld [vmem:[#allocation6 + $0x18] sm:$0xff] }
  0x10   :  { %223 = vmatpush.bf16.msra.mxu0 %v3926_v4  ;;  %v3910_v23 = vld [vmem:[#allocation6 + $0x188] sm:$0xff]  ;;  %v3895_v26 = vld [vmem:[#allocation6 + $0x110] sm:$0xff]  ;;  %v3880_v29 = vld [vmem:[#allocation6 + $0x98] sm:$0xff] }
  0x11   :  { %3943 = vmatpush.bf16.msra.mxu1 %v3934_v5  ;;  %3944 = vmatpush.bf16.msra.mxu2 %v3934_v5  ;;  %v3911_v27 = vld [vmem:[#allocation6 + $0x190] sm:$0xff]  ;;  %v3896_v30 = vld [vmem:[#allocation6 + $0x118] sm:$0xff]  ;;  %v3865_v34 = vld [vmem:[#allocation6 + $0x20] sm:$0xff] }
  0x12   :  { %3945 = vmatpush.bf16.msra.mxu3 %v3934_v5  ;;  %v3912_v31 = vld [vmem:[#allocation6 + $0x198] sm:$0xff]  ;;  %v1804_v32 = vld [vmem:[%s5763_s2] sm:$0xff]  ;;  %v3881_v35 = vld [vmem:[#allocation6 + $0xa0] sm:$0xff] }
  0x13   :  { %1811 = vperm.xlu2 %3969, %v1804_v32   ;;  %v3897_v36 = vld [vmem:[#allocation6 + $0x120] sm:$0xff]  ;;  %v3866_v38 = vld [vmem:[#allocation6 + $0x28] sm:$0xff]  ;;  %v3867_v42 = vld [vmem:[#allocation6 + $0x30] sm:$0xff] }
  0x14   :  { %224 = vmatpush.bf16.msra.mxu0 %v3925_v6  ;;  %v3913_v37 = vld [vmem:[#allocation6 + $0x1a0] sm:$0xff]  ;;  %v3882_v39 = vld [vmem:[#allocation6 + $0xa8] sm:$0xff]  ;;  %v3883_v43 = vld [vmem:[#allocation6 + $0xb0] sm:$0xff] }
  0x15   :  { %3946 = vmatpush.bf16.msra.mxu1 %v3933_v7  ;;  %3947 = vmatpush.bf16.msra.mxu2 %v3933_v7  ;;  %v3898_v40 = vld [vmem:[#allocation6 + $0x128] sm:$0xff]  ;;  %v3899_v44 = vld [vmem:[#allocation6 + $0x130] sm:$0xff]  ;;  %v3868_v48 = vld [vmem:[#allocation6 + $0x38] sm:$0xff] }
  0x16   :  { %3948 = vmatpush.bf16.msra.mxu3 %v3933_v7  ;;  %v3914_v41 = vld [vmem:[#allocation6 + $0x1a8] sm:$0xff]  ;;  %v3915_v45 = vld [vmem:[#allocation6 + $0x1b0] sm:$0xff]  ;;  %v3884_v49 = vld [vmem:[#allocation6 + $0xb8] sm:$0xff] }
  0x17   :  { %3572 = vmatmul.msk.bf16.vlgmr.msra.gmra.mxu0 %vm213_vm0, %v180_v9  ;;  %v3900_v51 = vld [vmem:[#allocation6 + $0x138] sm:$0xff]  ;;  %vm2001_vm0 = vcmask 1048512  }
  0x18   :  { %678 = vmatpush.bf16.msrb.mxu0 %v3936_v1  ;;  %v3916_v52 = vld [vmem:[#allocation6 + $0x1b8] sm:$0xff] }
  0x19   :  { %3949 = vmatpush.bf16.msra.mxu1 %v3932_v8  ;;  %3950 = vmatpush.bf16.msra.mxu2 %v3932_v8 }
  0x1a   :  { %3951 = vmatpush.bf16.msra.mxu3 %v3932_v8 }
  0x1c   :  { %679 = vmatpush.bf16.msrb.mxu0 %v3935_v3  ;;  %v4301_v3 = vld [vmem:[%s5766_s5] ss:$0 sm:$0xff] }
  0x1d   :  { %3952 = vmatpush.bf16.msra.mxu1 %v3931_v10  ;;  %3953 = vmatpush.bf16.msra.mxu2 %v3931_v10 }
  0x1e   :  { %3954 = vmatpush.bf16.msra.mxu3 %v3931_v10 }
  0x20   :  { %680 = vmatpush.bf16.msrb.mxu0 %v3934_v5 }
  0x21   :  { %3955 = vmatpush.bf16.msra.mxu1 %v3930_v11  ;;  %3956 = vmatpush.bf16.msra.mxu2 %v3930_v11 }
  0x22   :  { %3957 = vmatpush.bf16.msra.mxu3 %v3930_v11 }
  0x24   :  { %681 = vmatpush.bf16.msrb.mxu0 %v3933_v7 }
  0x25   :  { %3958 = vmatpush.bf16.msra.mxu1 %v3929_v12  ;;  %3959 = vmatpush.bf16.msra.mxu2 %v3929_v12 }
  0x26   :  { %3960 = vmatpush.bf16.msra.mxu3 %v3929_v12 }
  0x28   :  { %682 = vmatpush.bf16.msrb.mxu0 %v3932_v8  ;;  %761 = vmatmul.bf16.vlgmr.msra.gmra.mxu1 %v3876_v13  ;;  %v3869_v8 = vld [vmem:[#allocation6 + $0x40] sm:$0xff] }
  0x29   :  { %841 = vmatmul.bf16.vlgmr.msra.gmra.mxu2 %v3892_v14  ;;  %921 = vmatmul.bf16.vlgmr.msra.gmra.mxu3 %v3908_v15 }
  0x2c   :  { %683 = vmatpush.bf16.msrb.mxu0 %v3931_v10 }
  0x30   :  { %684 = vmatpush.bf16.msrb.mxu0 %v3930_v11 }
  0x34   :  { %685 = vmatpush.bf16.msrb.mxu0 %v3929_v12 }
  0x37   :  { %686 = vmatmul.bf16.vlgmr.msrb.gmra.mxu0 %v3861_v16  ;;  %v3885_v16 = vld [vmem:[#allocation6 + $0xc0] sm:$0xff] }
  0x38   :  { %766 = vmatmul.bf16.gmra.mxu1 %v3877_v17 }
  0x39   :  { %846 = vmatmul.bf16.gmra.mxu2 %v3893_v18  ;;  %926 = vmatmul.bf16.gmra.mxu3 %v3909_v19 }
  0x47   :  { %691 = vmatmul.bf16.gmra.mxu0 %v3862_v20  ;;  %v3901_v20 = vld [vmem:[#allocation6 + $0x140] sm:$0xff] }
  0x48   :  { %771 = vmatmul.bf16.gmra.mxu1 %v3878_v21  ;;  %v3917_v21 = vld [vmem:[#allocation6 + $0x1c0] sm:$0xff] }
  0x49   :  { %851 = vmatmul.bf16.gmra.mxu2 %v3894_v22  ;;  %931 = vmatmul.bf16.gmra.mxu3 %v3910_v23 }
  0x57   :  { %696 = vmatmul.bf16.gmra.mxu0 %v3863_v24 }
  0x58   :  { %776 = vmatmul.bf16.gmra.mxu1 %v3879_v25 }
  0x59   :  { %856 = vmatmul.bf16.gmra.mxu2 %v3895_v26  ;;  %936 = vmatmul.bf16.gmra.mxu3 %v3911_v27 }
  0x67   :  { %701 = vmatmul.bf16.gmra.mxu0 %v3864_v28 }
  0x68   :  { %781 = vmatmul.bf16.gmra.mxu1 %v3880_v29 }
  0x69   :  { %861 = vmatmul.bf16.gmra.mxu2 %v3896_v30  ;;  %941 = vmatmul.bf16.gmra.mxu3 %v3912_v31 }
  0x77   :  { %706 = vmatmul.bf16.gmra.mxu0 %v3865_v34 }
  0x78   :  { %786 = vmatmul.bf16.gmra.mxu1 %v3881_v35 }
  0x79   :  { %866 = vmatmul.bf16.gmra.mxu2 %v3897_v36  ;;  %946 = vmatmul.bf16.gmra.mxu3 %v3913_v37 }
  0x87   :  { %711 = vmatmul.bf16.gmra.mxu0 %v3866_v38 }
  0x88   :  { %791 = vmatmul.bf16.gmra.mxu1 %v3882_v39 }
  0x89   :  { %871 = vmatmul.bf16.gmra.mxu2 %v3898_v40  ;;  %951 = vmatmul.bf16.gmra.mxu3 %v3914_v41 }
  0x94   :  { %v4284_v46 = vpop.f32.mrf.mxu0 }
  0x95   :  { %v1010_v53 = vrot.slane %v4284_v46, 3  ;;  %v1012_v54 = vrot.slane %v4284_v46, 5  ;;  %v1008_v55 = vrot.slane %v4284_v46, 1  ;;  %v1009_v4 = vrot.slane %v4284_v46, 2 }
  0x96   :  { %v4307_v7 = vperm.slane %v4284_v46, 0  ;;  %v1011_v39 = vrot.slane %v4284_v46, 4 }
  0x97   :  { %716 = vmatmul.bf16.gmra.mxu0 %v3867_v42  ;;  %v4289_v56 = vperm.slane %v1010_v53, 0  ;;  %v4291_v57 = vperm.slane %v1012_v54, 0  ;;  %v4293_v60 = vperm.slane %v1008_v55, 0  ;;  %v4312_v17 = vperm.slane %v1009_v4, 0  ;;  %v3902_v53 = vld [vmem:[#allocation6 + $0x148] sm:$0xff] }
  0x98   :  { %796 = vmatmul.bf16.gmra.mxu1 %v3883_v43  ;;  %v3918_v54 = vld [vmem:[#allocation6 + $0x1c8] sm:$0xff] }
  0x99   :  { %876 = vmatmul.bf16.gmra.mxu2 %v3899_v44  ;;  %956 = vmatmul.bf16.gmra.mxu3 %v3915_v45  ;;  %v3870_v44 = vld [vmem:[#allocation6 + $0x48] sm:$0xff]  ;;  %v4328_v45 = vperm.slane %v1011_v39, 0 }
  0x9c   :  { %v228_v47 = vpop.f32.mrf.mxu0 }
  0xa5   :  { %v762_v50 = vpop.f32.mrf.mxu1 }
  0xa6   :  { %v1061_v22 = vadd.f32 %v4293_v60, %v762_v50 }
  0xa7   :  { %721 = vmatmul.bf16.gmra.mxu0 %v3868_v48 }
  0xa8   :  { %801 = vmatmul.bf16.gmra.mxu1 %v3884_v49  ;;  %v1189_v29 = vmax.f32 %v1061_v22, 0.0  ;;  %v3871_v22 = vld [vmem:[#allocation6 + $0x50] sm:$0xff] }
  0xa9   :  { %881 = vmatmul.bf16.gmra.mxu2 %v3900_v51  ;;  %961 = vmatmul.bf16.gmra.mxu3 %v3916_v52  ;;  %v3886_v51 = vld [vmem:[#allocation6 + $0xc8] sm:$0xff] }
  0xaa   :  { %v1321_v38 = vmul.f32 %v4301_v3, %v1189_v29  ;;  %v3919_v29 = vld [vmem:[#allocation6 + $0x1d0] sm:$0xff] }
  0xac   :  { %v842_v58 = vpop.f32.mrf.mxu2  ;;  %v922_v59 = vpop.f32.mrf.mxu3  ;;  %v1510_v43 = vsel %vm1419_vm1, %v1321_v38, 0.0 }
  0xad   :  { %v1093_v61 = vadd.f32 %v4289_v56, %v842_v58  ;;  %v1125_v62 = vadd.f32 %v4291_v57, %v922_v59  ;;  %v764_v63 = vpop.f32.mrf.mxu1 }
  0xae   :  { %v1062_v2 = vadd.f32 %v4293_v60, %v764_v63  ;;  %v1013_v63 = vrot.slane %v4284_v46, 6 }
  0xaf   :  { %v1221_v0 = vmax.f32 %v1093_v61, 0.0  ;;  %v1253_v1 = vmax.f32 %v1125_v62, 0.0 }
  0xb0   :  { %v1190_v9 = vmax.f32 %v1062_v2, 0.0 }
  0xb1   :  { %v1385_v5 = vmul.f32 %v4301_v3, %v1253_v1  ;;  %v1353_v6 = vmul.f32 %v4301_v3, %v1221_v0 }
  0xb2   :  { %v1322_v26 = vmul.f32 %v4301_v3, %v1190_v9 }
  0xb3   :  { %v1702_v11 = vsel %vm1419_vm1, %v1385_v5, 0.0  ;;  %v1606_v12 = vsel %vm1419_vm1, %v1353_v6, 0.0 }
  0xb4   :  { %v687_v10 = vpop.f32.mrf.mxu0  ;;  %1703 = vadd.xlane.f32.xlu1 %v1702_v11  ;;  %v924_v14 = vpop.f32.mrf.mxu3  ;;  %1607 = vadd.xlane.f32.xlu2 %v1606_v12  ;;  %v1513_v35 = vsel %vm1419_vm1, %v1322_v26, 0.0  ;;  %v4342_v11 = vperm.slane %v1013_v63, 0  ;;  %v3887_v26 = vld [vmem:[#allocation6 + $0xd0] sm:$0xff]  ;;  %v3872_v63 = vld [vmem:[#allocation6 + $0x58] sm:$0xff] }
  0xb5   :  { %v1031_v13 = vadd.f32 %v4307_v7, %v687_v10  ;;  %v844_v15 = vpop.f32.mrf.mxu2  ;;  %v1126_v18 = vadd.f32 %v4291_v57, %v924_v14  ;;  %v767_v19 = vpop.f32.mrf.mxu1 }
  0xb6   :  { %v1063_v25 = vadd.f32 %v4312_v17, %v767_v19  ;;  %v1094_v55 = vadd.f32 %v4289_v56, %v844_v15 }
  0xb7   :  { %v1159_v23 = vmax.f32 %v1031_v13, 0.0  ;;  %726 = vmatmul.bf16.gmra.mxu0 %v3869_v8  ;;  %v1254_v24 = vmax.f32 %v1126_v18, 0.0 }
  0xb8   :  { %806 = vmatmul.bf16.gmra.mxu1 %v3885_v16  ;;  %v1191_v31 = vmax.f32 %v1063_v25, 0.0  ;;  %v1222_v2 = vmax.f32 %v1094_v55, 0.0 }
  0xb9   :  { %v1291_v27 = vmul.f32 %v4301_v3, %v1159_v23  ;;  %886 = vmatmul.bf16.gmra.mxu2 %v3901_v20  ;;  %966 = vmatmul.bf16.gmra.mxu3 %v3917_v21  ;;  %v1386_v28 = vmul.f32 %v4301_v3, %v1254_v24 }
  0xba   :  { %v1323_v40 = vmul.f32 %v4301_v3, %v1191_v31  ;;  %v1354_v14 = vmul.f32 %v4301_v3, %v1222_v2 }
  0xbb   :  { %v1420_v30 = vsel %vm1419_vm1, %v1291_v27, 0.0  ;;  %v1705_v34 = vsel %vm1419_vm1, %v1386_v28, 0.0  ;;  %v3903_v28 = vld [vmem:[#allocation6 + $0x150] sm:$0xff] }
  0xbc   :  { %1421 = vadd.xlane.f32.xlu0 %v1420_v30  ;;  %v689_v32 = vpop.f32.mrf.mxu0  ;;  %1706 = vadd.xlane.f32.xlu2 %v1705_v34  ;;  %v927_v41 = vpop.f32.mrf.mxu3  ;;  %v1516_v48 = vsel %vm1419_vm1, %v1323_v40, 0.0  ;;  %v1609_v20 = vsel %vm1419_vm1, %v1354_v14, 0.0 }
  0xbd   :  { %v847_v36 = vpop.f32.mrf.mxu2  ;;  %1514 = vadd.xlane.f32.xlu1 %v1513_v35  ;;  %v1032_v37 = vadd.f32 %v4307_v7, %v689_v32  ;;  %v1127_v12 = vadd.f32 %v4342_v11, %v927_v41  ;;  %v769_v16 = vpop.f32.mrf.mxu1 }
  0xbe   :  { %v1095_v58 = vadd.f32 %v4328_v45, %v847_v36  ;;  %v1064_v27 = vadd.f32 %v4312_v17, %v769_v16 }
  0xbf   :  { %v1160_v42 = vmax.f32 %v1032_v37, 0.0  ;;  %v1255_v18 = vmax.f32 %v1127_v12, 0.0 }
  0xc0   :  { %v1223_v4 = vmax.f32 %v1095_v58, 0.0  ;;  %v1192_v38 = vmax.f32 %v1064_v27, 0.0 }
  0xc1   :  { %v1292_v61 = vmul.f32 %v4301_v3, %v1160_v42  ;;  %v1387_v32 = vmul.f32 %v4301_v3, %v1255_v18 }
  0xc2   :  { %v1355_v15 = vmul.f32 %v4301_v3, %v1223_v4  ;;  %v3888_v4 = vld [vmem:[#allocation6 + $0xd8] sm:$0xff] }
  0xc3   :  { %v1423_v6 = vsel %vm1419_vm1, %v1292_v61, 0.0  ;;  %v1708_v41 = vsel %vm1419_vm1, %v1387_v32, 0.0 }
  0xc4   :  { %1511 = vadd.xlane.f32.xlu0 %v1510_v43  ;;  %v692_v47 = vpop.f32.mrf.mxu0  ;;  %1517 = vadd.xlane.f32.xlu2 %v1516_v48  ;;  %v929_v5 = vpop.f32.mrf.mxu3  ;;  %v1612_v21 = vsel %vm1419_vm1, %v1355_v15, 0.0 }
  0xc5   :  { %v1033_v49 = vadd.f32 %v4307_v7, %v692_v47  ;;  %v849_v50 = vpop.f32.mrf.mxu2  ;;  %v1128_v30 = vadd.f32 %v4342_v11, %v929_v5  ;;  %v772_v40 = vpop.f32.mrf.mxu1  ;;  %v3904_v5 = vld [vmem:[#allocation6 + $0x158] sm:$0xff] }
  0xc6   :  { %v1096_v52 = vadd.f32 %v4328_v45, %v849_v50  ;;  %v1065_v48 = vadd.f32 %v4312_v17, %v772_v40  ;;  %v1324_v50 = vmul.f32 %v4301_v3, %v1192_v38  ;;  %v3873_v38 = vld [vmem:[#allocation6 + $0x60] sm:$0xff] }
  0xc7   :  { %v1161_v59 = vmax.f32 %v1033_v49, 0.0  ;;  %731 = vmatmul.bf16.gmra.mxu0 %v3870_v44  ;;  %v1256_v39 = vmax.f32 %v1128_v30, 0.0 }
  0xc8   :  { %v1224_v62 = vmax.f32 %v1096_v52, 0.0  ;;  %811 = vmatmul.bf16.gmra.mxu1 %v3886_v51  ;;  %v1193_v55 = vmax.f32 %v1065_v48, 0.0  ;;  %v1519_v61 = vsel %vm1419_vm1, %v1324_v50, 0.0 }
  0xc9   :  { %v1293_v0 = vmul.f32 %v4301_v3, %v1161_v59  ;;  %891 = vmatmul.bf16.gmra.mxu2 %v3902_v53  ;;  %971 = vmatmul.bf16.gmra.mxu3 %v3918_v54  ;;  %v1388_v51 = vmul.f32 %v4301_v3, %v1256_v39 }
  0xca   :  { %v1356_v1 = vmul.f32 %v4301_v3, %v1224_v62  ;;  %v1325_v12 = vmul.f32 %v4301_v3, %v1193_v55 }
  0xcb   :  { %v1426_v8 = vsel %vm1419_vm1, %v1293_v0, 0.0  ;;  %v1711_v62 = vsel %vm1419_vm1, %v1388_v51, 0.0 }
  0xcc   :  { %1424 = vadd.xlane.f32.xlu0 %v1423_v6  ;;  %1427 = vadd.xlane.f32.xlu1 %v1426_v8  ;;  %v694_v9 = vpop.f32.mrf.mxu0  ;;  %v1615_v10 = vsel %vm1419_vm1, %v1356_v1, 0.0  ;;  %v932_v24 = vpop.f32.mrf.mxu3  ;;  %v3920_v6 = vld [vmem:[#allocation6 + $0x1d8] sm:$0xff] }
  0xcd   :  { %1616 = vadd.xlane.f32.xlu2 %v1615_v10  ;;  %v1034_v13 = vadd.f32 %v4307_v7, %v694_v9  ;;  %v1129_v35 = vadd.f32 %v4342_v11, %v932_v24  ;;  %v852_v36 = vpop.f32.mrf.mxu2  ;;  %v774_v2 = vpop.f32.mrf.mxu1 }
  0xce   :  { %v1097_v49 = vadd.f32 %v4328_v45, %v852_v36 }
  0xcf   :  { %v1162_v19 = vmax.f32 %v1034_v13, 0.0  ;;  %v1257_v44 = vmax.f32 %v1129_v35, 0.0  ;;  %v1066_v13 = vadd.f32 %v4312_v17, %v774_v2 }
  0xd0   :  { %v1225_v58 = vmax.f32 %v1097_v49, 0.0 }
  0xd1   :  { %v1294_v34 = vmul.f32 %v4301_v3, %v1162_v19  ;;  %v1389_v53 = vmul.f32 %v4301_v3, %v1257_v44  ;;  %v3921_v44 = vld [vmem:[#allocation6 + $0x1e0] sm:$0xff] }
  0xd2   :  { %v1357_v10 = vmul.f32 %v4301_v3, %v1225_v58 }
  0xd3   :  { %v1429_v42 = vsel %vm1419_vm1, %v1294_v34, 0.0  ;;  %v1714_v1 = vsel %vm1419_vm1, %v1389_v53, 0.0 }
  0xd4   :  { %1610 = vadd.xlane.f32.xlu0 %v1609_v20  ;;  %1613 = vadd.xlane.f32.xlu1 %v1612_v21  ;;  %v697_v23 = vpop.f32.mrf.mxu0  ;;  %v934_v54 = vpop.f32.mrf.mxu3  ;;  %v1618_v20 = vsel %vm1419_vm1, %v1357_v10, 0.0  ;;  %v1522_v21 = vsel %vm1419_vm1, %v1325_v12, 0.0 }
  0xd5   :  { %v1035_v25 = vadd.f32 %v4307_v7, %v697_v23  ;;  %v854_v59 = vpop.f32.mrf.mxu2  ;;  %v1130_v9 = vadd.f32 %v4342_v11, %v934_v54 }
  0xd6   :  { %v1098_v8 = vadd.f32 %v4328_v45, %v854_v59 }
  0xd7   :  { %v1163_v31 = vmax.f32 %v1035_v25, 0.0  ;;  %736 = vmatmul.bf16.gmra.mxu0 %v3871_v22  ;;  %v1258_v18 = vmax.f32 %v1130_v9, 0.0  ;;  %v1194_v22 = vmax.f32 %v1066_v13, 0.0 }
  0xd8   :  { %816 = vmatmul.bf16.gmra.mxu1 %v3887_v26  ;;  %v1226_v16 = vmax.f32 %v1098_v8, 0.0 }
  0xd9   :  { %v1295_v37 = vmul.f32 %v4301_v3, %v1163_v31  ;;  %896 = vmatmul.bf16.gmra.mxu2 %v3903_v28  ;;  %976 = vmatmul.bf16.gmra.mxu3 %v3919_v29  ;;  %v1390_v27 = vmul.f32 %v4301_v3, %v1258_v18  ;;  %v1326_v30 = vmul.f32 %v4301_v3, %v1194_v22  ;;  %v777_v31 = vpop.f32.mrf.mxu1  ;;  %v3906_v22 = vld [vmem:[#allocation6 + $0x168] sm:$0xff] }
  0xda   :  { %v1358_v28 = vmul.f32 %v4301_v3, %v1226_v16  ;;  %v3874_v16 = vld [vmem:[#allocation6 + $0x68] sm:$0xff] }
  0xdb   :  { %v1432_v43 = vsel %vm1419_vm1, %v1295_v37, 0.0  ;;  %v1717_v36 = vsel %vm1419_vm1, %v1390_v27, 0.0  ;;  %v1525_v40 = vsel %vm1419_vm1, %v1326_v30, 0.0 }
  0xdc   :  { %1709 = vadd.xlane.f32.xlu0 %v1708_v41  ;;  %1430 = vadd.xlane.f32.xlu1 %v1429_v42  ;;  %v699_v47 = vpop.f32.mrf.mxu0  ;;  %v937_v19 = vpop.f32.mrf.mxu3  ;;  %v1621_v37 = vsel %vm1419_vm1, %v1358_v28, 0.0  ;;  %v3889_v42 = vld [vmem:[#allocation6 + $0xe0] sm:$0xff] }
  0xdd   :  { %1433 = vadd.xlane.f32.xlu2 %v1432_v43  ;;  %v1036_v52 = vadd.f32 %v4307_v7, %v699_v47  ;;  %v857_v24 = vpop.f32.mrf.mxu2  ;;  %v1131_v25 = vadd.f32 %v4342_v11, %v937_v19  ;;  %v3905_v43 = vld [vmem:[#allocation6 + $0x160] sm:$0xff]  ;;  %v1067_v47 = vadd.f32 %v4312_v17, %v777_v31 }
  0xde   :  { %v1099_v29 = vadd.f32 %v4328_v45, %v857_v24 }
  0xdf   :  { %v1164_v0 = vmax.f32 %v1036_v52, 0.0  ;;  %v1259_v32 = vmax.f32 %v1131_v25, 0.0  ;;  %v1195_v54 = vmax.f32 %v1067_v47, 0.0 }
  0xe0   :  { %v1227_v39 = vmax.f32 %v1099_v29, 0.0 }
  0xe1   :  { %v1296_v14 = vmul.f32 %v4301_v3, %v1164_v0  ;;  %v1391_v49 = vmul.f32 %v4301_v3, %v1259_v32  ;;  %v779_v55 = vpop.f32.mrf.mxu1 }
  0xe2   :  { %v1359_v52 = vmul.f32 %v4301_v3, %v1227_v39 }
  0xe3   :  { %v1435_v23 = vsel %vm1419_vm1, %v1296_v14, 0.0  ;;  %v1720_v59 = vsel %vm1419_vm1, %v1391_v49, 0.0 }
  0xe4   :  { %1520 = vadd.xlane.f32.xlu0 %v1519_v61  ;;  %1712 = vadd.xlane.f32.xlu1 %v1711_v62  ;;  %v702_v15 = vpop.f32.mrf.mxu0  ;;  %v939_v41 = vpop.f32.mrf.mxu3 }
  0xe5   :  { %1715 = vadd.xlane.f32.xlu2 %v1714_v1  ;;  %v1037_v26 = vadd.f32 %v4307_v7, %v702_v15  ;;  %v1132_v51 = vadd.f32 %v4342_v11, %v939_v41  ;;  %v859_v53 = vpop.f32.mrf.mxu2  ;;  %v1068_v1 = vadd.f32 %v4312_v17, %v779_v55 }
  0xe6   :  { %v1100_v2 = vadd.f32 %v4328_v45, %v859_v53 }
  0xe7   :  { %741 = vmatmul.bf16.gmra.mxu0 %v3872_v63  ;;  %v1165_v34 = vmax.f32 %v1037_v26, 0.0  ;;  %v1260_v62 = vmax.f32 %v1132_v51, 0.0  ;;  %v1624_v63 = vsel %vm1419_vm1, %v1359_v52, 0.0  ;;  %v1196_v10 = vmax.f32 %v1068_v1, 0.0 }
  0xe8   :  { %821 = vmatmul.bf16.gmra.mxu1 %v3888_v4  ;;  %v1327_v4 = vmul.f32 %v4301_v3, %v1195_v54  ;;  %v1228_v12 = vmax.f32 %v1100_v2, 0.0  ;;  %v3875_v54 = vld [vmem:[#allocation6 + $0x70] sm:$0xff] }
  0xe9   :  { %901 = vmatmul.bf16.gmra.mxu2 %v3904_v5  ;;  %981 = vmatmul.bf16.gmra.mxu3 %v3920_v6  ;;  %v1297_v50 = vmul.f32 %v4301_v3, %v1165_v34  ;;  %v1392_v8 = vmul.f32 %v4301_v3, %v1260_v62  ;;  %v1328_v27 = vmul.f32 %v4301_v3, %v1196_v10  ;;  %v3907_v62 = vld [vmem:[#allocation6 + $0x170] sm:$0xff] }
  0xea   :  { %v1528_v14 = vsel %vm1419_vm1, %v1327_v4, 0.0  ;;  %v1360_v26 = vmul.f32 %v4301_v3, %v1228_v12 }
  0xeb   :  { %v1438_v61 = vsel %vm1419_vm1, %v1297_v50, 0.0  ;;  %v1723_v19 = vsel %vm1419_vm1, %v1392_v8, 0.0 }
  0xec   :  { %1619 = vadd.xlane.f32.xlu0 %v1618_v20  ;;  %1523 = vadd.xlane.f32.xlu1 %v1522_v21  ;;  %v704_v35 = vpop.f32.mrf.mxu0  ;;  %v942_v9 = vpop.f32.mrf.mxu3  ;;  %v3890_v21 = vld [vmem:[#allocation6 + $0xe8] sm:$0xff] }
  0xed   :  { %1436 = vadd.xlane.f32.xlu2 %v1435_v23  ;;  %v1038_v48 = vadd.f32 %v4307_v7, %v704_v35  ;;  %v862_v13 = vpop.f32.mrf.mxu2  ;;  %v782_v20 = vpop.f32.mrf.mxu1  ;;  %v3922_v23 = vld [vmem:[#allocation6 + $0x1e8] sm:$0xff]  ;;  %v1133_v25 = vadd.f32 %v4342_v11, %v942_v9  ;;  %v1627_v35 = vsel %vm1419_vm1, %v1360_v26, 0.0 }
  0xee   :  { %v1101_v24 = vadd.f32 %v4328_v45, %v862_v13  ;;  %v1069_v28 = vadd.f32 %v4312_v17, %v782_v20  ;;  %v4438_v26 = vpop.permute.xlu2 %1811 }
  0xef   :  { %v1166_v58 = vmax.f32 %v1038_v48, 0.0  ;;  %v1261_v32 = vmax.f32 %v1133_v25, 0.0  ;;  %5778 = vst [vmem:[#allocation15_spill] sm:$0xff] %v4438_v26 }
  0xf0   :  { %v1229_v31 = vmax.f32 %v1101_v24, 0.0 }
  0xf1   :  { %v1298_v5 = vmul.f32 %v4301_v3, %v1166_v58 }
  0xf3   :  { %v1441_v15 = vsel %vm1419_vm1, %v1298_v5, 0.0 }
  0xf4   :  { %1718 = vadd.xlane.f32.xlu0 %v1717_v36  ;;  %1622 = vadd.xlane.f32.xlu1 %v1621_v37  ;;  %v707_v0 = vpop.f32.mrf.mxu0  ;;  %v944_v34 = vpop.f32.mrf.mxu3  ;;  %v1531_v36 = vsel %vm1419_vm1, %v1328_v27, 0.0  ;;  %v1197_v37 = vmax.f32 %v1069_v28, 0.0 }
  0xf5   :  { %1526 = vadd.xlane.f32.xlu2 %v1525_v40  ;;  %v1039_v6 = vadd.f32 %v4307_v7, %v707_v0  ;;  %v864_v39 = vpop.f32.mrf.mxu2  ;;  %v1134_v40 = vadd.f32 %v4342_v11, %v944_v34  ;;  %v784_v48 = vpop.f32.mrf.mxu1 }
  0xf6   :  { %v1329_v47 = vmul.f32 %v4301_v3, %v1197_v37  ;;  %v1070_v0 = vadd.f32 %v4312_v17, %v784_v48 }
  0xf7   :  { %746 = vmatmul.bf16.gmra.mxu0 %v3873_v38  ;;  %v1167_v18 = vmax.f32 %v1039_v6, 0.0  ;;  %v1262_v49 = vmax.f32 %v1134_v40, 0.0 }
  0xf8   :  { %826 = vmatmul.bf16.gmra.mxu1 %v3889_v42  ;;  %v1393_v42 = vmul.f32 %v4301_v3, %v1261_v32  ;;  %v1534_v58 = vsel %vm1419_vm1, %v1329_v47, 0.0  ;;  %v1198_v9 = vmax.f32 %v1070_v0, 0.0 }
  0xf9   :  { %906 = vmatmul.bf16.gmra.mxu2 %v3905_v43  ;;  %986 = vmatmul.bf16.gmra.mxu3 %v3921_v44  ;;  %v1299_v29 = vmul.f32 %v4301_v3, %v1167_v18  ;;  %v1361_v43 = vmul.f32 %v4301_v3, %v1229_v31  ;;  %v1102_v44 = vadd.f32 %v4328_v45, %v864_v39 }
  0xfa   :  { %v1726_v52 = vsel %vm1419_vm1, %v1393_v42, 0.0  ;;  %v1394_v2 = vmul.f32 %v4301_v3, %v1262_v49 }
  0xfb   :  { %v1444_v38 = vsel %vm1419_vm1, %v1299_v29, 0.0  ;;  %v1630_v53 = vsel %vm1419_vm1, %v1361_v43, 0.0  ;;  %v1230_v55 = vmax.f32 %v1102_v44, 0.0 }
  0xfc   :  { %1721 = vadd.xlane.f32.xlu1 %v1720_v59  ;;  %1439 = vadd.xlane.f32.xlu0 %v1438_v61  ;;  %v709_v30 = vpop.f32.mrf.mxu0  ;;  %v947_v59 = vpop.f32.mrf.mxu3  ;;  %v3891_v61 = vld [vmem:[#allocation6 + $0xf0] sm:$0xff]  ;;  %v1729_v13 = vsel %vm1419_vm1, %v1394_v2, 0.0 }
  0xfd   :  { %1625 = vadd.xlane.f32.xlu2 %v1624_v63  ;;  %v1040_v41 = vadd.f32 %v4307_v7, %v709_v30  ;;  %v3923_v63 = vld [vmem:[#allocation6 + $0x1f0] sm:$0xff]  ;;  %v1135_v5 = vadd.f32 %v4342_v11, %v947_v59  ;;  %v1362_v6 = vmul.f32 %v4301_v3, %v1230_v55  ;;  %v867_v8 = vpop.f32.mrf.mxu2  ;;  %v787_v10 = vpop.f32.mrf.mxu1 }
  0xfe   :  { %v1103_v20 = vadd.f32 %v4328_v45, %v867_v8 }
  0xff   :  { %v1168_v50 = vmax.f32 %v1040_v41, 0.0 }
 0x100   :  { %v1231_v28 = vmax.f32 %v1103_v20, 0.0 }
 0x101   :  { %v1300_v4 = vmul.f32 %v4301_v3, %v1168_v50 }
 0x102   :  { %v1363_v39 = vmul.f32 %v4301_v3, %v1231_v28 }
 0x104   :  { %1529 = vadd.xlane.f32.xlu0 %v1528_v14  ;;  %1442 = vadd.xlane.f32.xlu1 %v1441_v15  ;;  %v712_v51 = vpop.f32.mrf.mxu0  ;;  %v1447_v14 = vsel %vm1419_vm1, %v1300_v4, 0.0  ;;  %v1263_v15 = vmax.f32 %v1135_v5, 0.0  ;;  %v1636_v50 = vsel %vm1419_vm1, %v1363_v39, 0.0 }
 0x105   :  { %1724 = vadd.xlane.f32.xlu2 %v1723_v19  ;;  %v1041_v1 = vadd.f32 %v4307_v7, %v712_v51  ;;  %v1071_v19 = vadd.f32 %v4312_v17, %v787_v10  ;;  %v869_v29 = vpop.f32.mrf.mxu2 }
 0x106   :  { %v1395_v25 = vmul.f32 %v4301_v3, %v1263_v15  ;;  %v1104_v37 = vadd.f32 %v4328_v45, %v869_v29 }
 0x107   :  { %751 = vmatmul.bf16.gmra.mxu0 %v3874_v16  ;;  %v1169_v12 = vmax.f32 %v1041_v1, 0.0  ;;  %v1633_v16 = vsel %vm1419_vm1, %v1362_v6, 0.0  ;;  %v1199_v27 = vmax.f32 %v1071_v19, 0.0 }
 0x108   :  { %831 = vmatmul.bf16.gmra.mxu1 %v3890_v21  ;;  %v1330_v21 = vmul.f32 %v4301_v3, %v1198_v9  ;;  %v1732_v34 = vsel %vm1419_vm1, %v1395_v25, 0.0  ;;  %v1232_v48 = vmax.f32 %v1104_v37, 0.0 }
 0x109   :  { %911 = vmatmul.bf16.gmra.mxu2 %v3906_v22  ;;  %991 = vmatmul.bf16.gmra.mxu3 %v3922_v23  ;;  %v1301_v22 = vmul.f32 %v4301_v3, %v1169_v12  ;;  %v949_v23 = vpop.f32.mrf.mxu3  ;;  %v1331_v40 = vmul.f32 %v4301_v3, %v1199_v27 }
 0x10a   :  { %v1537_v30 = vsel %vm1419_vm1, %v1330_v21, 0.0 }
 0x10b   :  { %v1450_v31 = vsel %vm1419_vm1, %v1301_v22, 0.0  ;;  %v1540_v51 = vsel %vm1419_vm1, %v1331_v40, 0.0 }
 0x10c   :  { %1628 = vadd.xlane.f32.xlu0 %v1627_v35  ;;  %1532 = vadd.xlane.f32.xlu1 %v1531_v36  ;;  %v714_v18 = vpop.f32.mrf.mxu0  ;;  %v789_v35 = vpop.f32.mrf.mxu1  ;;  %v3924_v36 = vld [vmem:[#allocation6 + $0x1f8] sm:$0xff] }
 0x10d   :  { %1445 = vadd.xlane.f32.xlu2 %v1444_v38  ;;  %v1042_v24 = vadd.f32 %v4307_v7, %v714_v18  ;;  %v1136_v38 = vadd.f32 %v4342_v11, %v949_v23  ;;  %v1072_v41 = vadd.f32 %v4312_v17, %v789_v35 }
 0x10f   :  { %v1170_v32 = vmax.f32 %v1042_v24, 0.0  ;;  %v1264_v49 = vmax.f32 %v1136_v38, 0.0 }
 0x111   :  { %v1302_v42 = vmul.f32 %v4301_v3, %v1170_v32  ;;  %v952_v44 = vpop.f32.mrf.mxu3 }
 0x114   :  { %1727 = vadd.xlane.f32.xlu0 %v1726_v52  ;;  %1631 = vadd.xlane.f32.xlu1 %v1630_v53  ;;  %v717_v43 = vpop.f32.mrf.mxu0  ;;  %v1200_v52 = vmax.f32 %v1072_v41, 0.0  ;;  %v1453_v53 = vsel %vm1419_vm1, %v1302_v42, 0.0  ;;  %v792_v2 = vpop.f32.mrf.mxu1 }
 0x115   :  { %1535 = vadd.xlane.f32.xlu2 %v1534_v58  ;;  %v1137_v58 = vadd.f32 %v4342_v11, %v952_v44  ;;  %v1043_v59 = vadd.f32 %v4307_v7, %v717_v43  ;;  %v1073_v15 = vadd.f32 %v4312_v17, %v792_v2 }
 0x116   :  { %v1332_v1 = vmul.f32 %v4301_v3, %v1200_v52 }
 0x117   :  { %756 = vmatmul.bf16.gmra.mxu0 %v3875_v54  ;;  %v872_v54 = vpop.f32.mrf.mxu2  ;;  %v1265_v4 = vmax.f32 %v1137_v58, 0.0  ;;  %v1171_v5 = vmax.f32 %v1043_v59, 0.0  ;;  %v1201_v25 = vmax.f32 %v1073_v15, 0.0 }
 0x118   :  { %836 = vmatmul.bf16.gmra.mxu1 %v3891_v61  ;;  %v1105_v0 = vadd.f32 %v4328_v45, %v872_v54 }
 0x119   :  { %916 = vmatmul.bf16.gmra.mxu2 %v3907_v62  ;;  %996 = vmatmul.bf16.gmra.mxu3 %v3923_v63  ;;  %v1396_v62 = vmul.f32 %v4301_v3, %v1264_v49  ;;  %v1364_v63 = vmul.f32 %v4301_v3, %v1232_v48  ;;  %v954_v12 = vpop.f32.mrf.mxu3  ;;  %v1397_v20 = vmul.f32 %v4301_v3, %v1265_v4 }
 0x11a   :  { %v1233_v10 = vmax.f32 %v1105_v0, 0.0  ;;  %v1303_v21 = vmul.f32 %v4301_v3, %v1171_v5  ;;  %v1138_v22 = vadd.f32 %v4342_v11, %v954_v12  ;;  %v1333_v41 = vmul.f32 %v4301_v3, %v1201_v25 }
 0x11b   :  { %v1735_v8 = vsel %vm1419_vm1, %v1396_v62, 0.0  ;;  %v1639_v9 = vsel %vm1419_vm1, %v1364_v63, 0.0  ;;  %v1738_v29 = vsel %vm1419_vm1, %v1397_v20, 0.0 }
 0x11c   :  { %1730 = vadd.xlane.f32.xlu1 %v1729_v13  ;;  %1448 = vadd.xlane.f32.xlu0 %v1447_v14  ;;  %v719_v6 = vpop.f32.mrf.mxu0  ;;  %v1543_v14 = vsel %vm1419_vm1, %v1332_v1, 0.0  ;;  %v1365_v23 = vmul.f32 %v4301_v3, %v1233_v10  ;;  %v794_v27 = vpop.f32.mrf.mxu1 }
 0x11d   :  { %1634 = vadd.xlane.f32.xlu2 %v1633_v16  ;;  %v1044_v16 = vadd.f32 %v4307_v7, %v719_v6  ;;  %v1074_v37 = vadd.f32 %v4312_v17, %v794_v27 }
 0x11e   :  { %v1642_v32 = vsel %vm1419_vm1, %v1365_v23, 0.0 }
 0x11f   :  { %v874_v24 = vpop.f32.mrf.mxu2  ;;  %v1172_v28 = vmax.f32 %v1044_v16, 0.0  ;;  %v1202_v48 = vmax.f32 %v1074_v37, 0.0 }
 0x120   :  { %v1106_v38 = vadd.f32 %v4328_v45, %v874_v24 }
 0x121   :  { %v957_v35 = vpop.f32.mrf.mxu3  ;;  %v1304_v42 = vmul.f32 %v4301_v3, %v1172_v28  ;;  %v1334_v2 = vmul.f32 %v4301_v3, %v1202_v48 }
 0x122   :  { %v1234_v49 = vmax.f32 %v1106_v38, 0.0  ;;  %v1139_v62 = vadd.f32 %v4342_v11, %v957_v35 }
 0x123   :  { %v1459_v52 = vsel %vm1419_vm1, %v1304_v42, 0.0  ;;  %v1549_v15 = vsel %vm1419_vm1, %v1334_v2, 0.0 }
 0x124   :  { %1538 = vadd.xlane.f32.xlu0 %v1537_v30  ;;  %1451 = vadd.xlane.f32.xlu1 %v1450_v31  ;;  %v1456_v30 = vsel %vm1419_vm1, %v1303_v21, 0.0  ;;  %v1266_v31 = vmax.f32 %v1138_v22, 0.0  ;;  %v797_v58 = vpop.f32.mrf.mxu1  ;;  %v1366_v1 = vmul.f32 %v4301_v3, %v1234_v49  ;;  %v1267_v12 = vmax.f32 %v1139_v62, 0.0 }
 0x125   :  { %1733 = vadd.xlane.f32.xlu2 %v1732_v34  ;;  %v722_v34 = vpop.f32.mrf.mxu0  ;;  %v1075_v4 = vadd.f32 %v4312_v17, %v797_v58 }
 0x126   :  { %v1045_v43 = vadd.f32 %v4307_v7, %v722_v34  ;;  %v1398_v44 = vmul.f32 %v4301_v3, %v1266_v31  ;;  %v1399_v27 = vmul.f32 %v4301_v3, %v1267_v12 }
 0x127   :  { %v4449_v47 = vpop.xlane.xlu2 %1607  ;;  %v4454_v55 = vpop.xlane.xlu1 %1703  ;;  %v1203_v16 = vmax.f32 %v1075_v4, 0.0 }
 0x128   :  { %v1741_v54 = vsel %vm1419_vm1, %v1398_v44, 0.0 }
 0x129   :  { %1001 = vmatmul.bf16.gmra.mxu3 %v3924_v36  ;;  %v959_v5 = vpop.f32.mrf.mxu3 }
 0x12a   :  { %v1140_v22 = vadd.f32 %v4342_v11, %v959_v5 }
 0x12c   :  { %1637 = vadd.xlane.f32.xlu0 %v1636_v50  ;;  %1541 = vadd.xlane.f32.xlu1 %v1540_v51  ;;  %v877_v50 = vpop.f32.mrf.mxu2  ;;  %v1546_v51 = vsel %vm1419_vm1, %v1333_v41, 0.0  ;;  %v1268_v35 = vmax.f32 %v1140_v22, 0.0 }
 0x12d   :  { %1454 = vadd.xlane.f32.xlu2 %v1453_v53  ;;  %v1173_v53 = vmax.f32 %v1045_v43, 0.0  ;;  %v1107_v59 = vadd.f32 %v4328_v45, %v877_v50 }
 0x12f   :  { %v4458_v61 = vpop.xlane.xlu0 %1421  ;;  %v4466_v13 = vpop.xlane.xlu2 %1706  ;;  %v1235_v10 = vmax.f32 %v1107_v59, 0.0 }
 0x130   :  { %5779 = vst [vmem:[#allocation16_spill] sm:$0xff] %v4466_v13  ;;  %v4471_v18 = vpop.xlane.xlu1 %1514 }
 0x131   :  { %v1367_v28 = vmul.f32 %v4301_v3, %v1235_v10  ;;  %v962_v34 = vpop.f32.mrf.mxu3 }
 0x133   :  { %v1648_v41 = vsel %vm1419_vm1, %v1367_v28, 0.0 }
 0x134   :  { %1736 = vadd.xlane.f32.xlu0 %v1735_v8  ;;  %1640 = vadd.xlane.f32.xlu1 %v1639_v9  ;;  %v1305_v8 = vmul.f32 %v4301_v3, %v1173_v53  ;;  %v724_v9 = vpop.f32.mrf.mxu0  ;;  %v879_v21 = vpop.f32.mrf.mxu2  ;;  %v1141_v53 = vadd.f32 %v4342_v11, %v962_v34 }
 0x135   :  { %1544 = vadd.xlane.f32.xlu2 %v1543_v14  ;;  %v1645_v14 = vsel %vm1419_vm1, %v1366_v1, 0.0  ;;  %v1046_v23 = vadd.f32 %v4307_v7, %v724_v9  ;;  %v1744_v7 = vsel %vm1419_vm1, %v1399_v27, 0.0 }
 0x136   :  { %v1462_v20 = vsel %vm1419_vm1, %v1305_v8, 0.0  ;;  %v1269_v8 = vmax.f32 %v1141_v53, 0.0 }
 0x137   :  { %v4473_v19 = vpop.xlane.xlu0 %1511  ;;  %v4482_v36 = vpop.xlane.xlu2 %1517  ;;  %v1174_v37 = vmax.f32 %v1046_v23, 0.0 }
 0x138   :  { %v1401_v28 = vmul.f32 %v4301_v3, %v1269_v8 }
 0x139   :  { %v964_v9 = vpop.f32.mrf.mxu3 }
 0x13c   :  { %1739 = vadd.xlane.f32.xlu1 %v1738_v29  ;;  %1457 = vadd.xlane.f32.xlu0 %v1456_v30  ;;  %v799_v29 = vpop.f32.mrf.mxu1  ;;  %v1108_v30 = vadd.f32 %v4328_v45, %v879_v21  ;;  %v727_v38 = vpop.f32.mrf.mxu0 }
 0x13d   :  { %1643 = vadd.xlane.f32.xlu2 %v1642_v32  ;;  %v1335_v32 = vmul.f32 %v4301_v3, %v1203_v16  ;;  %v1076_v44 = vadd.f32 %v4312_v17, %v799_v29  ;;  %v1047_v48 = vadd.f32 %v4293_v60, %v727_v38  ;;  %v882_v59 = vpop.f32.mrf.mxu2 }
 0x13e   :  { %v1236_v42 = vmax.f32 %v1108_v30, 0.0 }
 0x13f   :  { %v4486_v39 = vpop.xlane.xlu0 %1424  ;;  %v4488_v40 = vpop.xlane.xlu1 %1427  ;;  %v1552_v43 = vsel %vm1419_vm1, %v1335_v32, 0.0  ;;  %v1204_v1 = vmax.f32 %v1076_v44, 0.0  ;;  %v1175_v2 = vmax.f32 %v1047_v48, 0.0 }
 0x140   :  { %v4506_v6 = vpop.xlane.xlu2 %1616  ;;  %v1368_v58 = vmul.f32 %v4301_v3, %v1236_v42 }
 0x141   :  { %v1336_v21 = vmul.f32 %v4301_v3, %v1204_v1  ;;  %v1307_v22 = vmul.f32 %v4301_v3, %v1175_v2 }
 0x142   :  { %v1651_v10 = vsel %vm1419_vm1, %v1368_v58, 0.0 }
 0x143   :  { %v1555_v34 = vsel %vm1419_vm1, %v1336_v21, 0.0 }
 0x144   :  { %1547 = vadd.xlane.f32.xlu0 %v1546_v51  ;;  %1460 = vadd.xlane.f32.xlu1 %v1459_v52  ;;  %v1400_v51 = vmul.f32 %v4301_v3, %v1268_v35  ;;  %v1306_v52 = vmul.f32 %v4301_v3, %v1174_v37  ;;  %v802_v62 = vpop.f32.mrf.mxu1  ;;  %v729_v12 = vpop.f32.mrf.mxu0  ;;  %v1468_v35 = vsel %vm1419_vm1, %v1307_v22, 0.0 }
 0x145   :  { %1742 = vadd.xlane.f32.xlu2 %v1741_v54  ;;  %v1048_v23 = vadd.f32 %v4293_v60, %v729_v12  ;;  %v884_v32 = vpop.f32.mrf.mxu2 }
 0x146   :  { %v1747_v4 = vsel %vm1419_vm1, %v1400_v51, 0.0  ;;  %v1465_v5 = vsel %vm1419_vm1, %v1306_v52, 0.0  ;;  %v1110_v42 = vadd.f32 %v4328_v45, %v884_v32 }
 0x147   :  { %v4499_v63 = vpop.xlane.xlu0 %1610  ;;  %v4501_v0 = vpop.xlane.xlu1 %1613  ;;  %v1176_v38 = vmax.f32 %v1048_v23, 0.0 }
 0x14c   :  { %1646 = vadd.xlane.f32.xlu0 %v1645_v14  ;;  %1550 = vadd.xlane.f32.xlu1 %v1549_v15  ;;  %v1077_v14 = vadd.f32 %v4312_v17, %v802_v62  ;;  %v1109_v15 = vadd.f32 %v4328_v45, %v882_v59  ;;  %v804_v37 = vpop.f32.mrf.mxu1  ;;  %v1308_v59 = vmul.f32 %v4301_v3, %v1176_v38  ;;  %v1014_v62 = vrot.slane %v4284_v46, 7  ;;  %v732_v1 = vpop.f32.mrf.mxu0 }
 0x14d   :  { %1463 = vadd.xlane.f32.xlu2 %v1462_v20  ;;  %v1078_v53 = vadd.f32 %v4312_v17, %v804_v37  ;;  %v1238_v45 = vmax.f32 %v1110_v42, 0.0  ;;  %v887_v17 = vpop.f32.mrf.mxu2  ;;  %v1049_v46 = vadd.f32 %v4293_v60, %v732_v1 }
 0x14e   :  { %v1205_v29 = vmax.f32 %v1077_v14, 0.0  ;;  %v1237_v30 = vmax.f32 %v1109_v15, 0.0  ;;  %v1471_v8 = vsel %vm1419_vm1, %v1308_v59, 0.0  ;;  %v4584_v15 = vld [vmem:[%s5766_s5] ss:$0 sm:$0xff]  ;;  %v1111_v23 = vadd.f32 %v4291_v57, %v887_v17  ;;  %s4195_s5 = smov [#allocation10]  }
 0x14f   :  { %v4514_v24 = vpop.xlane.xlu0 %1709  ;;  %v4516_v25 = vpop.xlane.xlu1 %1430  ;;  %v1370_v22 = vmul.f32 %v4584_v15, %v1238_v45  ;;  %s3539_s1 = sshll.u32 %s4195_s5, 4  ;;  %s3540_s1 = int_to_ptr.vmem [resolvable:$true] %s3539_s1 }
 0x150   :  { %v4521_v31 = vpop.xlane.xlu2 %1433  ;;  %v1369_v51 = vmul.f32 %v4301_v3, %v1237_v30  ;;  %v1337_v52 = vmul.f32 %v4301_v3, %v1205_v29 }
 0x151   :  { %v1657_v38 = vsel %vm1419_vm1, %v1370_v22, 0.0 }
 0x154   :  { %1745 = vadd.xlane.f32.xlu0 %v1744_v7  ;;  %1649 = vadd.xlane.f32.xlu1 %v1648_v41  ;;  %v1750_v7 = vsel %vm1419_vm1, %v1401_v28, 0.0  ;;  %v967_v41 = vpop.f32.mrf.mxu3 }
 0x155   :  { %1553 = vadd.xlane.f32.xlu2 %v1552_v43  ;;  %v1142_v43 = vadd.f32 %v4342_v11, %v964_v9  ;;  %v1654_v11 = vsel %vm1419_vm1, %v1369_v51, 0.0  ;;  %v4573_v9 = vperm.slane %v1014_v62, 0 }
 0x157   :  { %v4529_v49 = vpop.xlane.xlu0 %1520  ;;  %v4531_v50 = vpop.xlane.xlu1 %1712  ;;  %v1270_v2 = vmax.f32 %v1142_v43, 0.0  ;;  %v1143_v3 = vadd.f32 %v4573_v9, %v967_v41 }
 0x158   :  { %v4536_v54 = vpop.xlane.xlu2 %1715 }
 0x159   :  { %v1402_v21 = vmul.f32 %v4584_v15, %v1270_v2  ;;  %v1271_v32 = vmax.f32 %v1143_v3, 0.0 }
 0x15b   :  { %v1753_v37 = vsel %vm1419_vm1, %v1402_v21, 0.0 }
 0x15c   :  { %1748 = vadd.xlane.f32.xlu1 %v1747_v4  ;;  %1466 = vadd.xlane.f32.xlu0 %v1465_v5  ;;  %v1558_v4 = vsel %vm1419_vm1, %v1337_v52, 0.0  ;;  %v1206_v5 = vmax.f32 %v1078_v53, 0.0  ;;  %v969_v28 = vpop.f32.mrf.mxu3  ;;  %v1403_v53 = vmul.f32 %v4584_v15, %v1271_v32 }
 0x15d   :  { %1652 = vadd.xlane.f32.xlu2 %v1651_v10  ;;  %v807_v10 = vpop.f32.mrf.mxu1  ;;  %v1144_v1 = vadd.f32 %v4573_v9, %v969_v28 }
 0x15e   :  { %v1338_v30 = vmul.f32 %v4584_v15, %v1206_v5  ;;  %v1079_v42 = vadd.f32 %v4289_v56, %v807_v10  ;;  %v1756_v17 = vsel %vm1419_vm1, %v1403_v53, 0.0 }
 0x15f   :  { %v4544_v16 = vpop.xlane.xlu0 %1619  ;;  %v4546_v20 = vpop.xlane.xlu1 %1523  ;;  %v1272_v3 = vmax.f32 %v1144_v1, 0.0 }
 0x160   :  { %v4551_v27 = vpop.xlane.xlu2 %1436  ;;  %v1561_v41 = vsel %vm1419_vm1, %v1338_v30, 0.0  ;;  %v1207_v5 = vmax.f32 %v1079_v42, 0.0 }
 0x162   :  { %v1339_v32 = vmul.f32 %v4584_v15, %v1207_v5 }
 0x164   :  { %1556 = vadd.xlane.f32.xlu0 %v1555_v34  ;;  %1469 = vadd.xlane.f32.xlu1 %v1468_v35  ;;  %v1177_v34 = vmax.f32 %v1049_v46, 0.0  ;;  %v734_v35 = vpop.f32.mrf.mxu0  ;;  %v1564_v53 = vsel %vm1419_vm1, %v1339_v32, 0.0 }
 0x165   :  { %1751 = vadd.xlane.f32.xlu2 %v1750_v7  ;;  %v1239_v7 = vmax.f32 %v1111_v23, 0.0  ;;  %v1050_v43 = vadd.f32 %v4293_v60, %v734_v35  ;;  %v809_v62 = vpop.f32.mrf.mxu1 }
 0x166   :  { %v1309_v59 = vmul.f32 %v4584_v15, %v1177_v34  ;;  %v1080_v22 = vadd.f32 %v4289_v56, %v809_v62 }
 0x167   :  { %v4559_v44 = vpop.xlane.xlu0 %1718  ;;  %v4561_v48 = vpop.xlane.xlu1 %1622  ;;  %v1371_v2 = vmul.f32 %v4584_v15, %v1239_v7 }
 0x168   :  { %v4566_v58 = vpop.xlane.xlu2 %1526  ;;  %v1474_v10 = vsel %vm1419_vm1, %v1309_v59, 0.0 }
 0x169   :  { %v1660_v46 = vsel %vm1419_vm1, %v1371_v2, 0.0 }
 0x16c   :  { %1655 = vadd.xlane.f32.xlu0 %v1654_v11  ;;  %1559 = vadd.xlane.f32.xlu1 %v1558_v4  ;;  %v889_v11 = vpop.f32.mrf.mxu2  ;;  %v972_v4 = vpop.f32.mrf.mxu3 }
 0x16d   :  { %1472 = vadd.xlane.f32.xlu2 %v1471_v8  ;;  %v1178_v8 = vmax.f32 %v1050_v43, 0.0  ;;  %v737_v21 = vpop.f32.mrf.mxu0  ;;  %v1112_v23 = vadd.f32 %v4291_v57, %v889_v11  ;;  %v812_v7 = vpop.f32.mrf.mxu1  ;;  %v1145_v5 = vadd.f32 %v4573_v9, %v972_v4 }
 0x16e   :  { %v1051_v35 = vadd.f32 %v4293_v60, %v737_v21 }
 0x16f   :  { %v4577_v12 = vpop.xlane.xlu1 %1721  ;;  %v4579_v14 = vpop.xlane.xlu0 %1439  ;;  %v1310_v34 = vmul.f32 %v4584_v15, %v1178_v8  ;;  %v1240_v42 = vmax.f32 %v1112_v23, 0.0 }
 0x170   :  { %v4589_v29 = vpop.xlane.xlu2 %1625  ;;  %v1179_v62 = vmax.f32 %v1051_v35, 0.0 }
 0x171   :  { %v1477_v59 = vsel %vm1419_vm1, %v1310_v34, 0.0  ;;  %v1273_v34 = vmax.f32 %v1145_v5, 0.0 }
 0x174   :  { %1754 = vadd.xlane.f32.xlu0 %v1753_v37  ;;  %1658 = vadd.xlane.f32.xlu1 %v1657_v38  ;;  %v1404_v38 = vmul.f32 %v4584_v15, %v1272_v3  ;;  %v892_v43 = vpop.f32.mrf.mxu2  ;;  %v974_v1 = vpop.f32.mrf.mxu3 }
 0x175   :  { %1562 = vadd.xlane.f32.xlu2 %v1561_v41  ;;  %v1208_v41 = vmax.f32 %v1080_v22, 0.0  ;;  %v1113_v11 = vadd.f32 %v4291_v57, %v892_v43  ;;  %v1311_v22 = vmul.f32 %v4584_v15, %v1179_v62  ;;  %v739_v23 = vpop.f32.mrf.mxu0  ;;  %v814_v43 = vpop.f32.mrf.mxu1 }
 0x176   :  { %v1759_v2 = vsel %vm1419_vm1, %v1404_v38, 0.0 }
 0x177   :  { %v4597_v51 = vpop.xlane.xlu0 %1529  ;;  %v4599_v52 = vpop.xlane.xlu1 %1442  ;;  %v1340_v3 = vmul.f32 %v4584_v15, %v1208_v41  ;;  %v1241_v32 = vmax.f32 %v1113_v11, 0.0  ;;  %v1405_v11 = vmul.f32 %v4584_v15, %v1273_v34 }
 0x178   :  { %v4604_v45 = vpop.xlane.xlu2 %1724 }
 0x179   :  { %v1567_v4 = vsel %vm1419_vm1, %v1340_v3, 0.0  ;;  %v1373_v5 = vmul.f32 %v4584_v15, %v1241_v32 }
 0x17c   :  { %1757 = vadd.xlane.f32.xlu1 %v1756_v17  ;;  %1475 = vadd.xlane.f32.xlu0 %v1474_v10  ;;  %v1372_v10 = vmul.f32 %v4584_v15, %v1240_v42  ;;  %v1480_v42 = vsel %vm1419_vm1, %v1311_v22, 0.0  ;;  %v894_v41 = vpop.f32.mrf.mxu2 }
 0x17d   :  { %1661 = vadd.xlane.f32.xlu2 %v1660_v46  ;;  %v1081_v46 = vadd.f32 %v4289_v56, %v812_v7  ;;  %v977_v7 = vpop.f32.mrf.mxu3  ;;  %v817_v32 = vpop.f32.mrf.mxu1 }
 0x17e   :  { %v1663_v35 = vsel %vm1419_vm1, %v1372_v10, 0.0  ;;  %v1114_v10 = vadd.f32 %v4291_v57, %v894_v41  ;;  %v1082_v41 = vadd.f32 %v4289_v56, %v814_v43 }
 0x17f   :  { %v4612_v28 = vpop.xlane.xlu0 %1628  ;;  %v4614_v30 = vpop.xlane.xlu1 %1532  ;;  %v1209_v38 = vmax.f32 %v1081_v46, 0.0 }
 0x180   :  { %v4619_v37 = vpop.xlane.xlu2 %1445 }
 0x181   :  { %v1341_v46 = vmul.f32 %v4584_v15, %v1209_v38 }
 0x183   :  { %v1570_v34 = vsel %vm1419_vm1, %v1341_v46, 0.0 }
 0x184   :  { %1565 = vadd.xlane.f32.xlu0 %v1564_v53  ;;  %1478 = vadd.xlane.f32.xlu1 %v1477_v59  ;;  %v1146_v53 = vadd.f32 %v4573_v9, %v974_v1  ;;  %v1052_v59 = vadd.f32 %v4293_v60, %v739_v23  ;;  %v1762_v1 = vsel %vm1419_vm1, %v1405_v11, 0.0  ;;  %v1666_v23 = vsel %vm1419_vm1, %v1373_v5, 0.0 }
 0x185   :  { %1760 = vadd.xlane.f32.xlu2 %v1759_v2  ;;  %v1147_v11 = vadd.f32 %v4573_v9, %v977_v7  ;;  %v979_v5 = vpop.f32.mrf.mxu3  ;;  %v1083_v7 = vadd.f32 %v4289_v56, %v817_v32 }
 0x186   :  { %v1274_v22 = vmax.f32 %v1146_v53, 0.0 }
 0x187   :  { %v4627_v8 = vpop.xlane.xlu0 %1727  ;;  %v4629_v17 = vpop.xlane.xlu1 %1631 }
 0x188   :  { %5780 = vst [vmem:[#allocation17_spill] sm:$0xff] %v4627_v8  ;;  %v4634_v21 = vpop.xlane.xlu2 %1535  ;;  %v1406_v53 = vmul.f32 %v4584_v15, %v1274_v22 }
 0x189   :  { %5781 = vst [vmem:[#allocation18_spill] sm:$0xff] %v4629_v17 }
 0x18a   :  { %5782 = vst [vmem:[#allocation19_spill] sm:$0xff] %v4634_v21 }
 0x18c   :  { %1664 = vadd.xlane.f32.xlu0 %v1663_v35  ;;  %1568 = vadd.xlane.f32.xlu1 %v1567_v4  ;;  %v1180_v35 = vmax.f32 %v1052_v59, 0.0  ;;  %v742_v4 = vpop.f32.mrf.mxu0 }
 0x18d   :  { %1481 = vadd.xlane.f32.xlu2 %v1480_v42  ;;  %v1242_v42 = vmax.f32 %v1114_v10, 0.0  ;;  %v1053_v33 = vadd.f32 %v4293_v60, %v742_v4  ;;  %v1765_v4 = vsel %vm1419_vm1, %v1406_v53, 0.0  ;;  %v819_v53 = vpop.f32.mrf.mxu1 }
 0x18e   :  { %v1312_v59 = vmul.f32 %v4584_v15, %v1180_v35 }
 0x18f   :  { %v4642_v62 = vpop.xlane.xlu1 %1730  ;;  %v4644_v2 = vpop.xlane.xlu0 %1448  ;;  %v1374_v46 = vmul.f32 %v4584_v15, %v1242_v42  ;;  %v1181_v43 = vmax.f32 %v1053_v33, 0.0 }
 0x190   :  { %5783 = vst [vmem:[#allocation20_spill] sm:$0xff] %v4642_v62  ;;  %v4649_v3 = vpop.xlane.xlu2 %1634 }
 0x191   :  { %5784 = vst [vmem:[#allocation21_spill] sm:$0xff] %v4644_v2  ;;  %v1669_v22 = vsel %vm1419_vm1, %v1374_v46, 0.0 }
 0x192   :  { %5785 = vst [vmem:[#allocation22_spill] sm:$0xff] %v4649_v3 }
 0x194   :  { %1763 = vadd.xlane.f32.xlu0 %v1762_v1  ;;  %1667 = vadd.xlane.f32.xlu1 %v1666_v23  ;;  %v897_v1 = vpop.f32.mrf.mxu2  ;;  %v1210_v23 = vmax.f32 %v1082_v41, 0.0  ;;  %v744_v35 = vpop.f32.mrf.mxu0  ;;  %v1313_v41 = vmul.f32 %v4584_v15, %v1181_v43 }
 0x195   :  { %1571 = vadd.xlane.f32.xlu2 %v1570_v34  ;;  %v1483_v34 = vsel %vm1419_vm1, %v1312_v59, 0.0  ;;  %v1054_v59 = vadd.f32 %v4293_v60, %v744_v35  ;;  %v1148_v35 = vadd.f32 %v4573_v9, %v979_v5 }
 0x196   :  { %v1342_v33 = vmul.f32 %v4584_v15, %v1210_v23 }
 0x197   :  { %v4657_v26 = vpop.xlane.xlu0 %1538  ;;  %v4659_v38 = vpop.xlane.xlu1 %1451 }
 0x198   :  { %5786 = vst [vmem:[#allocation23_spill] sm:$0xff] %v4657_v26  ;;  %v4664_v10 = vpop.xlane.xlu2 %1733  ;;  %v1275_v26 = vmax.f32 %v1147_v11, 0.0 }
 0x199   :  { %5787 = vst [vmem:[#allocation24_spill] sm:$0xff] %v4659_v38 }
 0x19a   :  { %5788 = vst [vmem:[#allocation25_spill] sm:$0xff] %v4664_v10  ;;  %v1115_v10 = vadd.f32 %v4291_v57, %v897_v1  ;;  %v1407_v46 = vmul.f32 %v4584_v15, %v1275_v26  ;;  %v1573_v1 = vsel %vm1419_vm1, %v1342_v33, 0.0  ;;  %v1084_v33 = vadd.f32 %v4289_v56, %v819_v53 }
 0x19c   :  { %1766 = vadd.xlane.f32.xlu1 %v1765_v4  ;;  %1484 = vadd.xlane.f32.xlu0 %v1483_v34  ;;  %v982_v4 = vpop.f32.mrf.mxu3  ;;  %v1211_v34 = vmax.f32 %v1083_v7, 0.0  ;;  %v1243_v32 = vmax.f32 %v1115_v10, 0.0  ;;  %v1768_v23 = vsel %vm1419_vm1, %v1407_v46, 0.0  ;;  %v822_v46 = vpop.f32.mrf.mxu1 }
 0x19d   :  { %1670 = vadd.xlane.f32.xlu2 %v1669_v22  ;;  %v899_v22 = vpop.f32.mrf.mxu2  ;;  %v1149_v53 = vadd.f32 %v4573_v9, %v982_v4 }
 0x19e   :  { %v1116_v43 = vadd.f32 %v4291_v57, %v899_v22  ;;  %v1375_v10 = vmul.f32 %v4584_v15, %v1243_v32  ;;  %v1343_v7 = vmul.f32 %v4584_v15, %v1211_v34  ;;  %v1276_v22 = vmax.f32 %v1148_v35, 0.0 }
 0x19f   :  { %v4672_v38 = vpop.xlane.xlu0 %1637  ;;  %v4674_v42 = vpop.xlane.xlu1 %1541 }
 0x1a0   :  { %5789 = vst [vmem:[#allocation26_spill] sm:$0xff] %v4672_v38  ;;  %v4679_v11 = vpop.xlane.xlu2 %1454  ;;  %v1486_v38 = vsel %vm1419_vm1, %v1313_v41, 0.0  ;;  %v1672_v5 = vsel %vm1419_vm1, %v1375_v10, 0.0  ;;  %v1408_v35 = vmul.f32 %v4584_v15, %v1276_v22 }
 0x1a1   :  { %5790 = vst [vmem:[#allocation27_spill] sm:$0xff] %v4674_v42  ;;  %v1182_v42 = vmax.f32 %v1054_v59, 0.0 }
 0x1a2   :  { %5791 = vst [vmem:[#allocation28_spill] sm:$0xff] %v4679_v11  ;;  %v1771_v4 = vsel %vm1419_vm1, %v1408_v35, 0.0 }
 0x1a3   :  { %v1314_v59 = vmul.f32 %v4584_v15, %v1182_v42 }
 0x1a4   :  { %1574 = vadd.xlane.f32.xlu0 %v1573_v1  ;;  %1487 = vadd.xlane.f32.xlu1 %v1486_v38  ;;  %v747_v38 = vpop.f32.mrf.mxu0  ;;  %v1244_v1 = vmax.f32 %v1116_v43, 0.0  ;;  %v824_v3 = vpop.f32.mrf.mxu1 }
 0x1a5   :  { %1769 = vadd.xlane.f32.xlu2 %v1768_v23  ;;  %v1576_v23 = vsel %vm1419_vm1, %v1343_v7, 0.0  ;;  %v1489_v34 = vsel %vm1419_vm1, %v1314_v59, 0.0  ;;  %v902_v32 = vpop.f32.mrf.mxu2  ;;  %v1055_v42 = vadd.f32 %v4293_v60, %v747_v38 }
 0x1a6   :  { %v1376_v10 = vmul.f32 %v4584_v15, %v1244_v1  ;;  %v1117_v7 = vadd.f32 %v4291_v57, %v902_v32  ;;  %v1085_v32 = vadd.f32 %v4289_v56, %v822_v46 }
 0x1a7   :  { %v4687_v11 = vpop.xlane.xlu0 %1736  ;;  %v4689_v26 = vpop.xlane.xlu1 %1640 }
 0x1a8   :  { %5792 = vst [vmem:[#allocation29_spill] sm:$0xff] %v4687_v11  ;;  %v4694_v41 = vpop.xlane.xlu2 %1544  ;;  %v1212_v11 = vmax.f32 %v1084_v33, 0.0  ;;  %v1675_v38 = vsel %vm1419_vm1, %v1376_v10, 0.0 }
 0x1a9   :  { %5793 = vst [vmem:[#allocation30_spill] sm:$0xff] %v4689_v26  ;;  %v984_v26 = vpop.f32.mrf.mxu3 }
 0x1aa   :  { %5794 = vst [vmem:[#allocation31_spill] sm:$0xff] %v4694_v41  ;;  %v1344_v59 = vmul.f32 %v4584_v15, %v1212_v11 }
 0x1ac   :  { %1673 = vadd.xlane.f32.xlu0 %v1672_v5  ;;  %1577 = vadd.xlane.f32.xlu1 %v1576_v23  ;;  %v1277_v5 = vmax.f32 %v1149_v53, 0.0  ;;  %v1183_v23 = vmax.f32 %v1055_v42, 0.0  ;;  %v1579_v22 = vsel %vm1419_vm1, %v1344_v59, 0.0 }
 0x1ad   :  { %1490 = vadd.xlane.f32.xlu2 %v1489_v34  ;;  %v749_v34 = vpop.f32.mrf.mxu0  ;;  %v904_v10 = vpop.f32.mrf.mxu2 }
 0x1ae   :  { %v1409_v42 = vmul.f32 %v4584_v15, %v1277_v5  ;;  %v1315_v35 = vmul.f32 %v4584_v15, %v1183_v23  ;;  %v827_v23 = vpop.f32.mrf.mxu1 }
 0x1af   :  { %v4702_v41 = vpop.xlane.xlu1 %1739  ;;  %v4704_v43 = vpop.xlane.xlu0 %1457 }
 0x1b0   :  { %5795 = vst [vmem:[#allocation32_spill] sm:$0xff] %v4702_v41  ;;  %v4709_v33 = vpop.xlane.xlu2 %1643  ;;  %v1245_v41 = vmax.f32 %v1117_v7, 0.0  ;;  %v1150_v7 = vadd.f32 %v4573_v9, %v984_v26  ;;  %v1774_v46 = vsel %vm1419_vm1, %v1409_v42, 0.0  ;;  %v1086_v26 = vadd.f32 %v4289_v56, %v824_v3 }
 0x1b1   :  { %5796 = vst [vmem:[#allocation33_spill] sm:$0xff] %v4704_v43  ;;  %v987_v1 = vpop.f32.mrf.mxu3  ;;  %v1056_v43 = vadd.f32 %v4293_v60, %v749_v34  ;;  %v1492_v34 = vsel %vm1419_vm1, %v1315_v35, 0.0 }
 0x1b2   :  { %5797 = vst [vmem:[#allocation34_spill] sm:$0xff] %v4709_v33  ;;  %v1377_v59 = vmul.f32 %v4584_v15, %v1245_v41 }
 0x1b4   :  { %1772 = vadd.xlane.f32.xlu0 %v1771_v4  ;;  %1676 = vadd.xlane.f32.xlu1 %v1675_v38  ;;  %v1213_v38 = vmax.f32 %v1085_v32, 0.0 }
 0x1b5   :  { %1580 = vadd.xlane.f32.xlu2 %v1579_v22  ;;  %v1184_v22 = vmax.f32 %v1056_v43, 0.0  ;;  %v752_v5 = vpop.f32.mrf.mxu0 }
 0x1b6   :  { %v1345_v43 = vmul.f32 %v4584_v15, %v1213_v38  ;;  %v1057_v42 = vadd.f32 %v4293_v60, %v752_v5 }
 0x1b7   :  { %v4717_v11 = vpop.xlane.xlu0 %1547  ;;  %v4719_v53 = vpop.xlane.xlu1 %1460  ;;  %v1316_v32 = vmul.f32 %v4584_v15, %v1184_v22  ;;  %v1151_v22 = vadd.f32 %v4573_v9, %v987_v1 }
 0x1b8   :  { %5798 = vst [vmem:[#allocation35_spill] sm:$0xff] %v4717_v11  ;;  %v4724_v4 = vpop.xlane.xlu2 %1742  ;;  %v1278_v11 = vmax.f32 %v1150_v7, 0.0 }
 0x1b9   :  { %5799 = vst [vmem:[#allocation36_spill] sm:$0xff] %v4719_v53  ;;  %v1678_v53 = vsel %vm1419_vm1, %v1377_v59, 0.0  ;;  %v989_v35 = vpop.f32.mrf.mxu3  ;;  %v907_v59 = vpop.f32.mrf.mxu2 }
 0x1ba   :  { %5800 = vst [vmem:[#allocation37_spill] sm:$0xff] %v4724_v4  ;;  %v1118_v4 = vadd.f32 %v4291_v57, %v904_v10  ;;  %v1582_v10 = vsel %vm1419_vm1, %v1345_v43, 0.0  ;;  %v1119_v38 = vadd.f32 %v4291_v57, %v907_v59  ;;  %v1087_v43 = vadd.f32 %v4289_v56, %v827_v23 }
 0x1bb   :  { %v1152_v23 = vadd.f32 %v4573_v9, %v989_v35 }
 0x1bc   :  { %1775 = vadd.xlane.f32.xlu1 %v1774_v46  ;;  %1493 = vadd.xlane.f32.xlu0 %v1492_v34  ;;  %v1214_v46 = vmax.f32 %v1086_v26, 0.0  ;;  %v1246_v3 = vmax.f32 %v1118_v4, 0.0  ;;  %v1495_v34 = vsel %vm1419_vm1, %v1316_v32, 0.0  ;;  %v1247_v59 = vmax.f32 %v1119_v38, 0.0 }
 0x1bd   :  { %1679 = vadd.xlane.f32.xlu2 %v1678_v53  ;;  %v1410_v53 = vmul.f32 %v4584_v15, %v1278_v11 }
 0x1be   :  { %v1378_v4 = vmul.f32 %v4584_v15, %v1246_v3  ;;  %v1346_v26 = vmul.f32 %v4584_v15, %v1214_v46 }
 0x1bf   :  { %v4732_v33 = vpop.xlane.xlu0 %1646  ;;  %v4734_v41 = vpop.xlane.xlu1 %1550 }
 0x1c0   :  { %5801 = vst [vmem:[#allocation38_spill] sm:$0xff] %v4732_v33  ;;  %v4739_v7 = vpop.xlane.xlu2 %1463  ;;  %v1185_v33 = vmax.f32 %v1057_v42, 0.0  ;;  %v1681_v1 = vsel %vm1419_vm1, %v1378_v4, 0.0 }
 0x1c1   :  { %5802 = vst [vmem:[#allocation39_spill] sm:$0xff] %v4734_v41  ;;  %v1777_v41 = vsel %vm1419_vm1, %v1410_v53, 0.0  ;;  %v754_v53 = vpop.f32.mrf.mxu0 }
 0x1c2   :  { %5803 = vst [vmem:[#allocation40_spill] sm:$0xff] %v4739_v7  ;;  %v1317_v42 = vmul.f32 %v4584_v15, %v1185_v33  ;;  %v909_v7 = vpop.f32.mrf.mxu2  ;;  %v1058_v33 = vadd.f32 %v4293_v60, %v754_v53 }
 0x1c3   :  { %v1120_v4 = vadd.f32 %v4291_v57, %v909_v7 }
 0x1c4   :  { %1583 = vadd.xlane.f32.xlu0 %v1582_v10  ;;  %1496 = vadd.xlane.f32.xlu1 %v1495_v34  ;;  %v992_v10 = vpop.f32.mrf.mxu3  ;;  %v1279_v34 = vmax.f32 %v1151_v22, 0.0  ;;  %v1498_v46 = vsel %vm1419_vm1, %v1317_v42, 0.0  ;;  %v1379_v22 = vmul.f32 %v4584_v15, %v1247_v59  ;;  %v1186_v42 = vmax.f32 %v1058_v33, 0.0 }
 0x1c5   :  { %1778 = vadd.xlane.f32.xlu2 %v1777_v41  ;;  %v829_v41 = vpop.f32.mrf.mxu1 }
 0x1c6   :  { %v1411_v38 = vmul.f32 %v4584_v15, %v1279_v34  ;;  %v1684_v53 = vsel %vm1419_vm1, %v1379_v22, 0.0  ;;  %v1088_v34 = vadd.f32 %v4289_v56, %v829_v41  ;;  %v1318_v22 = vmul.f32 %v4584_v15, %v1186_v42 }
 0x1c7   :  { %v4747_v5 = vpop.xlane.xlu0 %1745  ;;  %v4749_v11 = vpop.xlane.xlu1 %1649 }
 0x1c8   :  { %5804 = vst [vmem:[#allocation41_spill] sm:$0xff] %v4747_v5  ;;  %v4754_v32 = vpop.xlane.xlu2 %1553  ;;  %v1585_v5 = vsel %vm1419_vm1, %v1346_v26, 0.0  ;;  %v1780_v35 = vsel %vm1419_vm1, %v1411_v38, 0.0 }
 0x1c9   :  { %5805 = vst [vmem:[#allocation42_spill] sm:$0xff] %v4749_v11  ;;  %v1215_v11 = vmax.f32 %v1087_v43, 0.0  ;;  %v1280_v43 = vmax.f32 %v1152_v23, 0.0 }
 0x1ca   :  { %5806 = vst [vmem:[#allocation43_spill] sm:$0xff] %v4754_v32  ;;  %v912_v7 = vpop.f32.mrf.mxu2 }
 0x1cb   :  { %v1412_v38 = vmul.f32 %v4584_v15, %v1280_v43 }
 0x1cc   :  { %1682 = vadd.xlane.f32.xlu0 %v1681_v1  ;;  %1586 = vadd.xlane.f32.xlu1 %v1585_v5  ;;  %v1347_v5 = vmul.f32 %v4584_v15, %v1215_v11  ;;  %v757_v1 = vpop.f32.mrf.mxu0 }
 0x1cd   :  { %1499 = vadd.xlane.f32.xlu2 %v1498_v46  ;;  %v1248_v46 = vmax.f32 %v1120_v4, 0.0  ;;  %v1059_v11 = vadd.f32 %v4293_v60, %v757_v1  ;;  %v1153_v4 = vadd.f32 %v4573_v9, %v992_v10  ;;  %v1783_v41 = vsel %vm1419_vm1, %v1412_v38, 0.0 }
 0x1ce   :  { %v1588_v59 = vsel %vm1419_vm1, %v1347_v5, 0.0  ;;  %v1501_v1 = vsel %vm1419_vm1, %v1318_v22, 0.0 }
 0x1cf   :  { %v4762_v3 = vpop.xlane.xlu1 %1748  ;;  %v4764_v32 = vpop.xlane.xlu0 %1466  ;;  %v1380_v5 = vmul.f32 %v4584_v15, %v1248_v46 }
 0x1d0   :  { %5807 = vst [vmem:[#allocation44_spill] sm:$0xff] %v4762_v3  ;;  %v4769_v26 = vpop.xlane.xlu2 %1652  ;;  %v832_v3 = vpop.f32.mrf.mxu1 }
 0x1d1   :  { %5808 = vst [vmem:[#allocation45_spill] sm:$0xff] %v4764_v32  ;;  %v994_v32 = vpop.f32.mrf.mxu3  ;;  %v1089_v10 = vadd.f32 %v4289_v56, %v832_v3 }
 0x1d2   :  { %5809 = vst [vmem:[#allocation46_spill] sm:$0xff] %v4769_v26  ;;  %v1281_v26 = vmax.f32 %v1153_v4, 0.0  ;;  %v914_v22 = vpop.f32.mrf.mxu2 }
 0x1d4   :  { %1781 = vadd.xlane.f32.xlu0 %v1780_v35  ;;  %1685 = vadd.xlane.f32.xlu1 %v1684_v53  ;;  %v1216_v53 = vmax.f32 %v1088_v34, 0.0  ;;  %v759_v43 = vpop.f32.mrf.mxu0 }
 0x1d5   :  { %1589 = vadd.xlane.f32.xlu2 %v1588_v59  ;;  %v1187_v59 = vmax.f32 %v1059_v11, 0.0  ;;  %v1060_v4 = vadd.f32 %v4293_v60, %v759_v43  ;;  %v1154_v60 = vadd.f32 %v4573_v9, %v994_v32 }
 0x1d6   :  { %v1348_v11 = vmul.f32 %v4584_v15, %v1216_v53  ;;  %v1122_v53 = vadd.f32 %v4291_v57, %v914_v22 }
 0x1d7   :  { %v4777_v23 = vpop.xlane.xlu0 %1556  ;;  %v4779_v33 = vpop.xlane.xlu1 %1469  ;;  %v1319_v38 = vmul.f32 %v4584_v15, %v1187_v59 }
 0x1d8   :  { %5810 = vst [vmem:[#allocation47_spill] sm:$0xff] %v4777_v23  ;;  %v4784_v35 = vpop.xlane.xlu2 %1751  ;;  %v1687_v23 = vsel %vm1419_vm1, %v1380_v5, 0.0  ;;  %v834_v42 = vpop.f32.mrf.mxu1  ;;  %v1591_v3 = vsel %vm1419_vm1, %v1348_v11, 0.0  ;;  %v1250_v22 = vmax.f32 %v1122_v53, 0.0 }
 0x1d9   :  { %5811 = vst [vmem:[#allocation48_spill] sm:$0xff] %v4784_v35  ;;  %v997_v2 = vpop.f32.mrf.mxu3  ;;  %v1121_v35 = vadd.f32 %v4291_v57, %v912_v7  ;;  %v1504_v7 = vsel %vm1419_vm1, %v1319_v38, 0.0 }
 0x1dc   :  { %1784 = vadd.xlane.f32.xlu1 %v1783_v41  ;;  %1502 = vadd.xlane.f32.xlu0 %v1501_v1  ;;  %v1217_v41 = vmax.f32 %v1089_v10, 0.0  ;;  %v1249_v1 = vmax.f32 %v1121_v35, 0.0  ;;  %v1090_v10 = vadd.f32 %v4289_v56, %v834_v42 }
 0x1dd   :  { %1688 = vadd.xlane.f32.xlu2 %v1687_v23  ;;  %v1413_v23 = vmul.f32 %v4584_v15, %v1281_v26 }
 0x1de   :  { %v1381_v26 = vmul.f32 %v4584_v15, %v1249_v1  ;;  %v1349_v35 = vmul.f32 %v4584_v15, %v1217_v41  ;;  %v1155_v1 = vadd.f32 %v4573_v9, %v997_v2 }
 0x1df   :  { %v4792_v46 = vpop.xlane.xlu0 %1655  ;;  %v4794_v34 = vpop.xlane.xlu1 %1559 }
 0x1e0   :  { %5812 = vst [vmem:[#allocation49_spill] sm:$0xff] %v4792_v46  ;;  %v4799_v5 = vpop.xlane.xlu2 %1472  ;;  %v1188_v46 = vmax.f32 %v1060_v4, 0.0  ;;  %v1690_v32 = vsel %vm1419_vm1, %v1381_v26, 0.0 }
 0x1e1   :  { %5813 = vst [vmem:[#allocation50_spill] sm:$0xff] %v4794_v34  ;;  %v1786_v34 = vsel %vm1419_vm1, %v1413_v23, 0.0  ;;  %v999_v11 = vpop.f32.mrf.mxu3  ;;  %v917_v23 = vpop.f32.mrf.mxu2 }
 0x1e2   :  { %v1320_v4 = vmul.f32 %v4584_v15, %v1188_v46  ;;  %v1123_v26 = vadd.f32 %v4291_v57, %v917_v23 }
 0x1e4   :  { %1592 = vadd.xlane.f32.xlu0 %v1591_v3  ;;  %1505 = vadd.xlane.f32.xlu1 %v1504_v7  ;;  %v1282_v3 = vmax.f32 %v1154_v60, 0.0  ;;  %v1594_v7 = vsel %vm1419_vm1, %v1349_v35, 0.0  ;;  %v1507_v41 = vsel %vm1419_vm1, %v1320_v4, 0.0  ;;  %v1382_v60 = vmul.f32 %v4584_v15, %v1250_v22 }
 0x1e5   :  { %1787 = vadd.xlane.f32.xlu2 %v1786_v34  ;;  %v837_v34 = vpop.f32.mrf.mxu1 }
 0x1e6   :  { %v1091_v42 = vadd.f32 %v4289_v56, %v837_v34  ;;  %v1414_v53 = vmul.f32 %v4584_v15, %v1282_v3  ;;  %v1693_v2 = vsel %vm1419_vm1, %v1382_v60, 0.0  ;;  %v1156_v60 = vadd.f32 %v4573_v9, %v999_v11 }
 0x1e7   :  { %v4807_v59 = vpop.xlane.xlu0 %1754  ;;  %v4809_v43 = vpop.xlane.xlu1 %1658 }
 0x1e8   :  { %5814 = vst [vmem:[#allocation51_spill] sm:$0xff] %v4807_v59  ;;  %v4814_v38 = vpop.xlane.xlu2 %1562  ;;  %v1218_v59 = vmax.f32 %v1090_v10, 0.0  ;;  %v1789_v34 = vsel %vm1419_vm1, %v1414_v53, 0.0 }
 0x1e9   :  { %5815 = vst [vmem:[#allocation52_spill] sm:$0xff] %v4809_v43  ;;  %v1002_v4 = vpop.f32.mrf.mxu3  ;;  %v919_v62 = vpop.f32.mrf.mxu2 }
 0x1ea   :  { %5816 = vst [vmem:[#allocation53_spill] sm:$0xff] %v4814_v38  ;;  %v1350_v10 = vmul.f32 %v4584_v15, %v1218_v59  ;;  %v1124_v3 = vadd.f32 %v4291_v57, %v919_v62  ;;  %v1284_v62 = vmax.f32 %v1156_v60, 0.0  ;;  %v5774_v60 = vlaneseq }
 0x1ec   :  { %1691 = vadd.xlane.f32.xlu0 %v1690_v32  ;;  %1595 = vadd.xlane.f32.xlu1 %v1594_v7  ;;  %v1219_v32 = vmax.f32 %v1091_v42, 0.0  ;;  %v1283_v7 = vmax.f32 %v1155_v1, 0.0  ;;  %v1597_v22 = vsel %vm1419_vm1, %v1350_v10, 0.0 }
 0x1ed   :  { %1508 = vadd.xlane.f32.xlu2 %v1507_v41  ;;  %v1251_v41 = vmax.f32 %v1123_v26, 0.0  ;;  %v839_v43 = vpop.f32.mrf.mxu1 }
 0x1ee   :  { %v1092_v23 = vadd.f32 %v4289_v56, %v839_v43  ;;  %v1351_v1 = vmul.f32 %v4584_v15, %v1219_v32  ;;  %v1415_v53 = vmul.f32 %v4584_v15, %v1283_v7  ;;  %v1157_v7 = vadd.f32 %v4573_v9, %v1002_v4 }
 0x1ef   :  { %v4822_v38 = vpop.xlane.xlu1 %1757  ;;  %v4824_v46 = vpop.xlane.xlu0 %1475  ;;  %v4861_v4 = vand.u32 127, %v5774_v60 }
 0x1f0   :  { %v4829_v35 = vpop.xlane.xlu2 %1661  ;;  %v1220_v10 = vmax.f32 %v1092_v23, 0.0  ;;  %v1600_v56 = vsel %vm1419_vm1, %v1351_v1, 0.0  ;;  %v1792_v57 = vsel %vm1419_vm1, %v1415_v53, 0.0  ;;  %v1416_v53 = vmul.f32 %v4584_v15, %v1284_v62 }
 0x1f1   :  { %v1004_v43 = vpop.f32.mrf.mxu3  ;;  %5817 = vst [vmem:[#allocation54_spill] sm:$0xff] %v4861_v4  ;;  %v4891_v60 = vadd.s32 4294967256, %v4861_v4 }
 0x1f2   :  { %v1158_v11 = vadd.f32 %v4573_v9, %v1004_v43  ;;  %v1795_v9 = vsel %vm1419_vm1, %v1416_v53, 0.0 }
 0x1f4   :  { %1790 = vadd.xlane.f32.xlu0 %v1789_v34  ;;  %1694 = vadd.xlane.f32.xlu1 %v1693_v2  ;;  %v1383_v34 = vmul.f32 %v4584_v15, %v1251_v41  ;;  %v1252_v2 = vmax.f32 %v1124_v3, 0.0  ;;  %v1352_v3 = vmul.f32 %v4584_v15, %v1220_v10 }
 0x1f5   :  { %1598 = vadd.xlane.f32.xlu2 %v1597_v22 }
 0x1f6   :  { %v1696_v32 = vsel %vm1419_vm1, %v1383_v34, 0.0  ;;  %v1384_v23 = vmul.f32 %v4584_v15, %v1252_v2 }
 0x1f7   :  { %v4837_v59 = vpop.xlane.xlu0 %1565  ;;  %v4839_v42 = vpop.xlane.xlu1 %1478 }
 0x1f8   :  { %v4844_v26 = vpop.xlane.xlu2 %1760  ;;  %v1699_v34 = vsel %vm1419_vm1, %v1384_v23, 0.0  ;;  %v4871_v23 = vadd.s32 4294967280, %v4861_v4 }
 0x1fc   :  { %1601 = vadd.xlane.f32.xlu0 %v1600_v56  ;;  %1793 = vadd.xlane.f32.xlu1 %v1792_v57  ;;  %v1285_v56 = vmax.f32 %v1157_v7, 0.0  ;;  %v1286_v57 = vmax.f32 %v1158_v11, 0.0  ;;  %v4868_v7 = vadd.s32 4294967288, %v4861_v4 }
 0x1fd   :  { %1697 = vadd.xlane.f32.xlu2 %v1696_v32  ;;  %v1603_v32 = vsel %vm1419_vm1, %v1352_v3, 0.0  ;;  %v4874_v3 = vadd.s32 4294967272, %v4861_v4 }
 0x1fe   :  { %v1417_v62 = vmul.f32 %v4584_v15, %v1285_v56  ;;  %v1418_v43 = vmul.f32 %v4584_v15, %v1286_v57  ;;  %v2004_v53 = vperm.slane %v4799_v5, %v4868_v7  ;;  %v2006_v56 = vperm.slane %v4824_v46, %v4871_v23 }
 0x1ff   :  { %v4852_v22 = vpop.xlane.xlu0 %1664  ;;  %v1569_v41 = vpop.xlane.xlu1 %1568 }
 0x200   :  { %v1482_v1 = vpop.xlane.xlu2 %1481  ;;  %v1798_v15 = vsel %vm1419_vm1, %v1417_v62, 0.0  ;;  %v1801_v57 = vsel %vm1419_vm1, %v1418_v43, 0.0  ;;  %v2066_v17 = vperm.slane %v1569_v41, %v4868_v7  ;;  %v2128_v41 = vperm.slane %v4852_v22, %v4868_v7 }
 0x201   :  { %v2190_v22 = vperm.slane %v4844_v26, %v4868_v7  ;;  %vm48_vm1 = vcmask 7168  }
 0x204   :  { %1700 = vadd.xlane.f32.xlu0 %v1699_v34  ;;  %1604 = vadd.xlane.f32.xlu1 %v1603_v32  ;;  %v4879_v34 = vadd.s32 4294967264, %v4861_v4  ;;  %v2003_v32 = vperm.slane %v4779_v33, %v4861_v4 }
 0x205   :  { %1796 = vadd.xlane.f32.xlu2 %v1795_v9  ;;  %v2008_v9 = vperm.slane %v4839_v42, %v4874_v3 }
 0x206   :  { %v2010_v5 = vperm.slane %v1482_v1, %v4879_v34  ;;  %v2005_v46 = vsel %vm1945_vm2, %v2004_v53, %v2003_v32 }
 0x207   :  { %v4863_v2 = vpop.xlane.xlu0 %1763  ;;  %v1668_v10 = vpop.xlane.xlu1 %1667  ;;  %v2007_v62 = vsel %vm1949_vm3, %v2006_v56, %v2005_v46  ;;  %v2065_v56 = vperm.slane %v4837_v59, %v4861_v4  ;;  %v2127_v59 = vperm.slane %v4829_v35, %v4861_v4 }
 0x208   :  { %v1572_v11 = vpop.xlane.xlu2 %1571  ;;  %v2009_v33 = vsel %vm1953_vm4, %v2008_v9, %v2007_v62  ;;  %v2192_v35 = vperm.slane %v4863_v2, %v4871_v23 }
 0x209   :  { %v2011_v1 = vsel %vm1957_vm5, %v2010_v5, %v2009_v33  ;;  %v2068_v53 = vperm.slane %v1572_v11, %v4871_v23  ;;  %v2067_v8 = vsel %vm1945_vm2, %v2066_v17, %v2065_v56  ;;  %v2130_v11 = vperm.slane %v1668_v10, %v4871_v23 }
 0x20a   :  { %v2129_v17 = vsel %vm1945_vm2, %v2128_v41, %v2127_v59 }
 0x20c   :  { %1799 = vadd.xlane.f32.xlu0 %v1798_v15  ;;  %1802 = vadd.xlane.f32.xlu1 %v1801_v57 }
 0x20f   :  { %v1767_v43 = vpop.xlane.xlu1 %1766  ;;  %v1485_v21 = vpop.xlane.xlu0 %1484 }
 0x210   :  { %v1671_v42 = vpop.xlane.xlu2 %1670  ;;  %v2012_v15 = vperm.slane %v1485_v21, %v4891_v60  ;;  %v2069_v21 = vsel %vm1949_vm3, %v2068_v53, %v2067_v8  ;;  %v2131_v8 = vsel %vm1949_vm3, %v2130_v11, %v2129_v17 }
 0x211   :  { %v2132_v33 = vperm.slane %v1671_v42, %v4874_v3  ;;  %v2189_v42 = vperm.slane %v4822_v38, %v4861_v4  ;;  %v4942_v38 = vadd.s32 4294967248, %v4861_v4 }
 0x212   :  { %v2013_v57 = vsel %vm1961_vm6, %v2012_v15, %v2011_v1 }
 0x213   :  { %v2191_v41 = vsel %vm1945_vm2, %v2190_v22, %v2189_v42 }
 0x214   :  { %v2193_v11 = vsel %vm1949_vm3, %v2192_v35, %v2191_v41 }
 0x217   :  { %v1575_v32 = vpop.xlane.xlu0 %1574  ;;  %v1488_v46 = vpop.xlane.xlu1 %1487 }
 0x218   :  { %v1770_v9 = vpop.xlane.xlu2 %1769  ;;  %v2070_v62 = vperm.slane %v1575_v32, %v4874_v3  ;;  %v2133_v32 = vsel %vm1953_vm4, %v2132_v33, %v2131_v8  ;;  %v2014_v8 = vperm.slane %v1488_v46, %v4942_v38 }
 0x21a   :  { %v4907_v5 = vsel %vm1953_vm4, %v2070_v62, %v2069_v21  ;;  %v2194_v62 = vperm.slane %v1767_v43, %v4874_v3  ;;  %v2196_v21 = vperm.slane %v1770_v9, %v4879_v34  ;;  %v4948_v9 = vadd.s32 4294967240, %v4861_v4 }
 0x21b   :  { %v2015_v42 = vsel %vm1965_vm7, %v2014_v8, %v2013_v57  ;;  %v4980_v8 = vadd.s32 4294967184, %v4861_v4 }
 0x21c   :  { %v2195_v26 = vsel %vm1953_vm4, %v2194_v62, %v2193_v11 }
 0x21d   :  { %v2197_v2 = vsel %vm1957_vm5, %v2196_v21, %v2195_v26 }
 0x21f   :  { %v1674_v15 = vpop.xlane.xlu0 %1673  ;;  %v4916_v1 = vpop.xlane.xlu1 %1577 }
 0x220   :  { %v2134_v53 = vperm.slane %v1674_v15, %v4879_v34  ;;  %v1491_v56 = vpop.xlane.xlu2 %1490 }
 0x222   :  { %v4924_v10 = vsel %vm1957_vm5, %v2134_v53, %v2133_v32  ;;  %v2016_v53 = vperm.slane %v1491_v56, %v4948_v9  ;;  %v4953_v32 = vadd.s32 4294967232, %v4861_v4 }
 0x224   :  { %v2017_v41 = vsel %vm1969_vm8, %v2016_v53, %v2015_v42  ;;  %v1942_v53 = vperm.slane %v4458_v61, %v4861_v4  ;;  %v1948_v42 = vperm.slane %v4488_v40, %v4871_v23  ;;  %v2159_v40 = vperm.slane %v4531_v50, %v4868_v7 }
 0x225   :  { %v2158_v50 = vperm.slane %v4514_v24, %v4861_v4  ;;  %v1960_v24 = vperm.slane %v4551_v27, %v4891_v60  ;;  %v2165_v27 = vperm.slane %v4577_v12, %v4879_v34 }
 0x227   :  { %v1773_v59 = vpop.xlane.xlu0 %1772  ;;  %v4934_v33 = vpop.xlane.xlu1 %1676 }
 0x228   :  { %v2198_v17 = vperm.slane %v1773_v59, %v4891_v60  ;;  %v4938_v15 = vpop.xlane.xlu2 %1580 }
 0x22a   :  { %v4945_v43 = vsel %vm1961_vm6, %v2198_v17, %v2197_v2  ;;  %v1944_v2 = vperm.slane %v4486_v39, %v4868_v7  ;;  %v1952_v39 = vperm.slane %v4516_v25, %v4874_v3  ;;  %v2161_v25 = vperm.slane %v4536_v54, %v4871_v23 }
 0x22b   :  { %5818 = vst [vmem:[#allocation55_spill] sm:$0xff] %v4945_v43 }
 0x22c   :  { %v1946_v43 = vsel %vm1945_vm2, %v1944_v2, %v1942_v53  ;;  %v2097_v53 = vperm.slane %v4506_v6, %v4868_v7  ;;  %v2035_v2 = vperm.slane %v4529_v49, %v4868_v7  ;;  %v2099_v6 = vperm.slane %v4544_v16, %v4871_v23 }
 0x22d   :  { %v1950_v61 = vsel %vm1949_vm3, %v1948_v42, %v1946_v43  ;;  %v2160_v43 = vsel %vm1945_vm2, %v2159_v40, %v2158_v50  ;;  %v2034_v49 = vperm.slane %v4482_v36, %v4861_v4  ;;  %v2101_v16 = vperm.slane %v4561_v48, %v4874_v3 }
 0x22e   :  { %v1954_v13 = vsel %vm1953_vm4, %v1952_v39, %v1950_v61  ;;  %v2039_v7 = vperm.slane %v4566_v58, %v4874_v3  ;;  %v2162_v48 = vsel %vm1949_vm3, %v2161_v25, %v2160_v43  ;;  %v2167_v50 = vperm.slane %v4604_v45, %v4891_v60 }
 0x22f   :  { %v4955_v22 = vpop.xlane.xlu1 %1775  ;;  %v1494_v35 = vpop.xlane.xlu0 %1493  ;;  %v2036_v39 = vsel %vm1945_vm2, %v2035_v2, %v2034_v49  ;;  %v1968_v2 = vperm.slane %v4599_v52, %v4948_v9  ;;  %v2043_v43 = vperm.slane %v4614_v30, %v4891_v60  ;;  %v1972_v52 = vperm.slane %v4619_v37, %v4953_v32  ;;  %v5823_v49 = vld [vmem:[#allocation18_spill] sm:$0xff] }
 0x230   :  { %v4958_v62 = vpop.xlane.xlu2 %1679  ;;  %v2018_v21 = vperm.slane %v1494_v35, %v4953_v32  ;;  %v4985_v35 = vadd.s32 4294967176, %v4861_v4  ;;  %v2107_v45 = vperm.slane %v5823_v49, %v4942_v38  ;;  %v5831_v49 = vld [vmem:[#allocation26_spill] sm:$0xff] }
 0x232   :  { %v4963_v46 = vsel %vm1973_vm9, %v2018_v21, %v2017_v41 }
 0x237   :  { %v4965_v56 = vpop.xlane.xlu0 %1583  ;;  %v4967_v11 = vpop.xlane.xlu1 %1496 }
 0x238   :  { %v4969_v59 = vpop.xlane.xlu2 %1778 }
 0x23f   :  { %v4971_v26 = vpop.xlane.xlu0 %1682  ;;  %v4973_v17 = vpop.xlane.xlu1 %1586 }
 0x240   :  { %5819 = vst [vmem:[#allocation56_spill] sm:$0xff] %v4971_v26  ;;  %v4975_v57 = vpop.xlane.xlu2 %1499  ;;  %v2096_v26 = vperm.slane %v4501_v0, %v4861_v4  ;;  %v2037_v0 = vperm.slane %v4546_v20, %v4871_v23 }
 0x241   :  { %5820 = vst [vmem:[#allocation57_spill] sm:$0xff] %v4973_v17 }
 0x242   :  { %v2098_v20 = vsel %vm1945_vm2, %v2097_v53, %v2096_v26  ;;  %v2038_v12 = vsel %vm1949_vm3, %v2037_v0, %v2036_v39  ;;  %vm2220_vm2 = vcmask 1041409  }
 0x243   :  { %v2100_v58 = vsel %vm1949_vm3, %v2099_v6, %v2098_v20  ;;  %v2040_v40 = vsel %vm1953_vm4, %v2039_v7, %v2038_v12  ;;  %v5824_v7 = vld [vmem:[#allocation19_spill] sm:$0xff]  ;;  %v5825_v20 = vld [vmem:[#allocation20_spill] sm:$0xff]  ;;  %vm2222_vm3 = vcmask 1042434  }
 0x244   :  { %v2102_v61 = vsel %vm1953_vm4, %v2101_v16, %v2100_v58  ;;  %v5087_v16 = vadd.s32 4294967216, %v4861_v4  ;;  %v2045_v30 = vperm.slane %v5824_v7, %v4942_v38  ;;  %v2171_v37 = vperm.slane %v5825_v20, %v4948_v9 }
 0x247   :  { %v4989_v21 = vpop.xlane.xlu0 %1781  ;;  %v4991_v41 = vpop.xlane.xlu1 %1685 }
 0x248   :  { %5821 = vst [vmem:[#allocation58_spill] sm:$0xff] %v4989_v21  ;;  %v4996_v17 = vpop.xlane.xlu2 %1589  ;;  %v1956_v21 = vperm.slane %v4521_v31, %v4879_v34  ;;  %v2163_v31 = vperm.slane %v4559_v44, %v4874_v3  ;;  %v1964_v44 = vperm.slane %v4579_v14, %v4942_v38  ;;  %v2103_v3 = vperm.slane %v4589_v29, %v4879_v34 }
 0x249   :  { %v5068_v29 = vadd.s32 4294967224, %v4861_v4 }
 0x24a   :  { %v1958_v23 = vsel %vm1957_vm5, %v1956_v21, %v1954_v13  ;;  %v2164_v14 = vsel %vm1953_vm4, %v2163_v31, %v2162_v48  ;;  %v2041_v21 = vperm.slane %v4597_v51, %v4879_v34  ;;  %v2105_v51 = vperm.slane %v4612_v28, %v4891_v60 }
 0x24b   :  { %v1962_v26 = vsel %vm1961_vm6, %v1960_v24, %v1958_v23  ;;  %v2166_v25 = vsel %vm1957_vm5, %v2165_v27, %v2164_v14  ;;  %v2104_v6 = vsel %vm1957_vm5, %v2103_v3, %v2102_v61  ;;  %v5822_v24 = vld [vmem:[#allocation17_spill] sm:$0xff]  ;;  %v5099_v48 = vadd.s32 4294967208, %v4861_v4  ;;  %v5827_v14 = vld [vmem:[#allocation22_spill] sm:$0xff] }
 0x24c   :  { %v1966_v53 = vsel %vm1965_vm7, %v1964_v44, %v1962_v26  ;;  %v2042_v0 = vsel %vm1957_vm5, %v2041_v21, %v2040_v40  ;;  %v2169_v31 = vperm.slane %v5822_v24, %v4942_v38  ;;  %v5826_v23 = vld [vmem:[#allocation21_spill] sm:$0xff]  ;;  %v2168_v44 = vsel %vm1961_vm6, %v2167_v50, %v2166_v25  ;;  %v5828_v25 = vld [vmem:[#allocation23_spill] sm:$0xff]  ;;  %v5829_v50 = vld [vmem:[#allocation24_spill] sm:$0xff] }
 0x24d   :  { %v1970_v28 = vsel %vm1969_vm8, %v1968_v2, %v1966_v53  ;;  %v1976_v27 = vperm.slane %v5826_v23, %v5068_v29  ;;  %v2106_v39 = vsel %vm1961_vm6, %v2105_v51, %v2104_v6  ;;  %v2044_v12 = vsel %vm1961_vm6, %v2043_v43, %v2042_v0  ;;  %v5830_v24 = vld [vmem:[#allocation25_spill] sm:$0xff] }
 0x24e   :  { %v1974_v26 = vsel %vm1973_vm9, %v1972_v52, %v1970_v28  ;;  %v2109_v21 = vperm.slane %v5827_v14, %v4948_v9  ;;  %v2170_v40 = vsel %vm1965_vm7, %v2169_v31, %v2168_v44  ;;  %v2108_v2 = vsel %vm1965_vm7, %v2107_v45, %v2106_v39  ;;  %v5832_v28 = vld [vmem:[#allocation27_spill] sm:$0xff]  ;;  %v5834_v23 = vld [vmem:[#allocation29_spill] sm:$0xff] }
 0x24f   :  { %v5047_v36 = vpop.xlane.xlu1 %1784  ;;  %v5049_v42 = vpop.xlane.xlu0 %1502  ;;  %v2047_v53 = vperm.slane %v5828_v25, %v4948_v9  ;;  %v1980_v51 = vperm.slane %v5829_v50, %v5087_v16  ;;  %v2046_v6 = vsel %vm1965_vm7, %v2045_v30, %v2044_v12  ;;  %v2172_v43 = vsel %vm1969_vm8, %v2171_v37, %v2170_v40  ;;  %v5833_v30 = vld [vmem:[#allocation28_spill] sm:$0xff]  ;;  %v5836_v40 = vld [vmem:[#allocation31_spill] sm:$0xff]  ;;  %v5838_v50 = vld [vmem:[#allocation34_spill] sm:$0xff] }
 0x250   :  { %v5056_v13 = vpop.xlane.xlu2 %1688  ;;  %v1978_v52 = vsel %vm1977_vm10, %v1976_v27, %v1974_v26  ;;  %v5121_v0 = vadd.s32 4294967200, %v4861_v4  ;;  %v2173_v31 = vperm.slane %v5830_v24, %v4953_v32  ;;  %v2111_v45 = vperm.slane %v5831_v49, %v4953_v32  ;;  %v5835_v26 = vld [vmem:[#allocation30_spill] sm:$0xff]  ;;  %v5839_v49 = vld [vmem:[#allocation33_spill] sm:$0xff] }
 0x251   :  { %v2049_v7 = vperm.slane %v5832_v28, %v4953_v32  ;;  %v2110_v20 = vsel %vm1969_vm8, %v2109_v21, %v2108_v2  ;;  %v1984_v37 = vperm.slane %v5833_v30, %v5099_v48  ;;  %v2175_v27 = vperm.slane %v5834_v23, %v5068_v29  ;;  %v5837_v21 = vld [vmem:[#allocation32_spill] sm:$0xff] }
 0x252   :  { %v5135_v44 = vadd.s32 4294967192, %v4861_v4  ;;  %v2048_v39 = vsel %vm1969_vm8, %v2047_v53, %v2046_v6  ;;  %v1982_v12 = vsel %vm1981_vm11, %v1980_v51, %v1978_v52  ;;  %v2113_v14 = vperm.slane %v5835_v26, %v5068_v29  ;;  %v5851_v4 = vld [vmem:[#allocation45_spill] sm:$0xff] }
 0x253   :  { %v2051_v25 = vperm.slane %v5836_v40, %v5068_v29  ;;  %v2177_v2 = vperm.slane %v5837_v21, %v5087_v16  ;;  %v2115_v24 = vperm.slane %v5838_v50, %v5087_v16  ;;  %v1988_v28 = vperm.slane %v5839_v49, %v5121_v0  ;;  %v5840_v40 = vld [vmem:[#allocation35_spill] sm:$0xff]  ;;  %v5841_v50 = vld [vmem:[#allocation36_spill] sm:$0xff] }
 0x254   :  { %v2174_v53 = vsel %vm1973_vm9, %v2173_v31, %v2172_v43  ;;  %v2112_v51 = vsel %vm1973_vm9, %v2111_v45, %v2110_v20  ;;  %v2050_v6 = vsel %vm1973_vm9, %v2049_v7, %v2048_v39  ;;  %v1986_v23 = vsel %vm1985_vm12, %v1984_v37, %v1982_v12  ;;  %v5842_v7 = vld [vmem:[#allocation37_spill] sm:$0xff]  ;;  %v5843_v39 = vld [vmem:[#allocation38_spill] sm:$0xff] }
 0x255   :  { %v2176_v26 = vsel %vm1977_vm10, %v2175_v27, %v2174_v53  ;;  %v2053_v21 = vperm.slane %v5840_v40, %v5087_v16  ;;  %v1992_v49 = vperm.slane %v5841_v50, %v5135_v44  ;;  %v2114_v31 = vsel %vm1977_vm10, %v2113_v14, %v2112_v51  ;;  %v5844_v40 = vld [vmem:[#allocation39_spill] sm:$0xff]  ;;  %v5845_v14 = vld [vmem:[#allocation40_spill] sm:$0xff] }
 0x256   :  { %v2052_v45 = vsel %vm1977_vm10, %v2051_v25, %v2050_v6  ;;  %v2179_v20 = vperm.slane %v5842_v7, %v5099_v48  ;;  %v2117_v37 = vperm.slane %v5843_v39, %v5099_v48  ;;  %v2178_v27 = vsel %vm1981_vm11, %v2177_v2, %v2176_v26  ;;  %v5846_v25 = vld [vmem:[#allocation41_spill] sm:$0xff]  ;;  %v5847_v7 = vld [vmem:[#allocation42_spill] sm:$0xff] }
 0x257   :  { %v5101_v58 = vpop.xlane.xlu0 %1592  ;;  %v5103_v3 = vpop.xlane.xlu1 %1505  ;;  %v2116_v12 = vsel %vm1981_vm11, %v2115_v24, %v2114_v31  ;;  %v1990_v53 = vsel %vm1989_vm13, %v1988_v28, %v1986_v23  ;;  %v2055_v50 = vperm.slane %v5844_v40, %v5099_v48  ;;  %v1996_v51 = vperm.slane %v5845_v14, %v4980_v8  ;;  %v5848_v24 = vld [vmem:[#allocation43_spill] sm:$0xff]  ;;  %v5849_v23 = vld [vmem:[#allocation44_spill] sm:$0xff]  ;;  %v5850_v14 = vld [vmem:[#allocation46_spill] sm:$0xff] }
 0x258   :  { %v5109_v61 = vpop.xlane.xlu2 %1787  ;;  %v2181_v6 = vperm.slane %v5846_v25, %v5121_v0  ;;  %v2119_v54 = vperm.slane %v5847_v7, %v5121_v0  ;;  %v2054_v39 = vsel %vm1981_vm11, %v2053_v21, %v2052_v45  ;;  %v1994_v2 = vsel %vm1993_vm14, %v1992_v49, %v1990_v53  ;;  %v5852_v21 = vld [vmem:[#allocation47_spill] sm:$0xff]  ;;  %v5853_v49 = vld [vmem:[#allocation49_spill] sm:$0xff] }
 0x259   :  { %v2057_v28 = vperm.slane %v5848_v24, %v5121_v0  ;;  %v2183_v26 = vperm.slane %v5849_v23, %v5135_v44  ;;  %v2180_v31 = vsel %vm1985_vm12, %v2179_v20, %v2178_v27  ;;  %v2118_v40 = vsel %vm1985_vm12, %v2117_v37, %v2116_v12 }
 0x25a   :  { %v2121_v25 = vperm.slane %v5850_v14, %v5135_v44  ;;  %v2000_v7 = vperm.slane %v5851_v4, %v4985_v35  ;;  %v2059_v45 = vperm.slane %v5852_v21, %v5135_v44  ;;  %v2123_v53 = vperm.slane %v5853_v49, %v4980_v8 }
 0x25b   :  { %v2056_v24 = vsel %vm1985_vm12, %v2055_v50, %v2054_v39  ;;  %v1998_v23 = vsel %vm1997_vm15, %v1996_v51, %v1994_v2  ;;  %v2182_v20 = vsel %vm1989_vm13, %v2181_v6, %v2180_v31  ;;  %v2120_v37 = vsel %vm1989_vm13, %v2119_v54, %v2118_v40  ;;  %v5854_v50 = vld [vmem:[#allocation50_spill] sm:$0xff]  ;;  %v5855_v31 = vld [vmem:[#allocation48_spill] sm:$0xff] }
 0x25c   :  { %v4193_v4 = vmov -1e+30   ;;  %v2058_v14 = vsel %vm1989_vm13, %v2057_v28, %v2056_v24  ;;  %v5208_v21 = vsel %vm1993_vm14, %v2183_v26, %v2182_v20  ;;  %v2061_v39 = vperm.slane %v5854_v50, %v4980_v8  ;;  %v5856_v24 = vld [vmem:[#allocation52_spill] sm:$0xff] }
 0x25d   :  { %49 = vst.msk [vmem:[#allocation2] sm:$0xff] %vm48_vm1, %v4193_v4  ;;  %v2020_v51 = vperm.slane %v4967_v11, %v5068_v29  ;;  %v2122_v54 = vsel %vm1993_vm14, %v2121_v25, %v2120_v37  ;;  %v5218_v2 = vsel %vm2001_vm0, %v2000_v7, %v1998_v23  ;;  %v2185_v40 = vperm.slane %v5855_v31, %v4980_v8  ;;  %v5857_v25 = vld [vmem:[#allocation53_spill] sm:$0xff] }
 0x25e   :  { %v2022_v28 = vperm.slane %v4975_v57, %v5087_v16  ;;  %v2060_v26 = vsel %vm1993_vm14, %v2059_v45, %v2058_v14  ;;  %v2124_v49 = vsel %vm1997_vm15, %v2123_v53, %v2122_v54  ;;  %v2125_v11 = vperm.slane %v5856_v24, %v4985_v35  ;;  %v5858_v14 = vld [vmem:[#allocation51_spill] sm:$0xff] }
 0x25f   :  { %v5152_v52 = vpop.xlane.xlu0 %1691  ;;  %v5154_v30 = vpop.xlane.xlu1 %1595  ;;  %v2024_v20 = vperm.slane %v5049_v42, %v5099_v48  ;;  %v2063_v7 = vperm.slane %v5857_v25, %v4985_v35  ;;  %v2072_v23 = vperm.slane %v4916_v1, %v4879_v34  ;;  %v2136_v37 = vperm.slane %v4934_v33, %v4891_v60 }
 0x260   :  { %v5162_v43 = vpop.xlane.xlu2 %1508  ;;  %v2026_v57 = vperm.slane %v5103_v3, %v5121_v0  ;;  %v2062_v45 = vsel %vm1997_vm15, %v2061_v39, %v2060_v26  ;;  %v2074_v53 = vperm.slane %v4938_v15, %v4891_v60  ;;  %v2021_v42 = vsel %vm1977_vm10, %v2020_v51, %v4963_v46 }
 0x261   :  { %v2028_v4 = vperm.slane %v5162_v43, %v5135_v44  ;;  %v2187_v34 = vperm.slane %v5858_v14, %v4985_v35  ;;  %v2200_v1 = vperm.slane %v4955_v22, %v4942_v38  ;;  %v2138_v33 = vperm.slane %v4958_v62, %v4942_v38 }
 0x262   :  { %v2023_v3 = vsel %vm1981_vm11, %v2022_v28, %v2021_v42  ;;  %v5253_v50 = vsel %vm2001_vm0, %v2125_v11, %v2124_v49  ;;  %v2202_v60 = vperm.slane %v4969_v59, %v4948_v9  ;;  %v2076_v15 = vperm.slane %v4965_v56, %v4942_v38  ;;  %v5859_v28 = vld [vmem:[#allocation56_spill] sm:$0xff]  ;;  %v5860_v56 = vld [vmem:[#allocation57_spill] sm:$0xff] }
 0x263   :  { %v2025_v46 = vsel %vm1985_vm12, %v2024_v20, %v2023_v3  ;;  %v2064_v43 = vsel %vm2001_vm0, %v2063_v7, %v2062_v45  ;;  %v2073_v22 = vsel %vm1957_vm5, %v2072_v23, %v4907_v5  ;;  %v2137_v62 = vsel %vm1961_vm6, %v2136_v37, %v4924_v10  ;;  %v5861_v5 = vld [vmem:[#allocation55_spill] sm:$0xff] }
 0x264   :  { %v2027_v39 = vsel %vm1989_vm13, %v2026_v57, %v2025_v46  ;;  %v2075_v59 = vsel %vm1961_vm6, %v2074_v53, %v2073_v22  ;;  %v2140_v38 = vperm.slane %v5859_v28, %v4948_v9  ;;  %v2078_v26 = vperm.slane %v5860_v56, %v4948_v9  ;;  %v5862_v57 = vld [vmem:[#allocation58_spill] sm:$0xff] }
 0x265   :  { %v2029_v49 = vsel %vm1993_vm14, %v2028_v4, %v2027_v39  ;;  %v2201_v11 = vsel %vm1965_vm7, %v2200_v1, %v5861_v5  ;;  %v2139_v10 = vsel %vm1965_vm7, %v2138_v33, %v2137_v62  ;;  %v2142_v20 = vperm.slane %v4991_v41, %v4953_v32 }
 0x266   :  { %v2080_v25 = vperm.slane %v4996_v17, %v4953_v32  ;;  %v2203_v7 = vsel %vm1969_vm8, %v2202_v60, %v2201_v11  ;;  %v2077_v23 = vsel %vm1965_vm7, %v2076_v15, %v2075_v59  ;;  %v2144_v9 = vperm.slane %v5056_v13, %v5068_v29 }
 0x267   :  { %v5201_v27 = vpop.xlane.xlu0 %1790  ;;  %v5203_v12 = vpop.xlane.xlu1 %1694  ;;  %v2082_v37 = vperm.slane %v5101_v58, %v5068_v29  ;;  %v2204_v45 = vperm.slane %v5862_v57, %v4953_v32  ;;  %v2146_v53 = vperm.slane %v5152_v52, %v5087_v16  ;;  %v2084_v41 = vperm.slane %v5154_v30, %v5087_v16 }
 0x268   :  { %v5214_v6 = vpop.xlane.xlu2 %1598  ;;  %v5863_v17 = vperm.slane %v4473_v19, %v4980_v8  ;;  %v2141_v4 = vsel %vm1969_vm8, %v2140_v38, %v2139_v10  ;;  %v2079_v13 = vsel %vm1969_vm8, %v2078_v26, %v2077_v23  ;;  %v2148_v58 = vperm.slane %v5203_v12, %v5099_v48 }
 0x269   :  { %v2086_v32 = vperm.slane %v5214_v6, %v5099_v48  ;;  %v2143_v52 = vsel %vm1973_vm9, %v2142_v20, %v2141_v4  ;;  %v2081_v1 = vsel %vm1973_vm9, %v2080_v25, %v2079_v13  ;;  %v5864_v60 = vperm.slane %v4471_v18, %v4985_v35  ;;  %v5385_v4 = vld [vmem:[#allocation2] sm:$0xff] }
 0x26a   :  { %v2031_v42 = vsel %vm1997_vm15, %v5863_v17, %v2029_v49  ;;  %v2145_v33 = vsel %vm1977_vm10, %v2144_v9, %v2143_v52  ;;  %v2083_v3 = vsel %vm1977_vm10, %v2082_v37, %v2081_v1  ;;  %v2205_v6 = vsel %vm1973_vm9, %v2204_v45, %v2203_v7  ;;  %v5871_v17 = vld [vmem:[#allocation54_spill] sm:$0xff] }
 0x26b   :  { %v2033_v12 = vsel %vm2001_vm0, %v5864_v60, %v2031_v42  ;;  %v2147_v15 = vsel %vm1981_vm11, %v2146_v53, %v2145_v33  ;;  %v2085_v46 = vsel %vm1981_vm11, %v2084_v41, %v2083_v3  ;;  %v2206_v18 = vperm.slane %v5047_v36, %v5068_v29  ;;  %v5870_v41 = vld [vmem:[#allocation15_spill] sm:$0xff] }
 0x26c   :  { %v2149_v39 = vsel %vm1985_vm12, %v2148_v58, %v2147_v15  ;;  %v2221_v38 = vsel %vm2220_vm2, %v2033_v12, %v5218_v2  ;;  %v2208_v49 = vperm.slane %v5109_v61, %v5087_v16  ;;  %vm2224_vm4 = vcmask 1043459  }
 0x26d   :  { %v2210_v10 = vperm.slane %v5201_v27, %v5099_v48  ;;  %v5865_v36 = vperm.slane %v4454_v55, %v4980_v8  ;;  %v5866_v2 = vperm.slane %v4449_v47, %v4980_v8  ;;  %vm2226_vm5 = vcmask 1044484  }
 0x26e   :  { %v5867_v61 = vperm.slane %v4499_v63, %v4985_v35  ;;  %v2223_v48 = vsel %vm2222_vm3, %v2064_v43, %v2221_v38  ;;  %vm2228_vm6 = vcmask 1045509   ;;  %v2207_v55 = vsel %vm1977_vm10, %v2206_v18, %v2205_v6 }
 0x26f   :  { %v1602_v51 = vpop.xlane.xlu0 %1601  ;;  %v5266_v54 = vpop.xlane.xlu1 %1793  ;;  %vm2230_vm7 = vcmask 1046534   ;;  %v2209_v63 = vsel %vm1981_vm11, %v2208_v49, %v2207_v55  ;;  %vm2232_vm8 = vcmask 1047559   ;;  %vm1813_vm9 = vcmp.lt.s32.totalorder %v5871_v17, %v5870_v41 }
 0x270   :  { %v1698_v24 = vpop.xlane.xlu2 %1697  ;;  %v2088_v30 = vperm.slane %v1602_v51, %v5121_v0  ;;  %v2087_v51 = vsel %vm1985_vm12, %v2086_v32, %v2085_v46  ;;  %v2212_v16 = vperm.slane %v5266_v54, %v5121_v0  ;;  %v5868_v54 = vld [vmem:[#allocation16_spill] sm:$0xff]  ;;  %v2211_v9 = vsel %vm1985_vm12, %v2210_v10, %v2209_v63  ;;  %v54_v63 = vld [vmem:[#allocation6 + $0x8] sm:$0xff]  }
 0x271   :  { %v2150_v19 = vperm.slane %v1698_v24, %v5121_v0  ;;  %v2186_v0 = vsel %vm1997_vm15, %v2185_v40, %v5208_v21  ;;  %v5869_v7 = vperm.slane %v5868_v54, %v4985_v35  ;;  %v5872_v52 = vlaneseq }
 0x272   :  { %v2089_v56 = vsel %vm1989_vm13, %v2088_v30, %v2087_v51  ;;  %v2213_v40 = vsel %vm1989_vm13, %v2212_v16, %v2211_v9 }
 0x273   :  { %v2151_v26 = vsel %vm1989_vm13, %v2150_v19, %v2149_v39  ;;  %v5396_v1 = vshrl.u32 %v5872_v52, 7 }
 0x275   :  { %3971 = vset.pattern.permute.xlu2 %v5396_v1  ;;  %v5400_v30 = vadd.s32 16, %v5396_v1  ;;  %v5404_v19 = vadd.s32 72, %v5396_v1  ;;  %v5424_v39 = vadd.s32 48, %v5396_v1  ;;  %v5427_v51 = vadd.s32 24, %v5396_v1 }
 0x276   :  { %v5439_v18 = vadd.s32 40, %v5396_v1  ;;  %v5459_v49 = vadd.s32 104, %v5396_v1 }
 0x277   :  { %v1701_v22 = vpop.xlane.xlu0 %1700  ;;  %v1605_v62 = vpop.xlane.xlu1 %1604  ;;  %3980 = vset.pattern.permute.xlu0 %v5404_v19 }
 0x278   :  { %v2152_v59 = vperm.slane %v1701_v22, %v5135_v44  ;;  %v2090_v28 = vperm.slane %v1605_v62, %v5135_v44  ;;  %v1797_v11 = vpop.xlane.xlu2 %1796  ;;  %v5416_v22 = vadd.s32 32, %v5396_v1  ;;  %v5419_v62 = vadd.s32 8, %v5396_v1 }
 0x279   :  { %v2214_v27 = vperm.slane %v1797_v11, %v5135_v44  ;;  %v2188_v44 = vsel %vm2001_vm0, %v2187_v34, %v2186_v0  ;;  %v52_v0 = vld [vmem:[#allocation6] sm:$0xff]  }
 0x27a   :  { %v2153_v24 = vsel %vm1993_vm14, %v2152_v59, %v2151_v26  ;;  %v2091_v5 = vsel %vm1993_vm14, %v2090_v28, %v2089_v56  ;;  %v5430_v59 = vadd.s32 112, %v5396_v1  ;;  %v5436_v28 = vadd.s32 64, %v5396_v1 }
 0x27b   :  { %v2155_v29 = vsel %vm1997_vm15, %v5865_v36, %v2153_v24  ;;  %v2093_v20 = vsel %vm1997_vm15, %v5866_v2, %v2091_v5  ;;  %v5449_v56 = vadd.s32 88, %v5396_v1  ;;  %v5452_v26 = vadd.s32 56, %v5396_v1 }
 0x27c   :  { %v2095_v25 = vsel %vm2001_vm0, %v5867_v61, %v2093_v20  ;;  %v2157_v43 = vsel %vm2001_vm0, %v5869_v7, %v2155_v29  ;;  %v5462_v24 = vadd.s32 80, %v5396_v1  ;;  %v5469_v5 = vadd.s32 96, %v5396_v1 }
 0x27d   :  { %v2225_v47 = vsel %vm2224_vm4, %v2095_v25, %v2223_v48  ;;  %v5483_v29 = vadd.s32 120, %v5396_v1  ;;  %v3048_v54 = vunpack.c.h.bf16 %v52_v0 }
 0x27e   :  { %v2227_v23 = vsel %vm2226_vm5, %v5253_v50, %v2225_v47  ;;  %v2215_v50 = vsel %vm1993_vm14, %v2214_v27, %v2213_v40 }
 0x27f   :  { %v1800_v31 = vpop.xlane.xlu0 %1799  ;;  %v1803_v37 = vpop.xlane.xlu1 %1802  ;;  %v2229_v21 = vsel %vm2228_vm6, %v2157_v43, %v2227_v23  ;;  %v3047_v43 = vunpack.c.l.bf16 %v52_v0  ;;  %v3049_v23 = vunpack.c.l.bf16 %v54_v63 }
 0x280   :  { %v2216_v57 = vperm.slane %v1800_v31, %v4980_v8  ;;  %v2218_v45 = vperm.slane %v1803_v37, %v4985_v35  ;;  %v2231_v53 = vsel %vm2230_vm7, %v2188_v44, %v2229_v21  ;;  %v4194_v35 = vmov 0.0   ;;  %v56_v44 = vld [vmem:[#allocation6 + $0x10] sm:$0xff]  }
 0x281   :  { %50 = vst.msk [vmem:[#allocation3] sm:$0xff] %vm48_vm1, %v4194_v35  ;;  %v3050_v37 = vunpack.c.h.bf16 %v54_v63 }
 0x282   :  { %v2217_v14 = vsel %vm1997_vm15, %v2216_v57, %v2215_v50 }
 0x283   :  { %v2219_v34 = vsel %vm2001_vm0, %v2218_v45, %v2217_v14  ;;  %v3051_v45 = vunpack.c.l.bf16 %v56_v44 }
 0x284   :  { %v2233_v42 = vsel %vm2232_vm8, %v2219_v34, %v2231_v53  ;;  %v58_v53 = vld [vmem:[#allocation6 + $0x18] sm:$0xff]   ;;  %v3052_v34 = vunpack.c.h.bf16 %v56_v44 }
 0x285   :  { %v5381_v8 = vsel %vm1813_vm9, %v2233_v42, -1e+30  ;;  %v3054_v52 = vunpack.c.h.bf16 %v58_v53 }
 0x286   :  { %2240 = vmax.xlane.f32.xlu0 %v5381_v8 }
 0x288   :  { %v2257_v20 = vld [vmem:[#allocation3] sm:$0xff] }
 0x2f9   :  { %v2241_v13 = vpop.xlane.xlu0 %2240 }
 0x2fa   :  { %v5388_v58 = vmax.f32 %v5385_v4, %v2241_v13 }
 0x2fc   :  { %v2243_v32 = vsub.f32 %v5385_v4, %v5388_v58  ;;  %3489 = vst.msk [vmem:[#allocation2] sm:$0xff] %vm48_vm1, %v5388_v58  ;;  %2249 = vperm.xlu1 %3970, %v5388_v58   ;;  %v3053_v4 = vunpack.c.l.bf16 %v58_v53  ;;  %v65_v53 = vld [vmem:[#allocation6 + $0x34] sm:$0xf] }
 0x2fe   :  { %v2244_v11 = vmax.f32 %v2243_v32, -80.0 }
 0x300   :  { %v2245_v36 = vmul.f32 1.442695, %v2244_v11 }
 0x304   :  { %3973 = vset.pattern.permute.xlu1 %v5400_v30 }
 0x36e   :  { %v2250_v33 = vpop.permute.xlu1 %2249 }
 0x36f   :  { %v2252_v3 = vsub.f32 %v5381_v8, %v2250_v33 }
 0x371   :  { %v2253_v60 = vmax.f32 %v2252_v3, -80.0  ;;  %v60_v3 = vld [vmem:[#allocation6 + $0x20] sm:$0xf] }
 0x373   :  { %v2254_v12 = vmul.f32 1.442695, %v2253_v60 }
 0x375   :  { %4102 = vpow2.f32 %v2254_v12 }
 0x376   :  { %4104 = vpow2.f32 %v2245_v36  ;;  %v3055_v36 = vunpack.c.l.bf16 %v60_v3 }
 0x37b   :  { %v4103_v6 = vpop.eup %4102 }
 0x37c   :  { %v5411_v15 = vsel %vm1813_vm9, %v4103_v6, 0.0  ;;  %v5488_v2 = vpop.eup %4104  ;;  %v61_v6 = vld [vmem:[#allocation6 + $0x24] sm:$0xff]  }
 0x37d   :  { %v2271_v46 = vperm.slane %v5411_v15, 0  ;;  %2259 = vadd.xlane.f32.xlu0 %v5411_v15  ;;  %v5445_v38 = vperm.slane %v5411_v15, 1  ;;  %v5478_v10 = vperm.slane %v5411_v15, 2  ;;  %v2258_v16 = vmul.f32 %v5488_v2, %v2257_v20 }
 0x37e   :  { %v5504_v7 = vperm.slane %v5411_v15, 3  ;;  %v3056_v20 = vunpack.c.l.bf16 %v61_v6  ;;  %v3057_v0 = vunpack.c.h.bf16 %v61_v6 }
 0x37f   :  { %2288 = vperm.xlu1 %3973, %v2271_v46   ;;  %2276 = vperm.xlu2 %3971, %v2271_v46  }
 0x387   :  { %3975 = vset.pattern.permute.xlu1 %v5416_v22  ;;  %3972 = vset.pattern.permute.xlu2 %v5419_v62 }
 0x38f   :  { %2300 = vperm.xlu1 %3975, %v2271_v46   ;;  %2282 = vperm.xlu2 %3972, %v2271_v46  }
 0x391   :  { %2330 = vperm.xlu0 %3980, %v2271_v46  }
 0x397   :  { %3977 = vset.pattern.permute.xlu1 %v5424_v39  ;;  %3974 = vset.pattern.permute.xlu2 %v5427_v51 }
 0x399   :  { %3985 = vset.pattern.permute.xlu0 %v5430_v59 }
 0x39f   :  { %2312 = vperm.xlu1 %3977, %v2271_v46   ;;  %2294 = vperm.xlu2 %3974, %v2271_v46  }
 0x3a1   :  { %2360 = vperm.xlu0 %3985, %v2271_v46  }
 0x3a7   :  { %3979 = vset.pattern.permute.xlu1 %v5436_v28  ;;  %3976 = vset.pattern.permute.xlu2 %v5439_v18 }
 0x3a9   :  { %3990 = vset.pattern.permute.xlu0 %v5427_v51 }
 0x3af   :  { %2324 = vperm.xlu1 %3979, %v2271_v46   ;;  %2306 = vperm.xlu2 %3976, %v2271_v46  }
 0x3b1   :  { %2391 = vperm.xlu0 %3990, %v5445_v38  }
 0x3b7   :  { %3982 = vset.pattern.permute.xlu1 %v5449_v56  ;;  %3978 = vset.pattern.permute.xlu2 %v5452_v26 }
 0x3b9   :  { %3995 = vset.pattern.permute.xlu0 %v5436_v28 }
 0x3bf   :  { %2342 = vperm.xlu1 %3982, %v2271_v46   ;;  %2318 = vperm.xlu2 %3978, %v2271_v46  }
 0x3c1   :  { %2421 = vperm.xlu0 %3995, %v5445_v38  }
 0x3c7   :  { %3984 = vset.pattern.permute.xlu1 %v5459_v49  ;;  %3981 = vset.pattern.permute.xlu2 %v5462_v24 }
 0x3c9   :  { %4000 = vset.pattern.permute.xlu0 %v5459_v49 }
 0x3cf   :  { %2354 = vperm.xlu1 %3984, %v2271_v46   ;;  %2336 = vperm.xlu2 %3981, %v2271_v46  }
 0x3d1   :  { %2451 = vperm.xlu0 %4000, %v5445_v38  }
 0x3d7   :  { %3987 = vset.pattern.permute.xlu1 %v5396_v1  ;;  %3983 = vset.pattern.permute.xlu2 %v5469_v5 }
 0x3d9   :  { %4005 = vset.pattern.permute.xlu0 %v5400_v30  ;;  %v2277_v48 = vpop.permute.xlu2 %2276 }
 0x3da   :  { %v3175_v40 = vmul.f32 %v3047_v43, %v2277_v48 }
 0x3df   :  { %2373 = vperm.xlu1 %3987, %v5445_v38   ;;  %2348 = vperm.xlu2 %3983, %v2271_v46  }
 0x3e1   :  { %2482 = vperm.xlu0 %4005, %v5478_v10  }
 0x3e7   :  { %3989 = vset.pattern.permute.xlu1 %v5400_v30  ;;  %3986 = vset.pattern.permute.xlu2 %v5483_v29 }
 0x3e9   :  { %4010 = vset.pattern.permute.xlu0 %v5452_v26  ;;  %v2283_v55 = vpop.permute.xlu2 %2282 }
 0x3ea   :  { %v3176_v31 = vmul.f32 %v3048_v54, %v2283_v55 }
 0x3ec   :  { %v3303_v50 = vadd.f32 %v3176_v31, %v3175_v40 }
 0x3ef   :  { %2385 = vperm.xlu1 %3989, %v5445_v38   ;;  %2366 = vperm.xlu2 %3986, %v2271_v46  }
 0x3f0   :  { %v2260_v61 = vpop.xlane.xlu0 %2259 }
 0x3f1   :  { %v2261_v25 = vadd.f32 %v2260_v61, %v2258_v16  ;;  %2512 = vperm.xlu0 %4010, %v5478_v10   ;;  %v2289_v27 = vpop.permute.xlu1 %2288 }
 0x3f2   :  { %v3177_v57 = vmul.f32 %v3049_v23, %v2289_v27  ;;  %v63_v23 = vld [vmem:[#allocation6 + $0x2c] sm:$0xff]  }
 0x3f3   :  { %2263 = vst.msk [vmem:[#allocation3] sm:$0xff] %vm48_vm1, %v2261_v25  ;;  %v3059_v40 = vunpack.c.h.bf16 %v63_v23 }
 0x3f4   :  { %v3304_v42 = vadd.f32 %v3303_v50, %v3177_v57 }
 0x3f7   :  { %3992 = vset.pattern.permute.xlu1 %v5439_v18  ;;  %3988 = vset.pattern.permute.xlu2 %v5419_v62 }
 0x3f9   :  { %4015 = vset.pattern.permute.xlu0 %v5469_v5  ;;  %v2295_v47 = vpop.permute.xlu2 %2294 }
 0x3fa   :  { %v3178_v14 = vmul.f32 %v3050_v37, %v2295_v47 }
 0x3fc   :  { %v3305_v58 = vadd.f32 %v3304_v42, %v3178_v14  ;;  %v66_v14 = vld [vmem:[#allocation6 + $0x38] sm:$0xff]   ;;  %v5525_v42 = vperm.slane %v5411_v15, 4 }
 0x3ff   :  { %2403 = vperm.xlu1 %3992, %v5445_v38   ;;  %2379 = vperm.xlu2 %3988, %v5445_v38  }
 0x401   :  { %2542 = vperm.xlu0 %4015, %v5478_v10   ;;  %v2301_v9 = vpop.permute.xlu1 %2300 }
 0x402   :  { %v3179_v35 = vmul.f32 %v3051_v45, %v2301_v9  ;;  %v3058_v9 = vunpack.c.l.bf16 %v63_v23 }
 0x403   :  { %v2331_v61 = vpop.permute.xlu0 %2330 }
 0x404   :  { %v3306_v60 = vadd.f32 %v3305_v58, %v3179_v35  ;;  %v3184_v27 = vmul.f32 %v3056_v20, %v2331_v61  ;;  %v3061_v35 = vunpack.c.l.bf16 %v66_v14 }
 0x407   :  { %3994 = vset.pattern.permute.xlu1 %v5452_v26  ;;  %3991 = vset.pattern.permute.xlu2 %v5416_v22 }
 0x409   :  { %4020 = vset.pattern.permute.xlu0 %v5419_v62  ;;  %v2307_v21 = vpop.permute.xlu2 %2306 }
 0x40a   :  { %v3180_v32 = vmul.f32 %v3052_v34, %v2307_v21  ;;  %v3060_v34 = vunpack.c.l.bf16 %v65_v53 }
 0x40c   :  { %v3307_v46 = vadd.f32 %v3306_v60, %v3180_v32 }
 0x40f   :  { %2415 = vperm.xlu1 %3994, %v5445_v38   ;;  %2397 = vperm.xlu2 %3991, %v5445_v38  }
 0x411   :  { %2573 = vperm.xlu0 %4020, %v5504_v7   ;;  %v2313_v13 = vpop.permute.xlu1 %2312 }
 0x412   :  { %v3181_v12 = vmul.f32 %v3053_v4, %v2313_v13 }
 0x413   :  { %v2361_v4 = vpop.permute.xlu0 %2360 }
 0x414   :  { %v3308_v16 = vadd.f32 %v3307_v46, %v3181_v12  ;;  %v3189_v32 = vmul.f32 %v3061_v35, %v2361_v4  ;;  %v68_v46 = vld [vmem:[#allocation6 + $0x40] sm:$0xff]   ;;  %v75_v4 = vld [vmem:[#allocation6 + $0x5c] sm:$0xf] }
 0x417   :  { %3997 = vset.pattern.permute.xlu1 %v5462_v24  ;;  %3993 = vset.pattern.permute.xlu2 %v5424_v39 }
 0x419   :  { %4025 = vset.pattern.permute.xlu0 %v5424_v39  ;;  %v2319_v33 = vpop.permute.xlu2 %2318 }
 0x41a   :  { %v3182_v11 = vmul.f32 %v3054_v52, %v2319_v33  ;;  %v3062_v33 = vunpack.c.h.bf16 %v66_v14 }
 0x41c   :  { %v3309_v48 = vadd.f32 %v3308_v16, %v3182_v11  ;;  %v3063_v11 = vunpack.c.l.bf16 %v68_v46 }
 0x41f   :  { %2433 = vperm.xlu1 %3997, %v5445_v38   ;;  %2409 = vperm.xlu2 %3993, %v5445_v38  }
 0x421   :  { %2603 = vperm.xlu0 %4025, %v5504_v7   ;;  %v2325_v25 = vpop.permute.xlu1 %2324 }
 0x422   :  { %v3183_v55 = vmul.f32 %v3055_v36, %v2325_v25  ;;  %v3064_v36 = vunpack.c.h.bf16 %v68_v46 }
 0x424   :  { %v3310_v47 = vadd.f32 %v3309_v48, %v3183_v55  ;;  %v70_v48 = vld [vmem:[#allocation6 + $0x48] sm:$0xf] }
 0x426   :  { %v3311_v63 = vadd.f32 %v3310_v47, %v3184_v27  ;;  %v71_v27 = vld [vmem:[#allocation6 + $0x4c] sm:$0xff]   ;;  %v3065_v47 = vunpack.c.l.bf16 %v70_v48 }
 0x427   :  { %3999 = vset.pattern.permute.xlu1 %v5469_v5  ;;  %3996 = vset.pattern.permute.xlu2 %v5404_v19 }
 0x429   :  { %4030 = vset.pattern.permute.xlu0 %v5449_v56  ;;  %v2337_v54 = vpop.permute.xlu2 %2336 }
 0x42a   :  { %v3185_v43 = vmul.f32 %v3057_v0, %v2337_v54  ;;  %v2392_v0 = vpop.permute.xlu0 %2391 }
 0x42c   :  { %v3312_v44 = vadd.f32 %v3311_v63, %v3185_v43 }
 0x42f   :  { %2445 = vperm.xlu1 %3999, %v5445_v38   ;;  %2427 = vperm.xlu2 %3996, %v5445_v38  }
 0x431   :  { %2633 = vperm.xlu0 %4030, %v5504_v7   ;;  %v2343_v31 = vpop.permute.xlu1 %2342 }
 0x432   :  { %v3186_v37 = vmul.f32 %v3058_v9, %v2343_v31 }
 0x434   :  { %v3313_v21 = vadd.f32 %v3312_v44, %v3186_v37  ;;  %v3067_v44 = vunpack.c.h.bf16 %v71_v27 }
 0x437   :  { %4002 = vset.pattern.permute.xlu1 %v5483_v29  ;;  %3998 = vset.pattern.permute.xlu2 %v5449_v56 }
 0x439   :  { %4035 = vset.pattern.permute.xlu0 %v5396_v1  ;;  %v2349_v57 = vpop.permute.xlu2 %2348 }
 0x43a   :  { %v3187_v45 = vmul.f32 %v3059_v40, %v2349_v57 }
 0x43c   :  { %v3314_v50 = vadd.f32 %v3313_v21, %v3187_v45  ;;  %v73_v21 = vld [vmem:[#allocation6 + $0x54] sm:$0xff]  }
 0x43d   :  { %v3068_v57 = vunpack.c.l.bf16 %v73_v21  ;;  %v3069_v14 = vunpack.c.h.bf16 %v73_v21 }
 0x43f   :  { %2463 = vperm.xlu1 %4002, %v5445_v38   ;;  %2439 = vperm.xlu2 %3998, %v5445_v38  }
 0x441   :  { %2664 = vperm.xlu0 %4035, %v5525_v42   ;;  %v2355_v13 = vpop.permute.xlu1 %2354 }
 0x442   :  { %v3188_v58 = vmul.f32 %v3060_v34, %v2355_v13 }
 0x444   :  { %v3315_v52 = vadd.f32 %v3314_v50, %v3188_v58  ;;  %v76_v58 = vld [vmem:[#allocation6 + $0x60] sm:$0xff]  }
 0x446   :  { %v3316_v3 = vadd.f32 %v3315_v52, %v3189_v32  ;;  %v3070_v32 = vunpack.c.l.bf16 %v75_v4  ;;  %v5554_v52 = vperm.slane %v5411_v15, 5 }
 0x447   :  { %4004 = vset.pattern.permute.xlu1 %v5419_v62  ;;  %4001 = vset.pattern.permute.xlu2 %v5430_v59 }
 0x449   :  { %4040 = vset.pattern.permute.xlu0 %v5439_v18  ;;  %v2367_v60 = vpop.permute.xlu2 %2366 }
 0x44a   :  { %v3190_v12 = vmul.f32 %v3062_v33, %v2367_v60  ;;  %v3071_v33 = vunpack.c.l.bf16 %v76_v58 }
 0x44c   :  { %v5533_v6 = vadd.f32 %v3316_v3, %v3190_v12  ;;  %v2422_v3 = vpop.permute.xlu0 %2421 }
 0x44d   :  { %v3199_v46 = vmul.f32 %v3071_v33, %v2422_v3 }
 0x44e   :  { %v3318_v4 = vrot.slane %v5533_v6, 4 }
 0x44f   :  { %2476 = vperm.xlu1 %4004, %v5478_v10   ;;  %2457 = vperm.xlu2 %4001, %v5445_v38   ;;  %v3066_v38 = vunpack.c.l.bf16 %v71_v27 }
 0x450   :  { %v3319_v33 = vadd.f32 %v3318_v4, %v5533_v6  ;;  %v86_v6 = vld [vmem:[#allocation6 + $0x88] sm:$0xff]  }
 0x451   :  { %2694 = vperm.xlu0 %4040, %v5525_v42   ;;  %v2374_v20 = vpop.permute.xlu1 %2373  ;;  %v3194_v43 = vmul.f32 %v3066_v38, %v2392_v0 }
 0x452   :  { %v3191_v61 = vmul.f32 %v3063_v11, %v2374_v20 }
 0x457   :  { %4007 = vset.pattern.permute.xlu1 %v5416_v22  ;;  %4003 = vset.pattern.permute.xlu2 %v5396_v1 }
 0x459   :  { %4045 = vset.pattern.permute.xlu0 %v5462_v24  ;;  %v2380_v16 = vpop.permute.xlu2 %2379 }
 0x45a   :  { %v3192_v25 = vmul.f32 %v3064_v36, %v2380_v16  ;;  %v3072_v36 = vunpack.c.h.bf16 %v76_v58 }
 0x45c   :  { %v3324_v55 = vadd.f32 %v3192_v25, %v3191_v61  ;;  %v78_v25 = vld [vmem:[#allocation6 + $0x68] sm:$0xff]  }
 0x45d   :  { %v3074_v0 = vunpack.c.h.bf16 %v78_v25 }
 0x45f   :  { %2494 = vperm.xlu1 %4007, %v5478_v10   ;;  %2470 = vperm.xlu2 %4003, %v5478_v10  }
 0x461   :  { %2724 = vperm.xlu0 %4045, %v5525_v42   ;;  %v2386_v63 = vpop.permute.xlu1 %2385 }
 0x462   :  { %v3193_v54 = vmul.f32 %v3065_v47, %v2386_v63 }
 0x464   :  { %v3325_v23 = vadd.f32 %v3324_v55, %v3193_v54  ;;  %v3073_v55 = vunpack.c.l.bf16 %v78_v25 }
 0x466   :  { %v3326_v9 = vadd.f32 %v3325_v23, %v3194_v43  ;;  %v80_v43 = vld [vmem:[#allocation6 + $0x70] sm:$0xf] }
 0x467   :  { %4009 = vset.pattern.permute.xlu1 %v5424_v39  ;;  %4006 = vset.pattern.permute.xlu2 %v5427_v51 }
 0x469   :  { %4050 = vset.pattern.permute.xlu0 %v5483_v29  ;;  %v2398_v31 = vpop.permute.xlu2 %2397 }
 0x46a   :  { %v3195_v37 = vmul.f32 %v3067_v44, %v2398_v31  ;;  %v81_v44 = vld [vmem:[#allocation6 + $0x74] sm:$0xff]  }
 0x46b   :  { %v3076_v31 = vunpack.c.l.bf16 %v81_v44 }
 0x46c   :  { %v3327_v40 = vadd.f32 %v3326_v9, %v3195_v37  ;;  %v3075_v9 = vunpack.c.l.bf16 %v80_v43  ;;  %v2452_v37 = vpop.permute.xlu0 %2451 }
 0x46f   :  { %2506 = vperm.xlu1 %4009, %v5478_v10   ;;  %2488 = vperm.xlu2 %4006, %v5478_v10  }
 0x471   :  { %2754 = vperm.xlu0 %4050, %v5525_v42   ;;  %v2404_v45 = vpop.permute.xlu1 %2403 }
 0x472   :  { %v3196_v53 = vmul.f32 %v3068_v57, %v2404_v45  ;;  %v3204_v57 = vmul.f32 %v3076_v31, %v2452_v37 }
 0x474   :  { %v3328_v50 = vadd.f32 %v3327_v40, %v3196_v53  ;;  %v3077_v53 = vunpack.c.h.bf16 %v81_v44  ;;  %v2483_v43 = vpop.permute.xlu0 %2482 }
 0x477   :  { %4012 = vset.pattern.permute.xlu1 %v5404_v19  ;;  %4008 = vset.pattern.permute.xlu2 %v5439_v18 }
 0x479   :  { %4055 = vset.pattern.permute.xlu0 %v5416_v22  ;;  %v2410_v34 = vpop.permute.xlu2 %2409 }
 0x47a   :  { %v3197_v35 = vmul.f32 %v3069_v14, %v2410_v34 }
 0x47c   :  { %v3329_v13 = vadd.f32 %v3328_v50, %v3197_v35  ;;  %v83_v35 = vld [vmem:[#allocation6 + $0x7c] sm:$0xff]  }
 0x47d   :  { %v3078_v58 = vunpack.c.l.bf16 %v83_v35 }
 0x47f   :  { %2524 = vperm.xlu1 %4012, %v5478_v10   ;;  %2500 = vperm.xlu2 %4008, %v5478_v10  }
 0x481   :  { %2785 = vperm.xlu0 %4055, %v5554_v52   ;;  %v2416_v60 = vpop.permute.xlu1 %2415 }
 0x482   :  { %v3198_v12 = vmul.f32 %v3070_v32, %v2416_v60  ;;  %v5576_v32 = vperm.slane %v5411_v15, 6 }
 0x484   :  { %v3330_v11 = vadd.f32 %v3329_v13, %v3198_v12  ;;  %v3320_v12 = vrot.slane %v3319_v33, 2 }
 0x486   :  { %v3331_v20 = vadd.f32 %v3330_v11, %v3199_v46 }
 0x487   :  { %4014 = vset.pattern.permute.xlu1 %v5449_v56  ;;  %4011 = vset.pattern.permute.xlu2 %v5436_v28 }
 0x489   :  { %4060 = vset.pattern.permute.xlu0 %v5404_v19  ;;  %v2428_v16 = vpop.permute.xlu2 %2427 }
 0x48a   :  { %v3200_v61 = vmul.f32 %v3072_v36, %v2428_v16  ;;  %v3321_v36 = vadd.f32 %v3320_v12, %v3319_v33  ;;  %v91_v12 = vld [vmem:[#allocation6 + $0x9c] sm:$0xff]  }
 0x48c   :  { %v3332_v48 = vadd.f32 %v3331_v20, %v3200_v61  ;;  %v85_v61 = vld [vmem:[#allocation6 + $0x84] sm:$0xf]  ;;  %v3322_v25 = vrot.slane %v3321_v36, 1 }
 0x48f   :  { %2536 = vperm.xlu1 %4014, %v5478_v10   ;;  %2518 = vperm.xlu2 %4011, %v5478_v10  }
 0x491   :  { %2815 = vperm.xlu0 %4060, %v5554_v52   ;;  %v2434_v27 = vpop.permute.xlu1 %2433 }
 0x492   :  { %v3201_v47 = vmul.f32 %v3073_v55, %v2434_v27  ;;  %v3079_v27 = vunpack.c.h.bf16 %v83_v35 }
 0x494   :  { %v3333_v38 = vadd.f32 %v3332_v48, %v3201_v47  ;;  %v3080_v47 = vunpack.c.l.bf16 %v85_v61 }
 0x497   :  { %4017 = vset.pattern.permute.xlu1 %v5430_v59  ;;  %4013 = vset.pattern.permute.xlu2 %v5462_v24 }
 0x499   :  { %4065 = vset.pattern.permute.xlu0 %v5430_v59  ;;  %v2440_v63 = vpop.permute.xlu2 %2439 }
 0x49a   :  { %v3202_v54 = vmul.f32 %v3074_v0, %v2440_v63  ;;  %v3323_v0 = vadd.f32 %v3322_v25, %v3321_v36  ;;  %v3081_v63 = vunpack.c.l.bf16 %v86_v6  ;;  %v3086_v36 = vunpack.c.l.bf16 %v91_v12 }
 0x49c   :  { %v3334_v23 = vadd.f32 %v3333_v38, %v3202_v54  ;;  %v3209_v37 = vmul.f32 %v3081_v63, %v2483_v43 }
 0x49f   :  { %2554 = vperm.xlu1 %4017, %v5478_v10   ;;  %2530 = vperm.xlu2 %4013, %v5478_v10  }
 0x4a1   :  { %2845 = vperm.xlu0 %4065, %v5554_v52   ;;  %v2446_v21 = vpop.permute.xlu1 %2445 }
 0x4a2   :  { %v3203_v40 = vmul.f32 %v3075_v9, %v2446_v21 }
 0x4a4   :  { %v3335_v45 = vadd.f32 %v3334_v23, %v3203_v40  ;;  %v3082_v40 = vunpack.c.h.bf16 %v86_v6  ;;  %v3087_v6 = vunpack.c.h.bf16 %v91_v12 }
 0x4a6   :  { %v3336_v50 = vadd.f32 %v3335_v45, %v3204_v57 }
 0x4a7   :  { %4019 = vset.pattern.permute.xlu1 %v5396_v1  ;;  %4016 = vset.pattern.permute.xlu2 %v5459_v49 }
 0x4a9   :  { %4070 = vset.pattern.permute.xlu0 %v5427_v51  ;;  %v2458_v14 = vpop.permute.xlu2 %2457 }
 0x4aa   :  { %v3205_v34 = vmul.f32 %v3077_v53, %v2458_v14  ;;  %v88_v53 = vld [vmem:[#allocation6 + $0x90] sm:$0xff]  }
 0x4ab   :  { %v3083_v14 = vunpack.c.l.bf16 %v88_v53 }
 0x4ac   :  { %v3337_v13 = vadd.f32 %v3336_v50, %v3205_v34 }
 0x4af   :  { %2567 = vperm.xlu1 %4019, %v5504_v7   ;;  %2548 = vperm.xlu2 %4016, %v5478_v10  }
 0x4b1   :  { %2876 = vperm.xlu0 %4070, %v5576_v32   ;;  %v2464_v3 = vpop.permute.xlu1 %2463 }
 0x4b2   :  { %v3206_v60 = vmul.f32 %v3078_v58, %v2464_v3  ;;  %v90_v3 = vld [vmem:[#allocation6 + $0x98] sm:$0xf] }
 0x4b4   :  { %v3338_v46 = vadd.f32 %v3337_v13, %v3206_v60  ;;  %v3084_v13 = vunpack.c.h.bf16 %v88_v53 }
 0x4b6   :  { %v3339_v11 = vrot.slane %v3338_v46, 4 }
 0x4b7   :  { %4022 = vset.pattern.permute.xlu1 %v5427_v51  ;;  %4018 = vset.pattern.permute.xlu2 %v5483_v29 }
 0x4b8   :  { %v3340_v20 = vadd.f32 %v3339_v11, %v3338_v46  ;;  %v3085_v46 = vunpack.c.l.bf16 %v90_v3  ;;  %v5601_v11 = vperm.slane %v5411_v15, 7 }
 0x4b9   :  { %4075 = vset.pattern.permute.xlu0 %v5436_v28  ;;  %v2471_v38 = vpop.permute.xlu2 %2470 }
 0x4ba   :  { %v3341_v16 = vrot.slane %v3340_v20, 2  ;;  %v3207_v9 = vmul.f32 %v3079_v27, %v2471_v38 }
 0x4bc   :  { %v3342_v48 = vadd.f32 %v3341_v16, %v3340_v20  ;;  %v2513_v20 = vpop.permute.xlu0 %2512 }
 0x4bd   :  { %v3214_v25 = vmul.f32 %v3086_v36, %v2513_v20  ;;  %v98_v36 = vld [vmem:[#allocation6 + $0xb8] sm:$0xff]  }
 0x4be   :  { %v3343_v55 = vrot.slane %v3342_v48, 1 }
 0x4bf   :  { %2585 = vperm.xlu1 %4022, %v5504_v7   ;;  %2560 = vperm.xlu2 %4018, %v5478_v10  }
 0x4c0   :  { %v3344_v54 = vadd.f32 %v3343_v55, %v3342_v48 }
 0x4c1   :  { %2906 = vperm.xlu0 %4075, %v5576_v32   ;;  %v2477_v23 = vpop.permute.xlu1 %2476 }
 0x4c2   :  { %v5589_v44 = vsel %vm2220_vm2, %v3344_v54, %v3323_v0  ;;  %v3208_v31 = vmul.f32 %v3080_v47, %v2477_v23  ;;  %v93_v47 = vld [vmem:[#allocation6 + $0xa4] sm:$0xff]  }
 0x4c3   :  { %v3088_v0 = vunpack.c.l.bf16 %v93_v47  ;;  %v3089_v23 = vunpack.c.h.bf16 %v93_v47  ;;  %v101_v47 = vld [vmem:[#allocation6 + $0xc4] sm:$0xff]  }
 0x4c4   :  { %v3345_v21 = vadd.f32 %v3208_v31, %v3207_v9  ;;  %v3493_v9 = vld [vmem:[#allocation3] sm:$0xff] }
 0x4c5   :  { %vm3494_vm10 = vcmp.gt.f32.partialorder %v3493_v9, 0.0 }
 0x4c6   :  { %v3346_v57 = vadd.f32 %v3345_v21, %v3209_v37  ;;  %v95_v21 = vld [vmem:[#allocation6 + $0xac] sm:$0xf] }
 0x4c7   :  { %4024 = vset.pattern.permute.xlu1 %v5439_v18  ;;  %4021 = vset.pattern.permute.xlu2 %v5400_v30 }
 0x4c9   :  { %4080 = vset.pattern.permute.xlu0 %v5459_v49  ;;  %v2489_v10 = vpop.permute.xlu2 %2488 }
 0x4ca   :  { %v3210_v45 = vmul.f32 %v3082_v40, %v2489_v10  ;;  %v96_v10 = vld [vmem:[#allocation6 + $0xb0] sm:$0xff]  }
 0x4cb   :  { %v3091_v53 = vunpack.c.l.bf16 %v96_v10 }
 0x4cc   :  { %v3347_v50 = vadd.f32 %v3346_v57, %v3210_v45  ;;  %v3495_v57 = vsel %vm3494_vm10, %v3493_v9, 1.0  ;;  %v3090_v45 = vunpack.c.l.bf16 %v95_v21 }
 0x4cd   :  { %4106 = vrcp.f32 %v3495_v57 }
 0x4cf   :  { %2597 = vperm.xlu1 %4024, %v5504_v7   ;;  %2579 = vperm.xlu2 %4021, %v5504_v7  }
 0x4d1   :  { %2936 = vperm.xlu0 %4080, %v5576_v32   ;;  %v2495_v34 = vpop.permute.xlu1 %2494 }
 0x4d2   :  { %v3211_v35 = vmul.f32 %v3083_v14, %v2495_v34 }
 0x4d4   :  { %v3348_v4 = vadd.f32 %v3347_v50, %v3211_v35  ;;  %v2543_v50 = vpop.permute.xlu0 %2542 }
 0x4d5   :  { %v3219_v35 = vmul.f32 %v3091_v53, %v2543_v50  ;;  %v3097_v53 = vunpack.c.h.bf16 %v101_v47 }
 0x4d7   :  { %4027 = vset.pattern.permute.xlu1 %v5436_v28  ;;  %4023 = vset.pattern.permute.xlu2 %v5416_v22 }
 0x4d9   :  { %4085 = vset.pattern.permute.xlu0 %v5400_v30  ;;  %v2501_v58 = vpop.permute.xlu2 %2500 }
 0x4da   :  { %v3212_v33 = vmul.f32 %v3084_v13, %v2501_v58  ;;  %v4107_v13 = vpop.eup %4106  ;;  %v3092_v58 = vunpack.c.h.bf16 %v96_v10 }
 0x4db   :  { %v3497_v3 = vmul.f32 %v4107_v13, %v3495_v57 }
 0x4dc   :  { %v3349_v60 = vadd.f32 %v3348_v4, %v3212_v33 }
 0x4df   :  { %2615 = vperm.xlu1 %4027, %v5504_v7   ;;  %2591 = vperm.xlu2 %4023, %v5504_v7  }
 0x4e1   :  { %2967 = vperm.xlu0 %4085, %v5601_v11   ;;  %v2507_v16 = vpop.permute.xlu1 %2506 }
 0x4e2   :  { %v3213_v61 = vmul.f32 %v3085_v46, %v2507_v16  ;;  %v3498_v16 = vsub.f32 2.0, %v3497_v3 }
 0x4e4   :  { %v3350_v48 = vadd.f32 %v3349_v60, %v3213_v61  ;;  %v5873_v60 = vmov 0   ;;  %v3093_v61 = vunpack.c.l.bf16 %v98_v36 }
 0x4e6   :  { %v3351_v55 = vadd.f32 %v3350_v48, %v3214_v25  ;;  %v3499_v25 = vmul.f32 %v4107_v13, %v3498_v16  ;;  %v106_v16 = vld [vmem:[#allocation6 + $0xd8] sm:$0xff]  }
 0x4e7   :  { %4029 = vset.pattern.permute.xlu1 %v5462_v24  ;;  %4026 = vset.pattern.permute.xlu2 %v5452_v26 }
 0x4e9   :  { %4090 = vset.pattern.permute.xlu0 %v5452_v26  ;;  %v2519_v15 = vpop.permute.xlu2 %2518 }
 0x4ea   :  { %v3215_v27 = vmul.f32 %v3087_v6, %v2519_v15  ;;  %v3094_v15 = vunpack.c.h.bf16 %v98_v36 }
 0x4ec   :  { %v3352_v38 = vadd.f32 %v3351_v55, %v3215_v27 }
 0x4ef   :  { %2627 = vperm.xlu1 %4029, %v5504_v7   ;;  %2609 = vperm.xlu2 %4026, %v5504_v7  }
 0x4f1   :  { %2997 = vperm.xlu0 %4090, %v5601_v11   ;;  %v2525_v63 = vpop.permute.xlu1 %2524 }
 0x4f2   :  { %v3216_v54 = vmul.f32 %v3088_v0, %v2525_v63  ;;  %v3096_v63 = vunpack.c.l.bf16 %v101_v47 }
 0x4f4   :  { %v3353_v43 = vadd.f32 %v3352_v38, %v3216_v54  ;;  %v100_v38 = vld [vmem:[#allocation6 + $0xc0] sm:$0xf] }
 0x4f7   :  { %4032 = vset.pattern.permute.xlu1 %v5459_v49  ;;  %4028 = vset.pattern.permute.xlu2 %v5404_v19 }
 0x4f9   :  { %4095 = vset.pattern.permute.xlu0 %v5469_v5  ;;  %v2531_v31 = vpop.permute.xlu2 %2530 }
 0x4fa   :  { %v3217_v37 = vmul.f32 %v3089_v23, %v2531_v31  ;;  %v2574_v23 = vpop.permute.xlu0 %2573 }
 0x4fc   :  { %v3354_v40 = vadd.f32 %v3353_v43, %v3217_v37  ;;  %v3095_v43 = vunpack.c.l.bf16 %v100_v38  ;;  %v3224_v37 = vmul.f32 %v3096_v63, %v2574_v23  ;;  %v108_v63 = vld [vmem:[#allocation6 + $0xe0] sm:$0xff]  }
 0x4ff   :  { %2645 = vperm.xlu1 %4032, %v5504_v7   ;;  %2621 = vperm.xlu2 %4028, %v5504_v7  }
 0x501   :  { %3027 = vperm.xlu0 %4095, %v5601_v11   ;;  %v2537_v14 = vpop.permute.xlu1 %2536 }
 0x502   :  { %v3218_v34 = vmul.f32 %v3090_v45, %v2537_v14 }
 0x504   :  { %v3355_v4 = vadd.f32 %v3354_v40, %v3218_v34 }
 0x506   :  { %v3356_v33 = vadd.f32 %v3355_v4, %v3219_v35  ;;  %v103_v35 = vld [vmem:[#allocation6 + $0xcc] sm:$0xff]  }
 0x507   :  { %4034 = vset.pattern.permute.xlu1 %v5483_v29  ;;  %4031 = vset.pattern.permute.xlu2 %v5469_v5  ;;  %v3098_v13 = vunpack.c.l.bf16 %v103_v35 }
 0x509   :  { %4096 = vset.pattern.permute.xlu0 %v5873_v60  ;;  %v2549_v12 = vpop.permute.xlu2 %2548 }
 0x50a   :  { %v3220_v46 = vmul.f32 %v3092_v58, %v2549_v12  ;;  %2267 = vperm.xlu0 %4096, %v5488_v2   ;;  %v3099_v12 = vunpack.c.h.bf16 %v103_v35  ;;  %v112_v35 = vld [vmem:[#allocation6 + $0xf0] sm:$0xff]  }
 0x50c   :  { %v3357_v20 = vadd.f32 %v3356_v33, %v3220_v46 }
 0x50f   :  { %2657 = vperm.xlu1 %4034, %v5504_v7   ;;  %2639 = vperm.xlu2 %4031, %v5504_v7  }
 0x511   :  { %v2555_v48 = vpop.permute.xlu1 %2554 }
 0x512   :  { %v3221_v6 = vmul.f32 %v3093_v61, %v2555_v48  ;;  %3513 = vperm.xlu0 %4096, %v3499_v25   ;;  %v3101_v25 = vunpack.c.l.bf16 %v106_v16  ;;  %v2604_v48 = vpop.permute.xlu0 %2603 }
 0x514   :  { %v3358_v55 = vadd.f32 %v3357_v20, %v3221_v6 }
 0x517   :  { %4037 = vset.pattern.permute.xlu1 %v5400_v30  ;;  %4033 = vset.pattern.permute.xlu2 %v5430_v59 }
 0x519   :  { %v2561_v27 = vpop.permute.xlu2 %2560 }
 0x51a   :  { %v3222_v2 = vmul.f32 %v3094_v15, %v2561_v27  ;;  %v3229_v15 = vmul.f32 %v3101_v25, %v2604_v48 }
 0x51c   :  { %v3359_v0 = vadd.f32 %v3358_v55, %v3222_v2  ;;  %v3102_v2 = vunpack.c.h.bf16 %v106_v16  ;;  %v114_v16 = vld [vmem:[#allocation6 + $0xf8] sm:$0xff]  }
 0x51d   :  { %v3109_v25 = vunpack.c.l.bf16 %v114_v16 }
 0x51e   :  { %v3360_v54 = vrot.slane %v3359_v0, 4 }
 0x51f   :  { %2676 = vperm.xlu1 %4037, %v5525_v42   ;;  %2651 = vperm.xlu2 %4033, %v5504_v7  }
 0x520   :  { %v3361_v9 = vadd.f32 %v3360_v54, %v3359_v0 }
 0x521   :  { %v2568_v31 = vpop.permute.xlu1 %2567 }
 0x522   :  { %v3362_v21 = vrot.slane %v3361_v9, 2  ;;  %v3223_v40 = vmul.f32 %v3095_v43, %v2568_v31  ;;  %v3103_v43 = vunpack.c.l.bf16 %v108_v63 }
 0x524   :  { %v3363_v57 = vadd.f32 %v3362_v21, %v3361_v9  ;;  %v3366_v10 = vadd.f32 %v3224_v37, %v3223_v40  ;;  %v3104_v37 = vunpack.c.h.bf16 %v108_v63 }
 0x526   :  { %v3364_v45 = vrot.slane %v3363_v57, 1 }
 0x527   :  { %4039 = vset.pattern.permute.xlu1 %v5416_v22  ;;  %4036 = vset.pattern.permute.xlu2 %v5419_v62 }
 0x528   :  { %v3365_v50 = vadd.f32 %v3364_v45, %v3363_v57 }
 0x529   :  { %v2580_v14 = vpop.permute.xlu2 %2579 }
 0x52a   :  { %v5632_v34 = vsel %vm2222_vm3, %v3365_v50, %v5589_v44  ;;  %v3225_v7 = vmul.f32 %v3097_v53, %v2580_v14  ;;  %v105_v44 = vld [vmem:[#allocation6 + $0xd4] sm:$0xf]  ;;  %v2634_v50 = vpop.permute.xlu0 %2633 }
 0x52b   :  { %v3100_v61 = vunpack.c.l.bf16 %v105_v44 }
 0x52c   :  { %v3367_v4 = vadd.f32 %v3366_v10, %v3225_v7  ;;  %v111_v10 = vld [vmem:[#allocation6 + $0xe8] sm:$0xff]  }
 0x52d   :  { %v3105_v45 = vunpack.c.l.bf16 %v111_v10  ;;  %v3106_v53 = vunpack.c.h.bf16 %v111_v10 }
 0x52f   :  { %2688 = vperm.xlu1 %4039, %v5525_v42   ;;  %2670 = vperm.xlu2 %4036, %v5525_v42  }
 0x531   :  { %v2586_v58 = vpop.permute.xlu1 %2585 }
 0x532   :  { %v3226_v33 = vmul.f32 %v3098_v13, %v2586_v58  ;;  %v3107_v58 = vunpack.c.l.bf16 %v112_v35 }
 0x534   :  { %v3368_v3 = vadd.f32 %v3367_v4, %v3226_v33  ;;  %v3234_v4 = vmul.f32 %v3106_v53, %v2634_v50 }
 0x537   :  { %4042 = vset.pattern.permute.xlu1 %v5452_v26  ;;  %4038 = vset.pattern.permute.xlu2 %v5427_v51 }
 0x539   :  { %v2592_v46 = vpop.permute.xlu2 %2591 }
 0x53a   :  { %v3227_v36 = vmul.f32 %v3099_v12, %v2592_v46 }
 0x53c   :  { %v3369_v20 = vadd.f32 %v3368_v3, %v3227_v36  ;;  %v3108_v36 = vunpack.c.h.bf16 %v112_v35  ;;  %v119_v35 = vld [vmem:[#allocation6 + $0x10c] sm:$0xff]  }
 0x53f   :  { %2706 = vperm.xlu1 %4042, %v5525_v42   ;;  %2682 = vperm.xlu2 %4038, %v5525_v42  }
 0x541   :  { %v2598_v6 = vpop.permute.xlu1 %2597 }
 0x542   :  { %v3228_v55 = vmul.f32 %v3100_v61, %v2598_v6 }
 0x544   :  { %v3370_v27 = vadd.f32 %v3369_v20, %v3228_v55 }
 0x546   :  { %v3371_v47 = vadd.f32 %v3370_v27, %v3229_v15  ;;  %v3110_v15 = vunpack.c.h.bf16 %v114_v16  ;;  %v122_v16 = vld [vmem:[#allocation6 + $0x118] sm:$0xff]  }
 0x547   :  { %4044 = vset.pattern.permute.xlu1 %v5404_v19  ;;  %4041 = vset.pattern.permute.xlu2 %v5424_v39 }
 0x549   :  { %v2610_v38 = vpop.permute.xlu2 %2609 }
 0x54a   :  { %v3230_v0 = vmul.f32 %v3102_v2, %v2610_v38  ;;  %v117_v38 = vld [vmem:[#allocation6 + $0x104] sm:$0xff]  }
 0x54c   :  { %v3372_v54 = vadd.f32 %v3371_v47, %v3230_v0  ;;  %v116_v47 = vld [vmem:[#allocation6 + $0x100] sm:$0xf] }
 0x54d   :  { %v3111_v63 = vunpack.c.l.bf16 %v116_v47 }
 0x54f   :  { %2718 = vperm.xlu1 %4044, %v5525_v42   ;;  %2700 = vperm.xlu2 %4041, %v5525_v42  }
 0x551   :  { %v2616_v23 = vpop.permute.xlu1 %2615 }
 0x552   :  { %v3231_v9 = vmul.f32 %v3103_v43, %v2616_v23  ;;  %v3112_v43 = vunpack.c.l.bf16 %v117_v38  ;;  %v2665_v23 = vpop.permute.xlu0 %2664 }
 0x554   :  { %v3373_v31 = vadd.f32 %v3372_v54, %v3231_v9 }
 0x557   :  { %4047 = vset.pattern.permute.xlu1 %v5469_v5  ;;  %4043 = vset.pattern.permute.xlu2 %v5436_v28 }
 0x559   :  { %v2622_v21 = vpop.permute.xlu2 %2621 }
 0x55a   :  { %v3232_v40 = vmul.f32 %v3104_v37, %v2622_v21  ;;  %v3239_v37 = vmul.f32 %v3111_v63, %v2665_v23 }
 0x55c   :  { %v3374_v57 = vadd.f32 %v3373_v31, %v3232_v40 }
 0x55f   :  { %2736 = vperm.xlu1 %4047, %v5525_v42   ;;  %2712 = vperm.xlu2 %4043, %v5525_v42  }
 0x561   :  { %v2628_v14 = vpop.permute.xlu1 %2627 }
 0x562   :  { %v3233_v7 = vmul.f32 %v3105_v45, %v2628_v14  ;;  %v3113_v45 = vunpack.c.h.bf16 %v117_v38 }
 0x564   :  { %v3375_v13 = vadd.f32 %v3374_v57, %v3233_v7 }
 0x566   :  { %v3376_v33 = vadd.f32 %v3375_v13, %v3234_v4  ;;  %v3114_v13 = vunpack.c.l.bf16 %v119_v35 }
 0x567   :  { %4049 = vset.pattern.permute.xlu1 %v5430_v59  ;;  %4046 = vset.pattern.permute.xlu2 %v5449_v56 }
 0x569   :  { %v2640_v3 = vpop.permute.xlu2 %2639 }
 0x56a   :  { %v3235_v12 = vmul.f32 %v3107_v58, %v2640_v3 }
 0x56c   :  { %v3377_v46 = vadd.f32 %v3376_v33, %v3235_v12  ;;  %v121_v12 = vld [vmem:[#allocation6 + $0x114] sm:$0xf] }
 0x56f   :  { %2748 = vperm.xlu1 %4049, %v5525_v42   ;;  %2730 = vperm.xlu2 %4046, %v5525_v42  }
 0x571   :  { %v2646_v44 = vpop.permute.xlu1 %2645 }
 0x572   :  { %v3236_v20 = vmul.f32 %v3108_v36, %v2646_v44  ;;  %v3116_v36 = vunpack.c.l.bf16 %v121_v12  ;;  %v129_v12 = vld [vmem:[#allocation6 + $0x134] sm:$0xff]  }
 0x574   :  { %v3378_v61 = vadd.f32 %v3377_v46, %v3236_v20  ;;  %v3115_v46 = vunpack.c.h.bf16 %v119_v35 }
 0x577   :  { %4052 = vset.pattern.permute.xlu1 %v5419_v62  ;;  %4048 = vset.pattern.permute.xlu2 %v5459_v49 }
 0x579   :  { %v2652_v48 = vpop.permute.xlu2 %2651 }
 0x57a   :  { %v3237_v6 = vmul.f32 %v3109_v25, %v2652_v48  ;;  %v3117_v48 = vunpack.c.l.bf16 %v122_v16 }
 0x57c   :  { %v3379_v55 = vadd.f32 %v3378_v61, %v3237_v6 }
 0x57f   :  { %2767 = vperm.xlu1 %4052, %v5554_v52   ;;  %2742 = vperm.xlu2 %4048, %v5525_v42  }
 0x581   :  { %v2658_v27 = vpop.permute.xlu1 %2657 }
 0x582   :  { %v3238_v2 = vmul.f32 %v3110_v15, %v2658_v27 }
 0x584   :  { %v3380_v0 = vadd.f32 %v3379_v55, %v3238_v2  ;;  %v3118_v2 = vunpack.c.h.bf16 %v122_v16  ;;  %v131_v16 = vld [vmem:[#allocation6 + $0x13c] sm:$0xf] }
 0x586   :  { %v3381_v54 = vrot.slane %v3380_v0, 4 }
 0x587   :  { %4054 = vset.pattern.permute.xlu1 %v5427_v51  ;;  %4051 = vset.pattern.permute.xlu2 %v5396_v1 }
 0x588   :  { %v3382_v9 = vadd.f32 %v3381_v54, %v3380_v0  ;;  %v124_v0 = vld [vmem:[#allocation6 + $0x120] sm:$0xff]  }
 0x589   :  { %v2671_v31 = vpop.permute.xlu2 %2670  ;;  %v3119_v54 = vunpack.c.l.bf16 %v124_v0 }
 0x58a   :  { %v3383_v21 = vrot.slane %v3382_v9, 2  ;;  %v3240_v40 = vmul.f32 %v3112_v43, %v2671_v31  ;;  %v126_v31 = vld [vmem:[#allocation6 + $0x128] sm:$0xf] }
 0x58c   :  { %v3384_v57 = vadd.f32 %v3383_v21, %v3382_v9  ;;  %v3387_v42 = vadd.f32 %v3240_v40, %v3239_v37  ;;  %v3120_v37 = vunpack.c.h.bf16 %v124_v0  ;;  %v3121_v21 = vunpack.c.l.bf16 %v126_v31  ;;  %v132_v0 = vld [vmem:[#allocation6 + $0x140] sm:$0xff]  }
 0x58e   :  { %v3385_v10 = vrot.slane %v3384_v57, 1 }
 0x58f   :  { %2779 = vperm.xlu1 %4054, %v5554_v52   ;;  %2761 = vperm.xlu2 %4051, %v5554_v52  }
 0x590   :  { %v3386_v53 = vadd.f32 %v3385_v10, %v3384_v57  ;;  %v127_v10 = vld [vmem:[#allocation6 + $0x12c] sm:$0xff]  }
 0x591   :  { %v2677_v50 = vpop.permute.xlu1 %2676 }
 0x592   :  { %v5662_v14 = vsel %vm2224_vm4, %v3386_v53, %v5632_v34  ;;  %v3241_v7 = vmul.f32 %v3113_v45, %v2677_v50  ;;  %v2695_v34 = vpop.permute.xlu0 %2694  ;;  %v3122_v50 = vunpack.c.l.bf16 %v127_v10 }
 0x593   :  { %v3244_v61 = vmul.f32 %v3116_v36, %v2695_v34  ;;  %v3124_v36 = vunpack.c.l.bf16 %v129_v12 }
 0x594   :  { %v3388_v4 = vadd.f32 %v3387_v42, %v3241_v7 }
 0x597   :  { %4057 = vset.pattern.permute.xlu1 %v5424_v39  ;;  %4053 = vset.pattern.permute.xlu2 %v5400_v30 }
 0x599   :  { %v2683_v58 = vpop.permute.xlu2 %2682 }
 0x59a   :  { %v3242_v33 = vmul.f32 %v3114_v13, %v2683_v58  ;;  %v2725_v40 = vpop.permute.xlu0 %2724  ;;  %v3123_v58 = vunpack.c.h.bf16 %v127_v10 }
 0x59b   :  { %v3249_v45 = vmul.f32 %v3121_v21, %v2725_v40 }
 0x59c   :  { %v3389_v3 = vadd.f32 %v3388_v4, %v3242_v33 }
 0x59f   :  { %2797 = vperm.xlu1 %4057, %v5554_v52   ;;  %2773 = vperm.xlu2 %4053, %v5554_v52  }
 0x5a1   :  { %v2689_v44 = vpop.permute.xlu1 %2688 }
 0x5a2   :  { %v3243_v20 = vmul.f32 %v3115_v46, %v2689_v44 }
 0x5a4   :  { %v3390_v25 = vadd.f32 %v3389_v3, %v3243_v20 }
 0x5a6   :  { %v3391_v6 = vadd.f32 %v3390_v25, %v3244_v61  ;;  %v3125_v61 = vunpack.c.h.bf16 %v129_v12  ;;  %v3126_v25 = vunpack.c.l.bf16 %v131_v16 }
 0x5a7   :  { %4059 = vset.pattern.permute.xlu1 %v5436_v28  ;;  %4056 = vset.pattern.permute.xlu2 %v5439_v18 }
 0x5a9   :  { %v2701_v55 = vpop.permute.xlu2 %2700 }
 0x5aa   :  { %v3245_v15 = vmul.f32 %v3117_v48, %v2701_v55  ;;  %v2755_v48 = vpop.permute.xlu0 %2754 }
 0x5ac   :  { %v3392_v27 = vadd.f32 %v3391_v6, %v3245_v15  ;;  %v3254_v15 = vmul.f32 %v3126_v25, %v2755_v48  ;;  %v139_v48 = vld [vmem:[#allocation6 + $0x15c] sm:$0xff]  }
 0x5af   :  { %2809 = vperm.xlu1 %4059, %v5554_v52   ;;  %2791 = vperm.xlu2 %4056, %v5554_v52  }
 0x5b1   :  { %v2707_v47 = vpop.permute.xlu1 %2706 }
 0x5b2   :  { %v3246_v38 = vmul.f32 %v3118_v2, %v2707_v47 }
 0x5b4   :  { %v3393_v63 = vadd.f32 %v3392_v27, %v3246_v38 }
 0x5b7   :  { %4062 = vset.pattern.permute.xlu1 %v5449_v56  ;;  %4058 = vset.pattern.permute.xlu2 %v5452_v26 }
 0x5b9   :  { %v2713_v43 = vpop.permute.xlu2 %2712 }
 0x5ba   :  { %v3247_v23 = vmul.f32 %v3119_v54, %v2713_v43  ;;  %v3127_v43 = vunpack.c.l.bf16 %v132_v0 }
 0x5bc   :  { %v3394_v9 = vadd.f32 %v3393_v63, %v3247_v23  ;;  %v3128_v23 = vunpack.c.h.bf16 %v132_v0 }
 0x5bf   :  { %2827 = vperm.xlu1 %4062, %v5554_v52   ;;  %2803 = vperm.xlu2 %4058, %v5554_v52  }
 0x5c1   :  { %v2719_v57 = vpop.permute.xlu1 %2718 }
 0x5c2   :  { %v3248_v42 = vmul.f32 %v3120_v37, %v2719_v57 }
 0x5c4   :  { %v3395_v53 = vadd.f32 %v3394_v9, %v3248_v42 }
 0x5c6   :  { %v3396_v7 = vadd.f32 %v3395_v53, %v3249_v45 }
 0x5c7   :  { %4064 = vset.pattern.permute.xlu1 %v5459_v49  ;;  %4061 = vset.pattern.permute.xlu2 %v5462_v24 }
 0x5c9   :  { %v2731_v35 = vpop.permute.xlu2 %2730 }
 0x5ca   :  { %v3250_v4 = vmul.f32 %v3122_v50, %v2731_v35  ;;  %v136_v35 = vld [vmem:[#allocation6 + $0x150] sm:$0xf] }
 0x5cc   :  { %v3397_v13 = vadd.f32 %v3396_v7, %v3250_v4 }
 0x5cf   :  { %2839 = vperm.xlu1 %4064, %v5554_v52   ;;  %2821 = vperm.xlu2 %4061, %v5554_v52  }
 0x5d1   :  { %v2737_v33 = vpop.permute.xlu1 %2736 }
 0x5d2   :  { %v3251_v3 = vmul.f32 %v3123_v58, %v2737_v33  ;;  %v137_v58 = vld [vmem:[#allocation6 + $0x154] sm:$0xff]  }
 0x5d3   :  { %v3132_v12 = vunpack.c.l.bf16 %v137_v58  ;;  %v3133_v16 = vunpack.c.h.bf16 %v137_v58 }
 0x5d4   :  { %v3398_v46 = vadd.f32 %v3397_v13, %v3251_v3  ;;  %v2786_v3 = vpop.permute.xlu0 %2785 }
 0x5d7   :  { %4067 = vset.pattern.permute.xlu1 %v5396_v1  ;;  %4063 = vset.pattern.permute.xlu2 %v5469_v5 }
 0x5d9   :  { %v2743_v34 = vpop.permute.xlu2 %2742 }
 0x5da   :  { %v3252_v44 = vmul.f32 %v3124_v36, %v2743_v34 }
 0x5dc   :  { %v3399_v20 = vadd.f32 %v3398_v46, %v3252_v44 }
 0x5df   :  { %2858 = vperm.xlu1 %4067, %v5576_v32   ;;  %2833 = vperm.xlu2 %4063, %v5554_v52  }
 0x5e1   :  { %v2749_v6 = vpop.permute.xlu1 %2748 }
 0x5e2   :  { %v3253_v55 = vmul.f32 %v3125_v61, %v2749_v6 }
 0x5e4   :  { %v3400_v27 = vadd.f32 %v3399_v20, %v3253_v55  ;;  %v3134_v55 = vunpack.c.l.bf16 %v139_v48 }
 0x5e6   :  { %v3401_v2 = vadd.f32 %v3400_v27, %v3254_v15 }
 0x5e7   :  { %4069 = vset.pattern.permute.xlu1 %v5400_v30  ;;  %4066 = vset.pattern.permute.xlu2 %v5483_v29  ;;  %v134_v30 = vld [vmem:[#allocation6 + $0x148] sm:$0xff]  }
 0x5e8   :  { %v3402_v47 = vrot.slane %v3401_v2, 4  ;;  %v3129_v45 = vunpack.c.l.bf16 %v134_v30 }
 0x5e9   :  { %v2762_v9 = vpop.permute.xlu2 %2761 }
 0x5ea   :  { %v3403_v38 = vadd.f32 %v3402_v47, %v3401_v2  ;;  %v3255_v40 = vmul.f32 %v3127_v43, %v2762_v9  ;;  %v3135_v2 = vunpack.c.h.bf16 %v139_v48  ;;  %v141_v47 = vld [vmem:[#allocation6 + $0x164] sm:$0xf] }
 0x5ec   :  { %v3404_v63 = vrot.slane %v3403_v38, 2 }
 0x5ee   :  { %v3405_v54 = vadd.f32 %v3404_v63, %v3403_v38  ;;  %v142_v63 = vld [vmem:[#allocation6 + $0x168] sm:$0xff]  }
 0x5ef   :  { %2870 = vperm.xlu1 %4069, %v5576_v32   ;;  %2851 = vperm.xlu2 %4066, %v5554_v52   ;;  %v3130_v52 = vunpack.c.h.bf16 %v134_v30  ;;  %v3137_v9 = vunpack.c.l.bf16 %v142_v63  ;;  %v3138_v30 = vunpack.c.h.bf16 %v142_v63 }
 0x5f0   :  { %v3406_v31 = vrot.slane %v3405_v54, 1 }
 0x5f1   :  { %v2768_v37 = vpop.permute.xlu1 %2767 }
 0x5f2   :  { %v3407_v21 = vadd.f32 %v3406_v31, %v3405_v54  ;;  %v3256_v57 = vmul.f32 %v3128_v23, %v2768_v37  ;;  %v3136_v54 = vunpack.c.l.bf16 %v141_v47  ;;  %v2816_v23 = vpop.permute.xlu0 %2815 }
 0x5f4   :  { %v5690_v42 = vsel %vm2226_vm5, %v3407_v21, %v5662_v14  ;;  %v3408_v10 = vadd.f32 %v3256_v57, %v3255_v40  ;;  %v3131_v14 = vunpack.c.l.bf16 %v136_v35  ;;  %v3264_v31 = vmul.f32 %v3136_v54, %v2816_v23  ;;  %v151_v23 = vld [vmem:[#allocation6 + $0x18c] sm:$0xf] }
 0x5f6   :  { %v3259_v46 = vmul.f32 %v3131_v14, %v2786_v3 }
 0x5f7   :  { %4072 = vset.pattern.permute.xlu1 %v5439_v18  ;;  %4068 = vset.pattern.permute.xlu2 %v5419_v62 }
 0x5f9   :  { %v2774_v53 = vpop.permute.xlu2 %2773 }
 0x5fa   :  { %v3257_v50 = vmul.f32 %v3129_v45, %v2774_v53  ;;  %v144_v53 = vld [vmem:[#allocation6 + $0x170] sm:$0xff]  }
 0x5fc   :  { %v3409_v7 = vadd.f32 %v3408_v10, %v3257_v50 }
 0x5ff   :  { %2888 = vperm.xlu1 %4072, %v5576_v32   ;;  %2864 = vperm.xlu2 %4068, %v5576_v32  }
 0x601   :  { %v2780_v4 = vpop.permute.xlu1 %2779 }
 0x602   :  { %v3258_v13 = vmul.f32 %v3130_v52, %v2780_v4  ;;  %v3140_v4 = vunpack.c.h.bf16 %v144_v53 }
 0x604   :  { %v3410_v33 = vadd.f32 %v3409_v7, %v3258_v13  ;;  %v3139_v7 = vunpack.c.l.bf16 %v144_v53  ;;  %v146_v13 = vld [vmem:[#allocation6 + $0x178] sm:$0xf] }
 0x605   :  { %v3141_v3 = vunpack.c.l.bf16 %v146_v13  ;;  %v157_v13 = vld [vmem:[#allocation6 + $0x1a4] sm:$0xff]  }
 0x606   :  { %v3411_v34 = vadd.f32 %v3410_v33, %v3259_v46  ;;  %v147_v33 = vld [vmem:[#allocation6 + $0x17c] sm:$0xff]   ;;  %v2846_v46 = vpop.permute.xlu0 %2845 }
 0x607   :  { %4074 = vset.pattern.permute.xlu1 %v5452_v26  ;;  %4071 = vset.pattern.permute.xlu2 %v5416_v22 }
 0x609   :  { %v2792_v36 = vpop.permute.xlu2 %2791 }
 0x60a   :  { %v3260_v44 = vmul.f32 %v3132_v12, %v2792_v36  ;;  %v3142_v36 = vunpack.c.l.bf16 %v147_v33 }
 0x60c   :  { %v3412_v20 = vadd.f32 %v3411_v34, %v3260_v44  ;;  %v3269_v34 = vmul.f32 %v3141_v3, %v2846_v46  ;;  %v3152_v3 = vunpack.c.l.bf16 %v157_v13  ;;  %v159_v46 = vld [vmem:[#allocation6 + $0x1ac] sm:$0xff]  }
 0x60f   :  { %2900 = vperm.xlu1 %4074, %v5576_v32   ;;  %2882 = vperm.xlu2 %4071, %v5576_v32  }
 0x611   :  { %v2798_v61 = vpop.permute.xlu1 %2797 }
 0x612   :  { %v3261_v25 = vmul.f32 %v3133_v16, %v2798_v61 }
 0x614   :  { %v3413_v6 = vadd.f32 %v3412_v20, %v3261_v25 }
 0x617   :  { %4077 = vset.pattern.permute.xlu1 %v5462_v24  ;;  %4073 = vset.pattern.permute.xlu2 %v5424_v39 }
 0x619   :  { %v2804_v26 = vpop.permute.xlu2 %2803 }
 0x61a   :  { %v3262_v15 = vmul.f32 %v3134_v55, %v2804_v26  ;;  %v149_v55 = vld [vmem:[#allocation6 + $0x184] sm:$0xff]  }
 0x61c   :  { %v3414_v27 = vadd.f32 %v3413_v6, %v3262_v15 }
 0x61f   :  { %2918 = vperm.xlu1 %4077, %v5576_v32   ;;  %2894 = vperm.xlu2 %4073, %v5576_v32  }
 0x621   :  { %v2810_v38 = vpop.permute.xlu1 %2809 }
 0x622   :  { %v3263_v0 = vmul.f32 %v3135_v2, %v2810_v38  ;;  %v3144_v2 = vunpack.c.l.bf16 %v149_v55 }
 0x624   :  { %v3415_v43 = vadd.f32 %v3414_v27, %v3263_v0  ;;  %v3143_v27 = vunpack.c.h.bf16 %v147_v33 }
 0x626   :  { %v3416_v21 = vadd.f32 %v3415_v43, %v3264_v31  ;;  %v3145_v43 = vunpack.c.h.bf16 %v149_v55 }
 0x627   :  { %4079 = vset.pattern.permute.xlu1 %v5469_v5  ;;  %4076 = vset.pattern.permute.xlu2 %v5404_v19 }
 0x629   :  { %v2822_v37 = vpop.permute.xlu2 %2821 }
 0x62a   :  { %v3265_v40 = vmul.f32 %v3137_v9, %v2822_v37  ;;  %v3146_v37 = vunpack.c.l.bf16 %v151_v23 }
 0x62c   :  { %v3417_v57 = vadd.f32 %v3416_v21, %v3265_v40  ;;  %v2877_v21 = vpop.permute.xlu0 %2876 }
 0x62f   :  { %2930 = vperm.xlu1 %4079, %v5576_v32   ;;  %2912 = vperm.xlu2 %4076, %v5576_v32  }
 0x631   :  { %v2828_v10 = vpop.permute.xlu1 %2827 }
 0x632   :  { %v3266_v45 = vmul.f32 %v3138_v30, %v2828_v10 }
 0x634   :  { %v3418_v50 = vadd.f32 %v3417_v57, %v3266_v45 }
 0x637   :  { %4082 = vset.pattern.permute.xlu1 %v5483_v29  ;;  %4078 = vset.pattern.permute.xlu2 %v5449_v56 }
 0x639   :  { %v2834_v5 = vpop.permute.xlu2 %2833 }
 0x63a   :  { %v3267_v52 = vmul.f32 %v3139_v7, %v2834_v5 }
 0x63c   :  { %v3419_v35 = vadd.f32 %v3418_v50, %v3267_v52 }
 0x63f   :  { %2948 = vperm.xlu1 %4082, %v5576_v32   ;;  %2924 = vperm.xlu2 %4078, %v5576_v32  }
 0x641   :  { %v2840_v58 = vpop.permute.xlu1 %2839 }
 0x642   :  { %v3268_v14 = vmul.f32 %v3140_v4, %v2840_v58  ;;  %v156_v4 = vld [vmem:[#allocation6 + $0x1a0] sm:$0xf] }
 0x644   :  { %v3420_v12 = vadd.f32 %v3419_v35, %v3268_v14 }
 0x646   :  { %v3421_v20 = vadd.f32 %v3420_v12, %v3269_v34  ;;  %v2907_v12 = vpop.permute.xlu0 %2906 }
 0x647   :  { %4084 = vset.pattern.permute.xlu1 %v5419_v62  ;;  %4081 = vset.pattern.permute.xlu2 %v5430_v59 }
 0x649   :  { %v2852_v44 = vpop.permute.xlu2 %2851 }
 0x64a   :  { %v3270_v16 = vmul.f32 %v3142_v36, %v2852_v44  ;;  %v3154_v44 = vunpack.c.l.bf16 %v159_v46 }
 0x64c   :  { %v3422_v61 = vadd.f32 %v3421_v20, %v3270_v16 }
 0x64e   :  { %v3423_v25 = vrot.slane %v3422_v61, 4 }
 0x64f   :  { %2961 = vperm.xlu1 %4084, %v5601_v11   ;;  %2942 = vperm.xlu2 %4081, %v5576_v32  }
 0x650   :  { %v3424_v48 = vadd.f32 %v3423_v25, %v3422_v61  ;;  %v3155_v25 = vunpack.c.h.bf16 %v159_v46 }
 0x651   :  { %v2859_v62 = vpop.permute.xlu1 %2858 }
 0x652   :  { %v3425_v6 = vrot.slane %v3424_v48, 2  ;;  %v3271_v0 = vmul.f32 %v3143_v27, %v2859_v62  ;;  %v162_v27 = vld [vmem:[#allocation6 + $0x1b8] sm:$0xff]  }
 0x654   :  { %v3426_v26 = vadd.f32 %v3425_v6, %v3424_v48 }
 0x656   :  { %v3427_v15 = vrot.slane %v3426_v26, 1 }
 0x657   :  { %4087 = vset.pattern.permute.xlu1 %v5416_v22  ;;  %4083 = vset.pattern.permute.xlu2 %v5396_v1  ;;  %v152_v22 = vld [vmem:[#allocation6 + $0x190] sm:$0xff]  }
 0x658   :  { %v3428_v47 = vadd.f32 %v3427_v15, %v3426_v26  ;;  %v3147_v40 = vunpack.c.l.bf16 %v152_v22  ;;  %v3148_v53 = vunpack.c.h.bf16 %v152_v22  ;;  %v161_v26 = vld [vmem:[#allocation6 + $0x1b4] sm:$0xf] }
 0x659   :  { %v2865_v38 = vpop.permute.xlu2 %2864  ;;  %v3500_v15 = vld [vmem:[#allocation2] sm:$0xff] }
 0x65a   :  { %v3272_v63 = vmul.f32 %v3144_v2, %v2865_v38  ;;  %v5720_v54 = vsel %vm2228_vm6, %v3428_v47, %v5690_v42  ;;  %v3274_v42 = vmul.f32 %v3146_v37, %v2877_v21  ;;  %v3156_v47 = vunpack.c.l.bf16 %v161_v26 }
 0x65c   :  { %v3429_v32 = vadd.f32 %v3272_v63, %v3271_v0  ;;  %v3157_v0 = vunpack.c.l.bf16 %v162_v27  ;;  %v2937_v63 = vpop.permute.xlu0 %2936 }
 0x65d   :  { %v3284_v23 = vmul.f32 %v3156_v47, %v2937_v63 }
 0x65f   :  { %2979 = vperm.xlu1 %4087, %v5601_v11   ;;  %2955 = vperm.xlu2 %4083, %v5601_v11  }
 0x661   :  { %v2871_v9 = vpop.permute.xlu1 %2870 }
 0x662   :  { %v3273_v31 = vmul.f32 %v3145_v43, %v2871_v9 }
 0x664   :  { %v3430_v1 = vadd.f32 %v3429_v32, %v3273_v31  ;;  %v3158_v31 = vunpack.c.h.bf16 %v162_v27  ;;  %v174_v27 = vld [vmem:[#allocation6 + $0x1e8] sm:$0xff]  }
 0x666   :  { %v3431_v30 = vadd.f32 %v3430_v1, %v3274_v42 }
 0x667   :  { %4089 = vset.pattern.permute.xlu1 %v5424_v39  ;;  %4086 = vset.pattern.permute.xlu2 %v5427_v51  ;;  %v154_v39 = vld [vmem:[#allocation6 + $0x198] sm:$0xff]  }
 0x668   :  { %v3149_v35 = vunpack.c.l.bf16 %v154_v39 }
 0x669   :  { %v2883_v57 = vpop.permute.xlu2 %2882 }
 0x66a   :  { %v3275_v10 = vmul.f32 %v3147_v40, %v2883_v57 }
 0x66c   :  { %v3432_v45 = vadd.f32 %v3431_v30, %v3275_v10 }
 0x66f   :  { %2991 = vperm.xlu1 %4089, %v5601_v11   ;;  %2973 = vperm.xlu2 %4086, %v5601_v11  }
 0x671   :  { %v2889_v50 = vpop.permute.xlu1 %2888 }
 0x672   :  { %v3276_v7 = vmul.f32 %v3148_v53, %v2889_v50 }
 0x674   :  { %v3433_v5 = vadd.f32 %v3432_v45, %v3276_v7  ;;  %v164_v7 = vld [vmem:[#allocation6 + $0x1c0] sm:$0xff]  }
 0x677   :  { %4092 = vset.pattern.permute.xlu1 %v5404_v19  ;;  %4088 = vset.pattern.permute.xlu2 %v5439_v18  ;;  %v3150_v19 = vunpack.c.h.bf16 %v154_v39 }
 0x679   :  { %v2895_v51 = vpop.permute.xlu2 %2894 }
 0x67a   :  { %v3277_v18 = vmul.f32 %v3149_v35, %v2895_v51  ;;  %v3160_v51 = vunpack.c.h.bf16 %v164_v7  ;;  %v166_v35 = vld [vmem:[#allocation6 + $0x1c8] sm:$0xf] }
 0x67c   :  { %v3434_v33 = vadd.f32 %v3433_v5, %v3277_v18  ;;  %v3161_v18 = vunpack.c.l.bf16 %v166_v35 }
 0x67f   :  { %3009 = vperm.xlu1 %4092, %v5601_v11   ;;  %2985 = vperm.xlu2 %4088, %v5601_v11  }
 0x681   :  { %v2901_v52 = vpop.permute.xlu1 %2900 }
 0x687   :  { %4094 = vset.pattern.permute.xlu1 %v5449_v56  ;;  %4091 = vset.pattern.permute.xlu2 %v5436_v28  ;;  %v3278_v56 = vmul.f32 %v3150_v19, %v2901_v52  ;;  %v3151_v28 = vunpack.c.l.bf16 %v156_v4  ;;  %v3159_v52 = vunpack.c.l.bf16 %v164_v7  ;;  %v2968_v4 = vpop.permute.xlu0 %2967  ;;  %v179_v7 = vld [vmem:[#allocation6 + $0x1fc] sm:$0xf] }
 0x688   :  { %v3174_v35 = vunpack.c.l.bf16 %v179_v7 }
 0x689   :  { %v2913_v58 = vpop.permute.xlu2 %2912  ;;  %v3435_v36 = vadd.f32 %v3434_v33, %v3278_v56  ;;  %v3279_v34 = vmul.f32 %v3151_v28, %v2907_v12  ;;  %v3289_v33 = vmul.f32 %v3161_v18, %v2968_v4 }
 0x68b   :  { %v3436_v16 = vadd.f32 %v3435_v36, %v3279_v34 }
 0x68f   :  { %3021 = vperm.xlu1 %4094, %v5601_v11   ;;  %3003 = vperm.xlu2 %4091, %v5601_v11  }
 0x691   :  { %v2919_v14 = vpop.permute.xlu1 %2918 }
 0x697   :  { %4098 = vset.pattern.permute.xlu1 %v5430_v59  ;;  %4093 = vset.pattern.permute.xlu2 %v5462_v24  ;;  %v3153_v59 = vunpack.c.h.bf16 %v157_v13  ;;  %v3280_v24 = vmul.f32 %v3152_v3, %v2913_v58 }
 0x699   :  { %v2925_v20 = vpop.permute.xlu2 %2924  ;;  %v3281_v61 = vmul.f32 %v3153_v59, %v2919_v14  ;;  %v3437_v6 = vadd.f32 %v3436_v16, %v3280_v24 }
 0x69a   :  { %v3282_v55 = vmul.f32 %v3154_v44, %v2925_v20  ;;  %v171_v44 = vld [vmem:[#allocation6 + $0x1dc] sm:$0xf]  ;;  %v172_v20 = vld [vmem:[#allocation6 + $0x1e0] sm:$0xff]  }
 0x69b   :  { %v3438_v2 = vadd.f32 %v3437_v6, %v3281_v61  ;;  %v3166_v6 = vunpack.c.l.bf16 %v171_v44  ;;  %v3167_v26 = vunpack.c.l.bf16 %v172_v20 }
 0x69d   :  { %v3439_v38 = vadd.f32 %v3438_v2, %v3282_v55 }
 0x69f   :  { %3039 = vperm.xlu1 %4098, %v5601_v11   ;;  %3015 = vperm.xlu2 %4093, %v5601_v11  }
 0x6a1   :  { %v2931_v48 = vpop.permute.xlu1 %2930 }
 0x6a2   :  { %v3283_v62 = vmul.f32 %v3155_v25, %v2931_v48 }
 0x6a4   :  { %v3440_v43 = vadd.f32 %v3439_v38, %v3283_v62  ;;  %v3168_v62 = vunpack.c.h.bf16 %v172_v20 }
 0x6a6   :  { %v3441_v22 = vadd.f32 %v3440_v43, %v3284_v23 }
 0x6a7   :  { %4100 = vset.pattern.permute.xlu1 %v5873_v60  ;;  %4097 = vset.pattern.permute.xlu2 %v5459_v49 }
 0x6a8   :  { %3504 = vperm.xlu1 %4100, %v3500_v15   ;;  %v2998_v15 = vpop.permute.xlu0 %2997 }
 0x6a9   :  { %v2943_v32 = vpop.permute.xlu2 %2942  ;;  %v3294_v47 = vmul.f32 %v3166_v6, %v2998_v15 }
 0x6aa   :  { %v3285_v9 = vmul.f32 %v3157_v0, %v2943_v32  ;;  %v3169_v0 = vunpack.c.l.bf16 %v174_v27 }
 0x6ac   :  { %v3442_v37 = vadd.f32 %v3441_v22, %v3285_v9  ;;  %v3170_v9 = vunpack.c.h.bf16 %v174_v27 }
 0x6af   :  { %3033 = vperm.xlu2 %4097, %v5601_v11  }
 0x6b1   :  { %v2949_v60 = vpop.permute.xlu1 %2948 }
 0x6b2   :  { %v3286_v49 = vmul.f32 %v3158_v31, %v2949_v60  ;;  %v176_v60 = vld [vmem:[#allocation6 + $0x1f0] sm:$0xf] }
 0x6b4   :  { %v3443_v1 = vadd.f32 %v3442_v37, %v3286_v49  ;;  %v177_v37 = vld [vmem:[#allocation6 + $0x1f4] sm:$0xff]  }
 0x6b6   :  { %v3444_v21 = vrot.slane %v3443_v1, 4 }
 0x6b7   :  { %4099 = vset.pattern.permute.xlu2 %v5483_v29  ;;  %v167_v29 = vld [vmem:[#allocation6 + $0x1cc] sm:$0xff]  }
 0x6b8   :  { %v3445_v40 = vadd.f32 %v3444_v21, %v3443_v1  ;;  %v3162_v58 = vunpack.c.l.bf16 %v167_v29  ;;  %v3171_v21 = vunpack.c.l.bf16 %v176_v60 }
 0x6b9   :  { %v2956_v53 = vpop.permute.xlu2 %2955 }
 0x6ba   :  { %v3446_v42 = vrot.slane %v3445_v40, 2  ;;  %v3287_v13 = vmul.f32 %v3159_v52, %v2956_v53 }
 0x6bc   :  { %v3447_v57 = vadd.f32 %v3446_v42, %v3445_v40  ;;  %v3028_v40 = vpop.permute.xlu0 %3027 }
 0x6be   :  { %v3448_v30 = vrot.slane %v3447_v57, 1 }
 0x6bf   :  { %3045 = vperm.xlu2 %4099, %v5601_v11   ;;  %v169_v11 = vld [vmem:[#allocation6 + $0x1d4] sm:$0xff]  }
 0x6c0   :  { %v3449_v10 = vadd.f32 %v3448_v30, %v3447_v57  ;;  %v3164_v12 = vunpack.c.l.bf16 %v169_v11  ;;  %v3165_v59 = vunpack.c.h.bf16 %v169_v11  ;;  %v3172_v57 = vunpack.c.l.bf16 %v177_v37 }
 0x6c1   :  { %v2962_v50 = vpop.permute.xlu1 %2961 }
 0x6c2   :  { %v5747_v45 = vsel %vm2230_vm7, %v3449_v10, %v5720_v54  ;;  %v3288_v19 = vmul.f32 %v3160_v51, %v2962_v50  ;;  %v3163_v54 = vunpack.c.h.bf16 %v167_v29  ;;  %v3173_v50 = vunpack.c.h.bf16 %v177_v37 }
 0x6c4   :  { %v3450_v28 = vadd.f32 %v3288_v19, %v3287_v13 }
 0x6c6   :  { %v3451_v46 = vadd.f32 %v3450_v28, %v3289_v33 }
 0x6c9   :  { %v2974_v5 = vpop.permute.xlu2 %2973 }
 0x6ca   :  { %v3290_v3 = vmul.f32 %v3162_v58, %v2974_v5  ;;  %v3299_v5 = vmul.f32 %v3171_v21, %v3028_v40 }
 0x6cc   :  { %v3452_v34 = vadd.f32 %v3451_v46, %v3290_v3 }
 0x6d1   :  { %v2980_v39 = vpop.permute.xlu1 %2979 }
 0x6d2   :  { %v3291_v36 = vmul.f32 %v3163_v54, %v2980_v39 }
 0x6d4   :  { %v3453_v25 = vadd.f32 %v3452_v34, %v3291_v36 }
 0x6d9   :  { %v2986_v56 = vpop.permute.xlu2 %2985 }
 0x6da   :  { %v3292_v24 = vmul.f32 %v3164_v12, %v2986_v56  ;;  %v2268_v56 = vpop.permute.xlu0 %2267 }
 0x6dc   :  { %v3454_v55 = vadd.f32 %v3453_v25, %v3292_v24  ;;  %v2270_v24 = vmul.f32 0.0, %v2268_v56 }
 0x6e1   :  { %v2992_v14 = vpop.permute.xlu1 %2991 }
 0x6e2   :  { %v3293_v48 = vmul.f32 %v3165_v59, %v2992_v14  ;;  %v3514_v59 = vpop.permute.xlu0 %3513 }
 0x6e4   :  { %v3455_v2 = vadd.f32 %v3454_v55, %v3293_v48 }
 0x6e6   :  { %v3456_v43 = vadd.f32 %v3455_v2, %v3294_v47 }
 0x6e9   :  { %v3004_v16 = vpop.permute.xlu2 %3003 }
 0x6ea   :  { %v3295_v38 = vmul.f32 %v3167_v26, %v3004_v16 }
 0x6ec   :  { %v3457_v31 = vadd.f32 %v3456_v43, %v3295_v38 }
 0x6f1   :  { %v3010_v61 = vpop.permute.xlu1 %3009 }
 0x6f2   :  { %v3296_v23 = vmul.f32 %v3168_v62, %v3010_v61 }
 0x6f4   :  { %v3458_v49 = vadd.f32 %v3457_v31, %v3296_v23 }
 0x6f9   :  { %v3016_v63 = vpop.permute.xlu2 %3015 }
 0x6fa   :  { %v3297_v22 = vmul.f32 %v3169_v0, %v3016_v63 }
 0x6fc   :  { %v3459_v42 = vadd.f32 %v3458_v49, %v3297_v22 }
 0x701   :  { %v3022_v32 = vpop.permute.xlu1 %3021 }
 0x702   :  { %v3298_v1 = vmul.f32 %v3170_v9, %v3022_v32 }
 0x704   :  { %v3460_v53 = vadd.f32 %v3459_v42, %v3298_v1 }
 0x706   :  { %v3461_v51 = vadd.f32 %v3460_v53, %v3299_v5 }
 0x709   :  { %v3034_v30 = vpop.permute.xlu2 %3033 }
 0x70a   :  { %v3300_v39 = vmul.f32 %v3172_v57, %v3034_v30 }
 0x70c   :  { %v3462_v29 = vadd.f32 %v3461_v51, %v3300_v39 }
 0x711   :  { %v3040_v10 = vpop.permute.xlu1 %3039 }
 0x712   :  { %v3301_v52 = vmul.f32 %v3173_v50, %v3040_v10 }
 0x714   :  { %v3463_v18 = vadd.f32 %v3462_v29, %v3301_v52 }
 0x719   :  { %v3046_v19 = vpop.permute.xlu2 %3045 }
 0x71a   :  { %v3302_v4 = vmul.f32 %v3174_v35, %v3046_v19  ;;  %v3505_v13 = vpop.permute.xlu1 %3504 }
 0x71b   :  { %v3507_v58 = vsub.f32 %v5381_v8, %v3505_v13 }
 0x71c   :  { %v3464_v11 = vadd.f32 %v3463_v18, %v3302_v4 }
 0x71d   :  { %v3508_v14 = vmax.f32 %v3507_v58, -80.0 }
 0x71e   :  { %v3465_v28 = vrot.slane %v3464_v11, 4 }
 0x71f   :  { %v3509_v54 = vmul.f32 1.442695, %v3508_v14 }
 0x720   :  { %v3466_v33 = vadd.f32 %v3465_v28, %v3464_v11 }
 0x721   :  { %4108 = vpow2.f32 %v3509_v54 }
 0x722   :  { %v3467_v3 = vrot.slane %v3466_v33, 2 }
 0x724   :  { %v3468_v12 = vadd.f32 %v3467_v3, %v3466_v33 }
 0x726   :  { %v3469_v46 = vrot.slane %v3468_v12, 1 }
 0x727   :  { %v4109_v36 = vpop.eup %4108 }
 0x728   :  { %v3470_v34 = vadd.f32 %v3469_v46, %v3468_v12  ;;  %v3516_v8 = vmul.f32 %v4109_v36, %v3514_v59 }
 0x72a   :  { %v3485_v44 = vsel %vm2232_vm8, %v3470_v34, %v5747_v45  ;;  %v3518_v20 = vsel %vm1813_vm9, %v3516_v8, 0.0 }
 0x72b   :  { %v3487_v16 = vadd.f32 %v3485_v44, %v2270_v24  ;;  %3519 = vst [vmem:[#allocation10] sm:$0xff] %v3518_v20 }
 0x72c   :  { %3544 = dma.vmem_to_hbm [thread:$0]  %s3540_s1, 128, %s3542_s14, [#allocation11]  }
 0x72d   :  { %v3521_v61 = vmul.f32 %v3514_v59, %v3487_v16 }
 0x72f   :  { %3522 = vst [vmem:[#allocation9] sm:$0xff] %v3521_v61 }
 0x730   :  { %3533 = dma.vmem_to_hbm [thread:$0]  %s3529_s16, 128, %s3531_s19, [#allocation8]  }
 0x731   :  { %4185 = dma.done.wait [#allocation8], 128  }
 0x732   :  { %4186 = vsyncadd [#allocation8], 4294967168 }
 0x733   :  { %4187 = dma.done.wait [#allocation11], 128  }
 0x734   :  { %4188 = vsyncadd [#allocation11], 4294967168 }
 0x735   :  { %3553 = vsyncpa [#allocation7], 1 }
 0x736   :  { %3554 = vsyncpa [#allocation8], 1 }
 0x737   :  { %3555 = vsyncpa [#allocation11], 1 }

</bundles_post_ra>
